<compile_context>
chip_gen: v7x
topology: tpu7x:2x2x1
jax: 0.10.0
libtpu: 0.0.40
codegen_flags: <defaults>
</compile_context>

<pallas_src>
import functools

import jax
import jax.numpy as jnp
import numpy as np
from jax import lax
from jax.experimental import pallas as pl
from jax.experimental.pallas import tpu as pltpu


def _msa_yolov_kernel(xc_ref, xr_ref, wq_ref, b1_ref, b2_ref,
                      w1_hbm, w2_hbm, o_ref,
                      w1_buf, w2_buf, sem,
                      *, num_heads, scale, sim_thresh):
    f32 = jnp.float32
    N, C = xc_ref.shape[1], xc_ref.shape[2]
    H = num_heads
    Dh = C // H

    # Kick off linear1/linear2 weight DMAs immediately; they are only needed after
    # the qkv + attention phase, so their transfer is fully overlapped with compute.
    w1_cp = pltpu.make_async_copy(w1_hbm, w1_buf, sem.at[0])
    w2_cp = pltpu.make_async_copy(w2_hbm, w2_buf, sem.at[1])
    w1_cp.start()
    w2_cp.start()

    xc = xc_ref[0]                                    # (N, C) f32, batch 0 only
    xr = xr_ref[0]

    # Fused qkv projection: one (2N, C) @ (C, 6C) matmul.
    # rows 0:N -> x_cls, rows N:2N -> x_reg; lanes [0:3C] = W_qkv_cls,
    # lanes [3C:6C] = W_qkv_reg (merged host-side).  bf16 weights upcast in VMEM.
    x2 = jnp.concatenate([xc, xr], axis=0)                        # (2N, C)
    qkv = jnp.dot(x2, wq_ref[...].astype(f32),
                  preferred_element_type=f32)                     # (2N, 6C)

    q_c = qkv[0:N, 0 * C:1 * C]
    k_c = qkv[0:N, 1 * C:2 * C]
    v_c = qkv[0:N, 2 * C:3 * C]
    q_r = qkv[N:2 * N, 3 * C:4 * C]
    k_r = qkv[N:2 * N, 4 * C:5 * C]

    def to_heads(t):                                  # (N, C) -> (H, N, Dh)
        return jnp.stack([t[:, h * Dh:(h + 1) * Dh] for h in range(H)], axis=0)

    def l2norm(t):                                    # rsqrt -> EUP slot
        return t * lax.rsqrt(jnp.sum(t * t, axis=-1, keepdims=True))

    def softmax_approx(t):                            # EUP fast reciprocal
        m = jnp.max(t, axis=-1, keepdims=True)
        e = jnp.exp(t - m)
        return e * pl.reciprocal(jnp.sum(e, axis=-1, keepdims=True), approx=True)

    qc = l2norm(to_heads(q_c))
    kc = l2norm(to_heads(k_c))
    qr = l2norm(to_heads(q_r))
    kr = l2norm(to_heads(k_r))
    vc = to_heads(v_c)                                # (H, N, Dh)
    vcn = l2norm(vc)

    # Batched (over heads) MXU matmuls instead of 4x interleaved K=32 matmuls.
    raw = jnp.einsum('hnd,hmd->hnm', vcn, vcn, preferred_element_type=f32)
    s_cls = jnp.einsum('hnd,hmd->hnm', qc, kc, preferred_element_type=f32) * scale
    s_reg = jnp.einsum('hnd,hmd->hnm', qr, kr, preferred_element_type=f32) * scale
    attn = 0.5 * (softmax_approx(s_cls) + softmax_approx(s_reg))  # (H, N, N)

    x_heads = jnp.einsum('hnm,hmd->hnd', attn, vc,
                         preferred_element_type=f32)              # (H, N, Dh)
    # Lane-dense (N, C) tile in head order -> single K=128 matmul for x @ W1[:C].
    x_flat = jnp.concatenate([x_heads[h] for h in range(H)], axis=-1)  # (N, C)

    # sim_round2 (batch 0, head-averaged).  Exact normalization here keeps the
    # strict `> sim_thresh` mask and the renorm f32-exact (review concern).
    inv_h = 1.0 / H
    raw_mean = sum(raw[h] for h in range(H)) * inv_h              # (N, N)
    attn_mean = sum(attn[h] for h in range(H)) * inv_h            # (N, N)
    sim_mask = (raw_mean > sim_thresh).astype(f32)
    mmax = jnp.max(attn_mean, axis=-1, keepdims=True)
    e = jnp.exp(attn_mean - mmax)
    sr2 = e / jnp.sum(e, axis=-1, keepdims=True)
    sr2 = sim_mask * sr2
    sr2 = sr2 / jnp.sum(sr2, axis=-1, keepdims=True)

    # linear1 on trans_cls = cat([x, x_ori]); the concat is folded into split
    # matmuls (x_ori == v_c, same channel order).  Weight DMA was overlapped above.
    w1_cp.wait()
    w1 = w1_buf[...].astype(f32)                                   # (2C, 2C)
    msa = (jnp.dot(x_flat, w1[0:C, :], preferred_element_type=f32)
           + jnp.dot(v_c, w1[C:2 * C, :], preferred_element_type=f32)
           + b1_ref[...])                                          # (N, 2C)

    # find_similar_round2 + linear2, cat again folded into split matmuls.
    soft = jnp.dot(sr2, msa, preferred_element_type=f32)           # (N, 2C)
    w2_cp.wait()
    w2 = w2_buf[...].astype(f32)                                   # (4C, out_dim)
    out = (jnp.dot(soft, w2[0:2 * C, :], preferred_element_type=f32)
           + jnp.dot(msa, w2[2 * C:4 * C, :], preferred_element_type=f32)
           + b2_ref[...])                                          # (N, out_dim)

    o_ref[...] = out.astype(o_ref.dtype)


def msa_yolov_pallas(x_cls, x_reg, params, *, num_heads=4,
                     scale=25.0, sim_thresh=0.75):
    """x_cls, x_reg: (B, N, C) f32.  Returns (N, out_dim) — identical to the torch
    module (its output only depends on batch 0 of its inputs)."""
    B, N, C = x_cls.shape
    assert C % num_heads == 0
    w_qkv = params["w_qkv"]   # (C, 6C) bf16 = [W_qkv_cls^T | W_qkv_reg^T]
    w1 = params["w1"]         # (2C, 2C) bf16 (torch linear1 weight transposed)
    b1 = params["b1"]         # (1, 2C)  f32
    w2 = params["w2"]         # (4C, out_dim) bf16
    b2 = params["b2"]         # (1, out_dim) f32
    out_dim = w2.shape[1]

    kernel = functools.partial(_msa_yolov_kernel, num_heads=num_heads,
                               scale=float(scale), sim_thresh=float(sim_thresh))

    return pl.pallas_call(
        kernel,
        out_shape=jax.ShapeDtypeStruct((N, out_dim), x_cls.dtype),
        grid_spec=pltpu.PrefetchScalarGridSpec(
            num_scalar_prefetch=0,
            grid=(1,),
            in_specs=[
                pl.BlockSpec((1, N, C), lambda i: (0, 0, 0)),     # x_cls, batch 0
                pl.BlockSpec((1, N, C), lambda i: (0, 0, 0)),     # x_reg, batch 0
                pl.BlockSpec((C, 6 * C), lambda i: (0, 0)),       # merged qkv weight
                pl.BlockSpec((1, 2 * C), lambda i: (0, 0)),       # b1
                pl.BlockSpec((1, out_dim), lambda i: (0, 0)),     # b2
                pl.BlockSpec(memory_space=pl.ANY),                # w1 (manual DMA)
                pl.BlockSpec(memory_space=pl.ANY),                # w2 (manual DMA)
            ],
            out_specs=pl.BlockSpec((N, out_dim), lambda i: (0, 0)),
            scratch_shapes=[
                pltpu.VMEM((2 * C, 2 * C), w1.dtype),
                pltpu.VMEM((4 * C, out_dim), w2.dtype),
                pltpu.SemaphoreType.DMA((2,)),
            ],
        ),
        compiler_params=pltpu.CompilerParams(
            dimension_semantics=("arbitrary",)),
    )(x_cls, x_reg, w_qkv, b1, b2, w1, w2)


def make_params(key, dim, out_dim):
    """Deterministic synthetic parameters, stored (in_features, out_features).
    Matmul weights are stored bf16 (halved HBM traffic); biases stay f32."""
    ks = jax.random.split(key, 6)

    def init(k, shape, fan_in):
        return jax.random.normal(k, shape, jnp.float32) / np.sqrt(fan_in)

    w_qkv_cls = init(ks[0], (dim, 3 * dim), dim)
    w_qkv_reg = init(ks[1], (dim, 3 * dim), dim)
    return {
        "w_qkv": jnp.concatenate([w_qkv_cls, w_qkv_reg],
                                 axis=1).astype(jnp.bfloat16),       # (C, 6C)
        "w1": init(ks[2], (2 * dim, 2 * dim), 2 * dim).astype(jnp.bfloat16),
        "b1": 0.1 * jax.random.normal(ks[3], (1, 2 * dim), jnp.float32),
        "w2": init(ks[4], (4 * dim, out_dim), 4 * dim).astype(jnp.bfloat16),
        "b2": 0.1 * jax.random.normal(ks[5], (1, out_dim), jnp.float32),
    }


def _to_f64(a):
    return np.asarray(jnp.asarray(a, jnp.float32), np.float64)


def _reference_np(x_cls, x_reg, params, *, num_heads, scale=25.0, sim_thresh=0.75):
    """float64 numpy reference that mirrors the torch module op-for-op.
    Uses the same bf16-rounded weight values the kernel consumes."""
    x_cls = np.asarray(x_cls, np.float64)
    x_reg = np.asarray(x_reg, np.float64)
    B, N, C = x_cls.shape
    H, Dh = num_heads, C // num_heads
    w_qkv = _to_f64(params["w_qkv"])
    wqc, wqr = w_qkv[:, :3 * C], w_qkv[:, 3 * C:]
    w1 = _to_f64(params["w1"])
    b1 = _to_f64(params["b1"])[0]
    w2 = _to_f64(params["w2"])
    b2 = _to_f64(params["b2"])[0]

    def heads(t):                                  # (B, N, C) -> (B, H, N, Dh)
        return t.reshape(B, N, H, Dh).transpose(0, 2, 1, 3)

    def l2n(t):
        return t / np.linalg.norm(t, axis=-1, keepdims=True)

    def softmax(t):
        m = t.max(axis=-1, keepdims=True)
        e = np.exp(t - m)
        return e / e.sum(axis=-1, keepdims=True)

    qkv_c = x_cls @ wqc
    qkv_r = x_reg @ wqr
    q_c, k_c, v_c = (heads(qkv_c[..., 0:C]), heads(qkv_c[..., C:2 * C]),
                     heads(qkv_c[..., 2 * C:3 * C]))
    q_r, k_r = heads(qkv_r[..., 0:C]), heads(qkv_r[..., C:2 * C])

    q_c, k_c, q_r, k_r = l2n(q_c), l2n(k_c), l2n(q_r), l2n(k_r)
    v_cn = l2n(v_c)

    attn_raw = v_cn @ v_cn.transpose(0, 1, 3, 2)
    attn_cls = softmax(q_c @ k_c.transpose(0, 1, 3, 2) * scale)
    attn_reg = softmax(q_r @ k_r.transpose(0, 1, 3, 2) * scale)
    attn = (attn_cls + attn_reg) / 2.0

    x = (attn @ v_c).transpose(0, 2, 1, 3).reshape(B, N, C)
    x_ori = v_c.transpose(0, 2, 1, 3).reshape(B, N, C)
    trans_cls = np.concatenate([x, x_ori], axis=-1)            # (B, N, 2C)

    msa = trans_cls @ w1 + b1                                   # (B, N, 2C)

    raw_mean = attn_raw.sum(axis=1)[0] / H                      # (N, N)
    sim_mask = (raw_mean > sim_thresh).astype(np.float64)
    sim_attn = attn.sum(axis=1)[0] / H
    sr2 = softmax(sim_attn)
    sr2 = sim_mask * sr2
    sr2 = sr2 / sr2.sum(axis=-1, keepdims=True)

    key = msa[0]                                                # (N, 2C)
    soft = sr2 @ key
    feat = np.concatenate([soft, key], axis=-1)                 # (N, 4C)
    return feat @ w2 + b2                                       # (N, out_dim)


if __name__ == "__main__":
    key = jax.random.PRNGKey(0)
    kx1, kx2, kp = jax.random.split(key, 3)

    # small, TPU-lane-friendly shapes: B=2, N=32 proposals, dim=128, 4 heads, out=128
    B, N, dim, out_dim, num_heads = 2, 32, 128, 128, 4

    x_cls = jax.random.normal(kx1, (B, N, dim), jnp.float32)
    x_reg = jax.random.normal(kx2, (B, N, dim), jnp.float32)
    params = make_params(kp, dim, out_dim)

    out = msa_yolov_pallas(x_cls, x_reg, params, num_heads=num_heads)
    out = jax.block_until_ready(out)

    ref = _reference_np(np.asarray(x_cls), np.asarray(x_reg), params,
                        num_heads=num_heads)
    # Tolerance budget: the EUP fast-reciprocal (approx=True) softmax
    # normalization; weights are the same bf16-rounded values in kernel and
    # reference, and activations stay f32 (with exact normalization the kernel
    # matches at 2e-3).
    np.testing.assert_allclose(np.asarray(out), ref, atol=1e-2, rtol=1e-2)

    print("KERNEL_OK")
</pallas_src>

<mosaic_0001>
module attributes {stable_mosaic.version = 11 : i64} {
  func.func @_msa_yolov_kernel(%arg0: i32, %arg1: memref<1x32x128xf32, #tpu.memory_space<vmem>>, %arg2: memref<1x32x128xf32, #tpu.memory_space<vmem>>, %arg3: memref<128x768xbf16, #tpu.memory_space<vmem>>, %arg4: memref<1x256xf32, #tpu.memory_space<vmem>>, %arg5: memref<1x128xf32, #tpu.memory_space<vmem>>, %arg6: memref<256x256xbf16, #tpu.memory_space<any>>, %arg7: memref<512x128xbf16, #tpu.memory_space<any>>, %arg8: memref<32x128xf32, #tpu.memory_space<vmem>>, %arg9: memref<256x256xbf16, #tpu.memory_space<vmem>>, %arg10: memref<512x128xbf16, #tpu.memory_space<vmem>>, %arg11: memref<2x!tpu.dma_semaphore, #tpu.memory_space<semaphore_mem>>) attributes {dimension_semantics = [#tpu.dimension_semantics<arbitrary>], iteration_bounds = array<i64: 1>, scalar_prefetch = 0 : i64, scratch_operands = 3 : i64, tpu.core_type = #tpu.core_type<tc>, window_params = [{transform_indices = @transform_0, window_bounds = array<i64: 1, 32, 128>}, {transform_indices = @transform_1, window_bounds = array<i64: 1, 32, 128>}, {pipeline_mode = #tpu.pipeline_mode<synchronous>, transform_indices = @transform_2, window_bounds = array<i64: 128, 768>}, {pipeline_mode = #tpu.pipeline_mode<synchronous>, transform_indices = @transform_3, window_bounds = array<i64: 1, 256>}, {pipeline_mode = #tpu.pipeline_mode<synchronous>, transform_indices = @transform_4, window_bounds = array<i64: 1, 128>}, {}, {}, {pipeline_mode = #tpu.pipeline_mode<synchronous>, transform_indices = @transform_7, window_bounds = array<i64: 32, 128>}]} {
    %c0_i32 = arith.constant 0 : i32
    %0 = tpu.memref_slice %arg11[%c0_i32] : memref<2x!tpu.dma_semaphore, #tpu.memory_space<semaphore_mem>> -> memref<1x!tpu.dma_semaphore, #tpu.memory_space<semaphore_mem>>
    %1 = tpu.memref_squeeze %0 : memref<1x!tpu.dma_semaphore, #tpu.memory_space<semaphore_mem>> -> memref<!tpu.dma_semaphore, #tpu.memory_space<semaphore_mem>>
    tpu.enqueue_dma source(%arg6 : memref<256x256xbf16, #tpu.memory_space<any>>) target(%arg9 : memref<256x256xbf16, #tpu.memory_space<vmem>>) target_semaphore(%1 : memref<!tpu.dma_semaphore, #tpu.memory_space<semaphore_mem>>)
    %c1_i32 = arith.constant 1 : i32
    %2 = tpu.memref_slice %arg11[%c1_i32] : memref<2x!tpu.dma_semaphore, #tpu.memory_space<semaphore_mem>> -> memref<1x!tpu.dma_semaphore, #tpu.memory_space<semaphore_mem>>
    %3 = tpu.memref_squeeze %2 : memref<1x!tpu.dma_semaphore, #tpu.memory_space<semaphore_mem>> -> memref<!tpu.dma_semaphore, #tpu.memory_space<semaphore_mem>>
    tpu.enqueue_dma source(%arg7 : memref<512x128xbf16, #tpu.memory_space<any>>) target(%arg10 : memref<512x128xbf16, #tpu.memory_space<vmem>>) target_semaphore(%3 : memref<!tpu.dma_semaphore, #tpu.memory_space<semaphore_mem>>)
    %c0 = arith.constant 0 : index
    %c0_0 = arith.constant 0 : index
    %c0_1 = arith.constant 0 : index
    %4 = vector.load %arg1[%c0, %c0_0, %c0_1] : memref<1x32x128xf32, #tpu.memory_space<vmem>>, vector<1x32x128xf32>
    %5 = vector.shape_cast %4 : vector<1x32x128xf32> to vector<32x128xf32>
    %c0_2 = arith.constant 0 : index
    %c0_3 = arith.constant 0 : index
    %c0_4 = arith.constant 0 : index
    %6 = vector.load %arg2[%c0_2, %c0_3, %c0_4] : memref<1x32x128xf32, #tpu.memory_space<vmem>>, vector<1x32x128xf32>
    %7 = vector.shape_cast %6 : vector<1x32x128xf32> to vector<32x128xf32>
    %8 = tpu.concatenate %5, %7 in 0 : vector<32x128xf32>, vector<32x128xf32> -> vector<64x128xf32>
    %c0_5 = arith.constant 0 : index
    %c0_6 = arith.constant 0 : index
    %9 = vector.load %arg3[%c0_5, %c0_6] : memref<128x768xbf16, #tpu.memory_space<vmem>>, vector<128x768xbf16>
    %10 = arith.extf %9 : vector<128x768xbf16> to vector<128x768xf32>
    %cst = arith.constant dense<0.000000e+00> : vector<64x768xf32>
    %11 = tpu.matmul %8, %10, %cst {dimension_numbers = #tpu.dot_dimension_numbers<[1], [0], [0], [1], [0, 0, 1, 1], [], []>} : vector<64x128xf32>, vector<128x768xf32>, vector<64x768xf32> -> vector<64x768xf32>
    %12 = vector.extract_strided_slice %11 {offsets = [0, 0], sizes = [32, 128], strides = [1, 1]} : vector<64x768xf32> to vector<32x128xf32>
    %13 = vector.extract_strided_slice %11 {offsets = [0, 128], sizes = [32, 128], strides = [1, 1]} : vector<64x768xf32> to vector<32x128xf32>
    %14 = vector.extract_strided_slice %11 {offsets = [0, 256], sizes = [32, 128], strides = [1, 1]} : vector<64x768xf32> to vector<32x128xf32>
    %15 = vector.extract_strided_slice %11 {offsets = [32, 384], sizes = [32, 128], strides = [1, 1]} : vector<64x768xf32> to vector<32x128xf32>
    %16 = vector.extract_strided_slice %11 {offsets = [32, 512], sizes = [32, 128], strides = [1, 1]} : vector<64x768xf32> to vector<32x128xf32>
    %17 = vector.extract_strided_slice %12 {offsets = [0, 0], sizes = [32, 32], strides = [1, 1]} : vector<32x128xf32> to vector<32x32xf32>
    %18 = vector.extract_strided_slice %12 {offsets = [0, 32], sizes = [32, 32], strides = [1, 1]} : vector<32x128xf32> to vector<32x32xf32>
    %19 = vector.extract_strided_slice %12 {offsets = [0, 64], sizes = [32, 32], strides = [1, 1]} : vector<32x128xf32> to vector<32x32xf32>
    %20 = vector.extract_strided_slice %12 {offsets = [0, 96], sizes = [32, 32], strides = [1, 1]} : vector<32x128xf32> to vector<32x32xf32>
    %21 = vector.shape_cast %17 : vector<32x32xf32> to vector<1x32x32xf32>
    %22 = vector.shape_cast %18 : vector<32x32xf32> to vector<1x32x32xf32>
    %23 = vector.shape_cast %19 : vector<32x32xf32> to vector<1x32x32xf32>
    %24 = vector.shape_cast %20 : vector<32x32xf32> to vector<1x32x32xf32>
    %25 = tpu.concatenate %21, %22, %23, %24 in 0 : vector<1x32x32xf32>, vector<1x32x32xf32>, vector<1x32x32xf32>, vector<1x32x32xf32> -> vector<4x32x32xf32>
    %26 = arith.mulf %25, %25 : vector<4x32x32xf32>
    %cst_7 = arith.constant dense<0.000000e+00> : vector<4x32xf32>
    %27 = vector.multi_reduction <add>, %26, %cst_7 [2] : vector<4x32x32xf32> to vector<4x32xf32>
    %28 = vector.shape_cast %27 : vector<4x32xf32> to vector<4x32x1xf32>
    %29 = math.rsqrt %28 : vector<4x32x1xf32>
    %30 = vector.broadcast %29 : vector<4x32x1xf32> to vector<4x32x32xf32>
    %31 = arith.mulf %25, %30 : vector<4x32x32xf32>
    %32 = vector.extract_strided_slice %13 {offsets = [0, 0], sizes = [32, 32], strides = [1, 1]} : vector<32x128xf32> to vector<32x32xf32>
    %33 = vector.extract_strided_slice %13 {offsets = [0, 32], sizes = [32, 32], strides = [1, 1]} : vector<32x128xf32> to vector<32x32xf32>
    %34 = vector.extract_strided_slice %13 {offsets = [0, 64], sizes = [32, 32], strides = [1, 1]} : vector<32x128xf32> to vector<32x32xf32>
    %35 = vector.extract_strided_slice %13 {offsets = [0, 96], sizes = [32, 32], strides = [1, 1]} : vector<32x128xf32> to vector<32x32xf32>
    %36 = vector.shape_cast %32 : vector<32x32xf32> to vector<1x32x32xf32>
    %37 = vector.shape_cast %33 : vector<32x32xf32> to vector<1x32x32xf32>
    %38 = vector.shape_cast %34 : vector<32x32xf32> to vector<1x32x32xf32>
    %39 = vector.shape_cast %35 : vector<32x32xf32> to vector<1x32x32xf32>
    %40 = tpu.concatenate %36, %37, %38, %39 in 0 : vector<1x32x32xf32>, vector<1x32x32xf32>, vector<1x32x32xf32>, vector<1x32x32xf32> -> vector<4x32x32xf32>
    %41 = arith.mulf %40, %40 : vector<4x32x32xf32>
    %cst_8 = arith.constant dense<0.000000e+00> : vector<4x32xf32>
    %42 = vector.multi_reduction <add>, %41, %cst_8 [2] : vector<4x32x32xf32> to vector<4x32xf32>
    %43 = vector.shape_cast %42 : vector<4x32xf32> to vector<4x32x1xf32>
    %44 = math.rsqrt %43 : vector<4x32x1xf32>
    %45 = vector.broadcast %44 : vector<4x32x1xf32> to vector<4x32x32xf32>
    %46 = arith.mulf %40, %45 : vector<4x32x32xf32>
    %47 = vector.extract_strided_slice %15 {offsets = [0, 0], sizes = [32, 32], strides = [1, 1]} : vector<32x128xf32> to vector<32x32xf32>
    %48 = vector.extract_strided_slice %15 {offsets = [0, 32], sizes = [32, 32], strides = [1, 1]} : vector<32x128xf32> to vector<32x32xf32>
    %49 = vector.extract_strided_slice %15 {offsets = [0, 64], sizes = [32, 32], strides = [1, 1]} : vector<32x128xf32> to vector<32x32xf32>
    %50 = vector.extract_strided_slice %15 {offsets = [0, 96], sizes = [32, 32], strides = [1, 1]} : vector<32x128xf32> to vector<32x32xf32>
    %51 = vector.shape_cast %47 : vector<32x32xf32> to vector<1x32x32xf32>
    %52 = vector.shape_cast %48 : vector<32x32xf32> to vector<1x32x32xf32>
    %53 = vector.shape_cast %49 : vector<32x32xf32> to vector<1x32x32xf32>
    %54 = vector.shape_cast %50 : vector<32x32xf32> to vector<1x32x32xf32>
    %55 = tpu.concatenate %51, %52, %53, %54 in 0 : vector<1x32x32xf32>, vector<1x32x32xf32>, vector<1x32x32xf32>, vector<1x32x32xf32> -> vector<4x32x32xf32>
    %56 = arith.mulf %55, %55 : vector<4x32x32xf32>
    %cst_9 = arith.constant dense<0.000000e+00> : vector<4x32xf32>
    %57 = vector.multi_reduction <add>, %56, %cst_9 [2] : vector<4x32x32xf32> to vector<4x32xf32>
    %58 = vector.shape_cast %57 : vector<4x32xf32> to vector<4x32x1xf32>
    %59 = math.rsqrt %58 : vector<4x32x1xf32>
    %60 = vector.broadcast %59 : vector<4x32x1xf32> to vector<4x32x32xf32>
    %61 = arith.mulf %55, %60 : vector<4x32x32xf32>
    %62 = vector.extract_strided_slice %16 {offsets = [0, 0], sizes = [32, 32], strides = [1, 1]} : vector<32x128xf32> to vector<32x32xf32>
    %63 = vector.extract_strided_slice %16 {offsets = [0, 32], sizes = [32, 32], strides = [1, 1]} : vector<32x128xf32> to vector<32x32xf32>
    %64 = vector.extract_strided_slice %16 {offsets = [0, 64], sizes = [32, 32], strides = [1, 1]} : vector<32x128xf32> to vector<32x32xf32>
    %65 = vector.extract_strided_slice %16 {offsets = [0, 96], sizes = [32, 32], strides = [1, 1]} : vector<32x128xf32> to vector<32x32xf32>
    %66 = vector.shape_cast %62 : vector<32x32xf32> to vector<1x32x32xf32>
    %67 = vector.shape_cast %63 : vector<32x32xf32> to vector<1x32x32xf32>
    %68 = vector.shape_cast %64 : vector<32x32xf32> to vector<1x32x32xf32>
    %69 = vector.shape_cast %65 : vector<32x32xf32> to vector<1x32x32xf32>
    %70 = tpu.concatenate %66, %67, %68, %69 in 0 : vector<1x32x32xf32>, vector<1x32x32xf32>, vector<1x32x32xf32>, vector<1x32x32xf32> -> vector<4x32x32xf32>
    %71 = arith.mulf %70, %70 : vector<4x32x32xf32>
    %cst_10 = arith.constant dense<0.000000e+00> : vector<4x32xf32>
    %72 = vector.multi_reduction <add>, %71, %cst_10 [2] : vector<4x32x32xf32> to vector<4x32xf32>
    %73 = vector.shape_cast %72 : vector<4x32xf32> to vector<4x32x1xf32>
    %74 = math.rsqrt %73 : vector<4x32x1xf32>
    %75 = vector.broadcast %74 : vector<4x32x1xf32> to vector<4x32x32xf32>
    %76 = arith.mulf %70, %75 : vector<4x32x32xf32>
    %77 = vector.extract_strided_slice %14 {offsets = [0, 0], sizes = [32, 32], strides = [1, 1]} : vector<32x128xf32> to vector<32x32xf32>
    %78 = vector.extract_strided_slice %14 {offsets = [0, 32], sizes = [32, 32], strides = [1, 1]} : vector<32x128xf32> to vector<32x32xf32>
    %79 = vector.extract_strided_slice %14 {offsets = [0, 64], sizes = [32, 32], strides = [1, 1]} : vector<32x128xf32> to vector<32x32xf32>
    %80 = vector.extract_strided_slice %14 {offsets = [0, 96], sizes = [32, 32], strides = [1, 1]} : vector<32x128xf32> to vector<32x32xf32>
    %81 = vector.shape_cast %77 : vector<32x32xf32> to vector<1x32x32xf32>
    %82 = vector.shape_cast %78 : vector<32x32xf32> to vector<1x32x32xf32>
    %83 = vector.shape_cast %79 : vector<32x32xf32> to vector<1x32x32xf32>
    %84 = vector.shape_cast %80 : vector<32x32xf32> to vector<1x32x32xf32>
    %85 = tpu.concatenate %81, %82, %83, %84 in 0 : vector<1x32x32xf32>, vector<1x32x32xf32>, vector<1x32x32xf32>, vector<1x32x32xf32> -> vector<4x32x32xf32>
    %86 = arith.mulf %85, %85 : vector<4x32x32xf32>
    %cst_11 = arith.constant dense<0.000000e+00> : vector<4x32xf32>
    %87 = vector.multi_reduction <add>, %86, %cst_11 [2] : vector<4x32x32xf32> to vector<4x32xf32>
    %88 = vector.shape_cast %87 : vector<4x32xf32> to vector<4x32x1xf32>
    %89 = math.rsqrt %88 : vector<4x32x1xf32>
    %90 = vector.broadcast %89 : vector<4x32x1xf32> to vector<4x32x32xf32>
    %91 = arith.mulf %85, %90 : vector<4x32x32xf32>
    "tpu.trace_start"() <{level = 10 : i32, message = "hnd,hmd->hnm"}> : () -> ()
    %cst_12 = arith.constant dense<0.000000e+00> : vector<4x32x32xf32>
    %92 = tpu.matmul %91, %91, %cst_12 {dimension_numbers = #tpu.dot_dimension_numbers<[2], [2], [1], [1], [0, 0, 0, 1, 1, 1], [0], [0]>} : vector<4x32x32xf32>, vector<4x32x32xf32>, vector<4x32x32xf32> -> vector<4x32x32xf32>
    %cst_13 = arith.constant dense<0.000000e+00> : vector<4x32x32xf32>
    %93 = tpu.matmul %31, %46, %cst_13 {dimension_numbers = #tpu.dot_dimension_numbers<[2], [2], [1], [1], [0, 0, 0, 1, 1, 1], [0], [0]>} : vector<4x32x32xf32>, vector<4x32x32xf32>, vector<4x32x32xf32> -> vector<4x32x32xf32>
    "tpu.trace_stop"() : () -> ()
    %cst_14 = arith.constant 2.500000e+01 : f32
    %94 = vector.broadcast %cst_14 : f32 to vector<4x32x32xf32>
    %95 = arith.mulf %93, %94 : vector<4x32x32xf32>
    "tpu.trace_start"() <{level = 10 : i32, message = "hnd,hmd->hnm"}> : () -> ()
    %cst_15 = arith.constant dense<0.000000e+00> : vector<4x32x32xf32>
    %96 = tpu.matmul %61, %76, %cst_15 {dimension_numbers = #tpu.dot_dimension_numbers<[2], [2], [1], [1], [0, 0, 0, 1, 1, 1], [0], [0]>} : vector<4x32x32xf32>, vector<4x32x32xf32>, vector<4x32x32xf32> -> vector<4x32x32xf32>
    "tpu.trace_stop"() : () -> ()
    %cst_16 = arith.constant 2.500000e+01 : f32
    %97 = vector.broadcast %cst_16 : f32 to vector<4x32x32xf32>
    %98 = arith.mulf %96, %97 : vector<4x32x32xf32>
    %cst_17 = arith.constant dense<0xFF800000> : vector<4x32xf32>
    %99 = vector.multi_reduction <maximumf>, %95, %cst_17 [2] : vector<4x32x32xf32> to vector<4x32xf32>
    %100 = vector.shape_cast %99 : vector<4x32xf32> to vector<4x32x1xf32>
    %101 = vector.broadcast %100 : vector<4x32x1xf32> to vector<4x32x32xf32>
    %102 = arith.subf %95, %101 : vector<4x32x32xf32>
    %103 = math.exp %102 : vector<4x32x32xf32>
    %cst_18 = arith.constant dense<0.000000e+00> : vector<4x32xf32>
    %104 = vector.multi_reduction <add>, %103, %cst_18 [2] : vector<4x32x32xf32> to vector<4x32xf32>
    %105 = vector.shape_cast %104 : vector<4x32xf32> to vector<4x32x1xf32>
    %106 = tpu.reciprocal %105 {approx = true} : vector<4x32x1xf32> -> vector<4x32x1xf32>
    %107 = vector.broadcast %106 : vector<4x32x1xf32> to vector<4x32x32xf32>
    %108 = arith.mulf %103, %107 : vector<4x32x32xf32>
    %cst_19 = arith.constant dense<0xFF800000> : vector<4x32xf32>
    %109 = vector.multi_reduction <maximumf>, %98, %cst_19 [2] : vector<4x32x32xf32> to vector<4x32xf32>
    %110 = vector.shape_cast %109 : vector<4x32xf32> to vector<4x32x1xf32>
    %111 = vector.broadcast %110 : vector<4x32x1xf32> to vector<4x32x32xf32>
    %112 = arith.subf %98, %111 : vector<4x32x32xf32>
    %113 = math.exp %112 : vector<4x32x32xf32>
    %cst_20 = arith.constant dense<0.000000e+00> : vector<4x32xf32>
    %114 = vector.multi_reduction <add>, %113, %cst_20 [2] : vector<4x32x32xf32> to vector<4x32xf32>
    %115 = vector.shape_cast %114 : vector<4x32xf32> to vector<4x32x1xf32>
    %116 = tpu.reciprocal %115 {approx = true} : vector<4x32x1xf32> -> vector<4x32x1xf32>
    %117 = vector.broadcast %116 : vector<4x32x1xf32> to vector<4x32x32xf32>
    %118 = arith.mulf %113, %117 : vector<4x32x32xf32>
    %119 = arith.addf %108, %118 : vector<4x32x32xf32>
    %cst_21 = arith.constant 5.000000e-01 : f32
    %120 = vector.broadcast %cst_21 : f32 to vector<4x32x32xf32>
    %121 = arith.mulf %120, %119 : vector<4x32x32xf32>
    "tpu.trace_start"() <{level = 10 : i32, message = "hnm,hmd->hnd"}> : () -> ()
    %cst_22 = arith.constant dense<0.000000e+00> : vector<4x32x32xf32>
    %122 = tpu.matmul %121, %85, %cst_22 {dimension_numbers = #tpu.dot_dimension_numbers<[2], [1], [1], [2], [0, 0, 0, 1, 1, 2], [0], [0]>} : vector<4x32x32xf32>, vector<4x32x32xf32>, vector<4x32x32xf32> -> vector<4x32x32xf32>
    "tpu.trace_stop"() : () -> ()
    %123 = vector.extract_strided_slice %122 {offsets = [0, 0, 0], sizes = [1, 32, 32], strides = [1, 1, 1]} : vector<4x32x32xf32> to vector<1x32x32xf32>
    %124 = vector.shape_cast %123 : vector<1x32x32xf32> to vector<32x32xf32>
    %125 = vector.extract_strided_slice %122 {offsets = [1, 0, 0], sizes = [1, 32, 32], strides = [1, 1, 1]} : vector<4x32x32xf32> to vector<1x32x32xf32>
    %126 = vector.shape_cast %125 : vector<1x32x32xf32> to vector<32x32xf32>
    %127 = vector.extract_strided_slice %122 {offsets = [2, 0, 0], sizes = [1, 32, 32], strides = [1, 1, 1]} : vector<4x32x32xf32> to vector<1x32x32xf32>
    %128 = vector.shape_cast %127 : vector<1x32x32xf32> to vector<32x32xf32>
    %129 = vector.extract_strided_slice %122 {offsets = [3, 0, 0], sizes = [1, 32, 32], strides = [1, 1, 1]} : vector<4x32x32xf32> to vector<1x32x32xf32>
    %130 = vector.shape_cast %129 : vector<1x32x32xf32> to vector<32x32xf32>
    %131 = tpu.concatenate %124, %126, %128, %130 in 1 : vector<32x32xf32>, vector<32x32xf32>, vector<32x32xf32>, vector<32x32xf32> -> vector<32x128xf32>
    %132 = vector.extract_strided_slice %92 {offsets = [0, 0, 0], sizes = [1, 32, 32], strides = [1, 1, 1]} : vector<4x32x32xf32> to vector<1x32x32xf32>
    %133 = vector.shape_cast %132 : vector<1x32x32xf32> to vector<32x32xf32>
    %cst_23 = arith.constant 0.000000e+00 : f32
    %134 = vector.broadcast %cst_23 : f32 to vector<32x32xf32>
    %135 = arith.addf %134, %133 : vector<32x32xf32>
    %136 = vector.extract_strided_slice %92 {offsets = [1, 0, 0], sizes = [1, 32, 32], strides = [1, 1, 1]} : vector<4x32x32xf32> to vector<1x32x32xf32>
    %137 = vector.shape_cast %136 : vector<1x32x32xf32> to vector<32x32xf32>
    %138 = arith.addf %135, %137 : vector<32x32xf32>
    %139 = vector.extract_strided_slice %92 {offsets = [2, 0, 0], sizes = [1, 32, 32], strides = [1, 1, 1]} : vector<4x32x32xf32> to vector<1x32x32xf32>
    %140 = vector.shape_cast %139 : vector<1x32x32xf32> to vector<32x32xf32>
    %141 = arith.addf %138, %140 : vector<32x32xf32>
    %142 = vector.extract_strided_slice %92 {offsets = [3, 0, 0], sizes = [1, 32, 32], strides = [1, 1, 1]} : vector<4x32x32xf32> to vector<1x32x32xf32>
    %143 = vector.shape_cast %142 : vector<1x32x32xf32> to vector<32x32xf32>
    %144 = arith.addf %141, %143 : vector<32x32xf32>
    %cst_24 = arith.constant 2.500000e-01 : f32
    %145 = vector.broadcast %cst_24 : f32 to vector<32x32xf32>
    %146 = arith.mulf %144, %145 : vector<32x32xf32>
    %147 = vector.extract_strided_slice %121 {offsets = [0, 0, 0], sizes = [1, 32, 32], strides = [1, 1, 1]} : vector<4x32x32xf32> to vector<1x32x32xf32>
    %148 = vector.shape_cast %147 : vector<1x32x32xf32> to vector<32x32xf32>
    %cst_25 = arith.constant 0.000000e+00 : f32
    %149 = vector.broadcast %cst_25 : f32 to vector<32x32xf32>
    %150 = arith.addf %149, %148 : vector<32x32xf32>
    %151 = vector.extract_strided_slice %121 {offsets = [1, 0, 0], sizes = [1, 32, 32], strides = [1, 1, 1]} : vector<4x32x32xf32> to vector<1x32x32xf32>
    %152 = vector.shape_cast %151 : vector<1x32x32xf32> to vector<32x32xf32>
    %153 = arith.addf %150, %152 : vector<32x32xf32>
    %154 = vector.extract_strided_slice %121 {offsets = [2, 0, 0], sizes = [1, 32, 32], strides = [1, 1, 1]} : vector<4x32x32xf32> to vector<1x32x32xf32>
    %155 = vector.shape_cast %154 : vector<1x32x32xf32> to vector<32x32xf32>
    %156 = arith.addf %153, %155 : vector<32x32xf32>
    %157 = vector.extract_strided_slice %121 {offsets = [3, 0, 0], sizes = [1, 32, 32], strides = [1, 1, 1]} : vector<4x32x32xf32> to vector<1x32x32xf32>
    %158 = vector.shape_cast %157 : vector<1x32x32xf32> to vector<32x32xf32>
    %159 = arith.addf %156, %158 : vector<32x32xf32>
    %cst_26 = arith.constant 2.500000e-01 : f32
    %160 = vector.broadcast %cst_26 : f32 to vector<32x32xf32>
    %161 = arith.mulf %159, %160 : vector<32x32xf32>
    %cst_27 = arith.constant 7.500000e-01 : f32
    %162 = vector.broadcast %cst_27 : f32 to vector<32x32xf32>
    %163 = arith.cmpf ogt, %146, %162 : vector<32x32xf32>
    %164 = arith.extui %163 : vector<32x32xi1> to vector<32x32xi32>
    %165 = arith.sitofp %164 : vector<32x32xi32> to vector<32x32xf32>
    %cst_28 = arith.constant dense<0xFF800000> : vector<32xf32>
    %166 = vector.multi_reduction <maximumf>, %161, %cst_28 [1] : vector<32x32xf32> to vector<32xf32>
    %167 = vector.shape_cast %166 : vector<32xf32> to vector<32x1xf32>
    %168 = vector.broadcast %167 : vector<32x1xf32> to vector<32x32xf32>
    %169 = arith.subf %161, %168 : vector<32x32xf32>
    %170 = math.exp %169 : vector<32x32xf32>
    %cst_29 = arith.constant dense<0.000000e+00> : vector<32xf32>
    %171 = vector.multi_reduction <add>, %170, %cst_29 [1] : vector<32x32xf32> to vector<32xf32>
    %172 = vector.shape_cast %171 : vector<32xf32> to vector<32x1xf32>
    %173 = vector.broadcast %172 : vector<32x1xf32> to vector<32x32xf32>
    %174 = arith.divf %170, %173 : vector<32x32xf32>
    %175 = arith.mulf %165, %174 : vector<32x32xf32>
    %cst_30 = arith.constant dense<0.000000e+00> : vector<32xf32>
    %176 = vector.multi_reduction <add>, %175, %cst_30 [1] : vector<32x32xf32> to vector<32xf32>
    %177 = vector.shape_cast %176 : vector<32xf32> to vector<32x1xf32>
    %178 = vector.broadcast %177 : vector<32x1xf32> to vector<32x32xf32>
    %179 = arith.divf %175, %178 : vector<32x32xf32>
    %c0_i32_31 = arith.constant 0 : i32
    %180 = tpu.memref_slice %arg11[%c0_i32_31] : memref<2x!tpu.dma_semaphore, #tpu.memory_space<semaphore_mem>> -> memref<1x!tpu.dma_semaphore, #tpu.memory_space<semaphore_mem>>
    %181 = tpu.memref_squeeze %180 : memref<1x!tpu.dma_semaphore, #tpu.memory_space<semaphore_mem>> -> memref<!tpu.dma_semaphore, #tpu.memory_space<semaphore_mem>>
    tpu.wait_dma2 semaphore(%181 : memref<!tpu.dma_semaphore, #tpu.memory_space<semaphore_mem>>) src(%arg6 : memref<256x256xbf16, #tpu.memory_space<any>>) dst(%arg9 : memref<256x256xbf16, #tpu.memory_space<vmem>>)
    %c0_32 = arith.constant 0 : index
    %c0_33 = arith.constant 0 : index
    %182 = vector.load %arg9[%c0_32, %c0_33] : memref<256x256xbf16, #tpu.memory_space<vmem>>, vector<256x256xbf16>
    %183 = arith.extf %182 : vector<256x256xbf16> to vector<256x256xf32>
    %184 = vector.extract_strided_slice %183 {offsets = [0, 0], sizes = [128, 256], strides = [1, 1]} : vector<256x256xf32> to vector<128x256xf32>
    %cst_34 = arith.constant dense<0.000000e+00> : vector<32x256xf32>
    %185 = tpu.matmul %131, %184, %cst_34 {dimension_numbers = #tpu.dot_dimension_numbers<[1], [0], [0], [1], [0, 0, 1, 1], [], []>} : vector<32x128xf32>, vector<128x256xf32>, vector<32x256xf32> -> vector<32x256xf32>
    %186 = vector.extract_strided_slice %183 {offsets = [128, 0], sizes = [128, 256], strides = [1, 1]} : vector<256x256xf32> to vector<128x256xf32>
    %cst_35 = arith.constant dense<0.000000e+00> : vector<32x256xf32>
    %187 = tpu.matmul %14, %186, %cst_35 {dimension_numbers = #tpu.dot_dimension_numbers<[1], [0], [0], [1], [0, 0, 1, 1], [], []>} : vector<32x128xf32>, vector<128x256xf32>, vector<32x256xf32> -> vector<32x256xf32>
    %188 = arith.addf %185, %187 : vector<32x256xf32>
    %c0_36 = arith.constant 0 : index
    %c0_37 = arith.constant 0 : index
    %189 = vector.load %arg4[%c0_36, %c0_37] : memref<1x256xf32, #tpu.memory_space<vmem>>, vector<1x256xf32>
    %190 = vector.broadcast %189 : vector<1x256xf32> to vector<32x256xf32>
    %191 = arith.addf %188, %190 : vector<32x256xf32>
    %cst_38 = arith.constant dense<0.000000e+00> : vector<32x256xf32>
    %192 = tpu.matmul %179, %191, %cst_38 {dimension_numbers = #tpu.dot_dimension_numbers<[1], [0], [0], [1], [0, 0, 1, 1], [], []>} : vector<32x32xf32>, vector<32x256xf32>, vector<32x256xf32> -> vector<32x256xf32>
    %c1_i32_39 = arith.constant 1 : i32
    %193 = tpu.memref_slice %arg11[%c1_i32_39] : memref<2x!tpu.dma_semaphore, #tpu.memory_space<semaphore_mem>> -> memref<1x!tpu.dma_semaphore, #tpu.memory_space<semaphore_mem>>
    %194 = tpu.memref_squeeze %193 : memref<1x!tpu.dma_semaphore, #tpu.memory_space<semaphore_mem>> -> memref<!tpu.dma_semaphore, #tpu.memory_space<semaphore_mem>>
    tpu.wait_dma2 semaphore(%194 : memref<!tpu.dma_semaphore, #tpu.memory_space<semaphore_mem>>) src(%arg7 : memref<512x128xbf16, #tpu.memory_space<any>>) dst(%arg10 : memref<512x128xbf16, #tpu.memory_space<vmem>>)
    %c0_40 = arith.constant 0 : index
    %c0_41 = arith.constant 0 : index
    %195 = vector.load %arg10[%c0_40, %c0_41] : memref<512x128xbf16, #tpu.memory_space<vmem>>, vector<512x128xbf16>
    %196 = arith.extf %195 : vector<512x128xbf16> to vector<512x128xf32>
    %197 = vector.extract_strided_slice %196 {offsets = [0, 0], sizes = [256, 128], strides = [1, 1]} : vector<512x128xf32> to vector<256x128xf32>
    %cst_42 = arith.constant dense<0.000000e+00> : vector<32x128xf32>
    %198 = tpu.matmul %192, %197, %cst_42 {dimension_numbers = #tpu.dot_dimension_numbers<[1], [0], [0], [1], [0, 0, 1, 1], [], []>} : vector<32x256xf32>, vector<256x128xf32>, vector<32x128xf32> -> vector<32x128xf32>
    %199 = vector.extract_strided_slice %196 {offsets = [256, 0], sizes = [256, 128], strides = [1, 1]} : vector<512x128xf32> to vector<256x128xf32>
    %cst_43 = arith.constant dense<0.000000e+00> : vector<32x128xf32>
    %200 = tpu.matmul %191, %199, %cst_43 {dimension_numbers = #tpu.dot_dimension_numbers<[1], [0], [0], [1], [0, 0, 1, 1], [], []>} : vector<32x256xf32>, vector<256x128xf32>, vector<32x128xf32> -> vector<32x128xf32>
    %201 = arith.addf %198, %200 : vector<32x128xf32>
    %c0_44 = arith.constant 0 : index
    %c0_45 = arith.constant 0 : index
    %202 = vector.load %arg5[%c0_44, %c0_45] : memref<1x128xf32, #tpu.memory_space<vmem>>, vector<1x128xf32>
    %203 = vector.broadcast %202 : vector<1x128xf32> to vector<32x128xf32>
    %204 = arith.addf %201, %203 : vector<32x128xf32>
    %c0_46 = arith.constant 0 : index
    %c0_47 = arith.constant 0 : index
    %205 = vector.load %arg8[%c0_46, %c0_47] : memref<32x128xf32, #tpu.memory_space<vmem>>, vector<32x128xf32>
    tpu.vector_store %arg8[%c0_46, %c0_47], %204 {strides = array<i32>} : memref<32x128xf32, #tpu.memory_space<vmem>>, vector<32x128xf32>,
    return
  }
  func.func @transform_0(%arg0: i32) -> (i32, i32, i32) {
    %c0_i32 = arith.constant 0 : i32
    %c0_i32_0 = arith.constant 0 : i32
    %c0_i32_1 = arith.constant 0 : i32
    %c0_i32_2 = arith.constant 0 : i32
    return %c0_i32, %c0_i32_0, %c0_i32_1 : i32, i32, i32
  }
  func.func @transform_1(%arg0: i32) -> (i32, i32, i32) {
    %c0_i32 = arith.constant 0 : i32
    %c0_i32_0 = arith.constant 0 : i32
    %c0_i32_1 = arith.constant 0 : i32
    %c0_i32_2 = arith.constant 0 : i32
    return %c0_i32, %c0_i32_0, %c0_i32_1 : i32, i32, i32
  }
  func.func @transform_2(%arg0: i32) -> (i32, i32) {
    %c0_i32 = arith.constant 0 : i32
    %c0_i32_0 = arith.constant 0 : i32
    %c0_i32_1 = arith.constant 0 : i32
    return %c0_i32, %c0_i32_0 : i32, i32
  }
  func.func @transform_3(%arg0: i32) -> (i32, i32) {
    %c0_i32 = arith.constant 0 : i32
    %c0_i32_0 = arith.constant 0 : i32
    %c0_i32_1 = arith.constant 0 : i32
    return %c0_i32, %c0_i32_0 : i32, i32
  }
  func.func @transform_4(%arg0: i32) -> (i32, i32) {
    %c0_i32 = arith.constant 0 : i32
    %c0_i32_0 = arith.constant 0 : i32
    %c0_i32_1 = arith.constant 0 : i32
    return %c0_i32, %c0_i32_0 : i32, i32
  }
  func.func @transform_7(%arg0: i32) -> (i32, i32) {
    %c0_i32 = arith.constant 0 : i32
    %c0_i32_0 = arith.constant 0 : i32
    %c0_i32_1 = arith.constant 0 : i32
    return %c0_i32, %c0_i32_0 : i32, i32
  }
}

</mosaic_0001>

<bundles_post_ra>
// kernel: tpu_custom_call.1
= control target key start
LH: loop header
LB: loop body
LE: loop exit
PB: predicated region body
PF: predicated region fallthrough
CT: control target
= control target key end

     0   :  { %12 = vsyncpa [#allocation6], 0  ;;  %s7368_s0 = inlined_call_operand.hbm [shape: f32[2,32,128], index: 0, kind: input, shape index: {}]   ;;  %s7369_s1 = inlined_call_operand.hbm [shape: f32[2,32,128], index: 1, kind: input, shape index: {}]   ;;  %s7370_s2 = inlined_call_operand.hbm [shape: bf16[128,768], index: 2, kind: input, shape index: {}]   ;;  %s7371_s3 = inlined_call_operand.vmem [shape: f32[1,256], index: 3, kind: input, shape index: {}]   ;;  %s7372_s4 = inlined_call_operand.vmem [shape: f32[1,128], index: 4, kind: input, shape index: {}]   ;;  %s7373_s5 = inlined_call_operand.hbm [shape: bf16[256,256], index: 5, kind: input, shape index: {}]   ;;  %s7374_s6 = inlined_call_operand.hbm [shape: bf16[512,128], index: 6, kind: input, shape index: {}]   ;;  %s7375_s7 = inlined_call_operand.hbm [shape: f32[32,128], index: 7, kind: output, shape index: {}]  }
   0x1   :  { %13 = vsyncpa [#allocation9], 0 }
   0x2   :  { %14 = vsyncpa [#allocation7], 0  ;;  %s5810_s24 = smov [#allocation8]   ;;  %s5811_s26 = smov [#allocation5]  }
   0x3   :  { %s32_s25 = sshll.u32 %s5810_s24, 4  ;;  %s20_s27 = sshll.u32 %s5811_s26, 4  ;;  %s33_s25 = int_to_ptr.vmem [resolvable:$true] %s32_s25  ;;  %s5869_s27 = int_to_ptr.vmem [resolvable:$true] %s20_s27 }
   0x4   :  { %s5690_s30 = scalar_lea.hbm %s7369_s1, 512  ;;  %s5692_s12 = scalar_lea.hbm %s7369_s1, 1024 }
   0x5   :  { %p5691_p0 = scmp.ne.s32.totalorder %s7369_s1, %s5690_s30  ;;  %p5693_p1 = scmp.lt.u32.totalorder %s5692_s12, %s5690_s30 }
   0x6   :  { %p5694_p2 = scmp.lt.u32.totalorder %s5690_s30, %s7369_s1 }
   0x8   :  { %p5695_p3 = por %p5694_p2, %p5693_p1 }
   0xa   :  { %p5696_p4 = pnand %p5695_p3, %p5691_p0 }
   0xc   :  { %5699 = shalt.err (!%p5696_p4)
}
   0xd   :  { %s5700_s15 = scalar_lea.vmem %s33_s25, 512  ;;  %p5705_p6 = scmp.lt.s32.totalorder %s33_s25, %s33_s25 }
   0xe   :  { %p5701_p5 = scmp.ne.s32.totalorder %s33_s25, %s5700_s15  ;;  %p5706_p7 = scmp.lt.s32.totalorder %s5700_s15, %s5700_s15 }
  0x10   :  { %p5707_p8 = por %p5706_p7, %p5705_p6 }
  0x12   :  { %p5708_p9 = pnand %p5707_p8, %p5701_p5 }
  0x14   :  { %5711 = shalt.err (!%p5708_p9)
}
  0x15   :  { %s5812_s16 = smov 128   ;;  %s5813_s17 = smov 8  }
  0x16   :  { %38 = dma.hbm_to_vmem [thread:$0]  %s7369_s1, 512, %s33_s25, [#allocation9], %s5812_s16, %s5812_s16, %s5813_s17  }
  0x17   :  { %s5712_s22 = scalar_lea.hbm %s7368_s0, 512  ;;  %s5714_s29 = scalar_lea.hbm %s7368_s0, 1024 }
  0x18   :  { %p5713_p10 = scmp.ne.s32.totalorder %s7368_s0, %s5712_s22  ;;  %p5715_p11 = scmp.lt.u32.totalorder %s5714_s29, %s5712_s22 }
  0x19   :  { %p5716_p12 = scmp.lt.u32.totalorder %s5712_s22, %s7368_s0 }
  0x1b   :  { %p5717_p13 = por %p5716_p12, %p5715_p11 }
  0x1d   :  { %p5718_p0 = pnand %p5717_p13, %p5713_p10 }
  0x1f   :  { %5721 = shalt.err (!%p5718_p0)
}
  0x20   :  { %s5722_s1 = scalar_lea.vmem %s5869_s27, 512  ;;  %p5727_p2 = scmp.lt.s32.totalorder %s5869_s27, %s5869_s27 }
  0x21   :  { %p5723_p1 = scmp.ne.s32.totalorder %s5869_s27, %s5722_s1  ;;  %p5728_p3 = scmp.lt.s32.totalorder %s5722_s1, %s5722_s1 }
  0x23   :  { %p5729_p4 = por %p5728_p3, %p5727_p2 }
  0x25   :  { %p5730_p5 = pnand %p5729_p4, %p5723_p1 }
  0x27   :  { %5733 = shalt.err (!%p5730_p5)
}
  0x28   :  { %26 = dma.hbm_to_vmem [thread:$0]  %s7368_s0, 512, %s5869_s27, [#allocation6], %s5812_s16, %s5812_s16, %s5813_s17  }
  0x29   :  { %s5814_s10 = smov [#allocation10]   ;;  %s5734_s14 = scalar_lea.hbm %s7370_s2, 6144 }
  0x2a   :  { %s44_s11 = sshll.u32 %s5814_s10, 4  ;;  %p5735_p6 = scmp.ne.s32.totalorder %s7370_s2, %s5734_s14  ;;  %s45_s11 = int_to_ptr.vmem [resolvable:$true] %s44_s11 }
  0x2b   :  { %p5738_p7 = scmp.lt.u32.totalorder %s5734_s14, %s7370_s2 }
  0x2d   :  { %p5740_p8 = pnand %p5738_p7, %p5735_p6 }
  0x2f   :  { %5743 = shalt.err (!%p5740_p8)
}
  0x30   :  { %s5744_s21 = scalar_lea.vmem %s45_s11, 6144  ;;  %p5749_p10 = scmp.lt.s32.totalorder %s45_s11, %s45_s11 }
  0x31   :  { %p5745_p9 = scmp.ne.s32.totalorder %s45_s11, %s5744_s21  ;;  %p5750_p11 = scmp.lt.s32.totalorder %s5744_s21, %s5744_s21 }
  0x33   :  { %p5751_p12 = por %p5750_p11, %p5749_p10 }
  0x35   :  { %p5752_p13 = pnand %p5751_p12, %p5745_p9 }
  0x37   :  { %5755 = shalt.err (!%p5752_p13)
}
  0x38   :  { %s5815_s0 = smov 384   ;;  %s5816_s27 = smov 24  }
  0x39   :  { %50 = dma.hbm_to_vmem [thread:$0]  %s7370_s2, 6144, %s45_s11, [#allocation9], %s5815_s0, %s5815_s0, %s5816_s27  }
  0x3a   :  { %5800 = dma.done.wait [#allocation6], 512  }
  0x3b   :  { %5801 = vsyncadd [#allocation6], 4294966784 }
  0x3c   :  { %5802 = dma.done.wait [#allocation9], 6656  }
  0x3d   :  { %5803 = vsyncadd [#allocation9], 4294960640  ;;  %s68_s24 = sld [smem:[#allocation0]]   ;;  %s5817_s26 = smov 256   ;;  %v7376_v0 = vmov 0.0   ;;  %vm630_vm0 = vcmask 261120  }
  0x3e   :  { %80 = sst [smem:[#allocation13]] %s5817_s26  ;;  %432 = vmatprep.mubr.f32.mxu1 %v7376_v0  ;;  %327 = vmatprep.mubr.f32.mxu0 %v7376_v0  ;;  %s5819_s28 = smov 2   ;;  %vm6143_vm1 = vmpackc.low %vm630_vm0, %vm630_vm0 }
  0x3f   :  { %82 = sst [smem:[#allocation13 + $0x1]] %s5817_s26  ;;  %s5820_s29 = smov 64  }
  0x40   :  { %84 = sst [smem:[#allocation13 + $0x2]] %s5819_s28  ;;  %s5821_s2 = smov [#allocation2]  }
  0x41   :  { %86 = sst [smem:[#allocation13 + $0x3]] %s5820_s29  ;;  %s76_s30 = sshll.u32 %s5821_s2, 4  ;;  %s77_s30 = int_to_ptr.vmem [resolvable:$true] %s76_s30 }
  0x42   :  { %88 = sst [smem:[#allocation13 + $0x4]] %s5812_s16  ;;  %s5822_s25 = smov 4  }
  0x43   :  { %90 = sst [smem:[#allocation13 + $0x5]] %s5819_s28  ;;  %s4216_s8 = sshll.u32 %s68_s24, 26 }
  0x44   :  { %92 = sst [smem:[#allocation13 + $0x6]] %s5812_s16  ;;  %s4217_s1 = sadd.s32 134217728, %s4216_s8 }
  0x45   :  { %94 = sst [smem:[#allocation13 + $0x7]] %s5820_s29  ;;  %s5823_s9 = smov [#allocation4]  }
  0x46   :  { %96 = sst [smem:[#allocation13 + $0x8]] %s5822_s25  ;;  %s5824_s10 = smov [#allocation12]  }
  0x47   :  { %98 = dma.general %s7373_s5, 4096, %s77_s30, %s5823_s9, %s5824_s10, [#allocation13], %s4217_s1, 0  }
  0x48   :  { %v5306_v1 = vld [vmem:[#allocation10 + $0xc] ss:$24 sps:$4 sm:$0xff]   ;;  %v5308_v2 = vld [vmem:[#allocation10 + $0x8] ss:$24 sps:$4 sm:$0xff]   ;;  %v5309_v3 = vld [vmem:[#allocation10 + $0x3c] ss:$24 sps:$4 sm:$0xff]  }
  0x49   :  { %4814 = vmatprep.subr.bf16.mxu1 %v5306_v1  ;;  %v5311_v4 = vld [vmem:[#allocation10 + $0x38] ss:$24 sps:$4 sm:$0xff]   ;;  %v5312_v5 = vld [vmem:[#allocation10 + $0x4] ss:$24 sps:$4 sm:$0xff]   ;;  %v5318_v8 = vld [vmem:[#allocation10 + $0x34] ss:$24 sps:$4 sm:$0xff]  }
  0x4a   :  { %4816 = vmatpush1.bf16.msra.mxu1 %v5308_v2  ;;  %v5314_v6 = vld [vmem:[#allocation10 + $0x6c] ss:$24 sps:$4 sm:$0xff]   ;;  %v5316_v7 = vld [vmem:[#allocation10] ss:$24 sps:$4 sm:$0xff]   ;;  %4782 = vmatprep.subr.bf16.mxu0 %v5312_v5  ;;  %v5320_v10 = vld [vmem:[#allocation10 + $0x9c] ss:$24 sps:$4 sm:$0xff]  }
  0x4b   :  { %4818 = vmatprep.subr.bf16.mxu1 %v5309_v3  ;;  %4784 = vmatpush1.bf16.msra.mxu0 %v5316_v7  ;;  %v5317_v9 = vld [vmem:[#allocation10 + $0x68] ss:$24 sps:$4 sm:$0xff]   ;;  %v5324_v12 = vld [vmem:[#allocation10 + $0x64] ss:$24 sps:$4 sm:$0xff]   ;;  %v5323_v13 = vld [vmem:[#allocation10 + $0x98] ss:$24 sps:$4 sm:$0xff]  }
  0x4c   :  { %v5322_v11 = vld [vmem:[#allocation10 + $0x30] ss:$24 sps:$4 sm:$0xff]   ;;  %4786 = vmatprep.subr.bf16.mxu0 %v5318_v8  ;;  %v5328_v14 = vld [vmem:[#allocation10 + $0x60] ss:$24 sps:$4 sm:$0xff]   ;;  %v5330_v15 = vld [vmem:[#allocation10 + $0x94] ss:$24 sps:$4 sm:$0xff]  }
  0x4d   :  { %v5326_v16 = vld [vmem:[#allocation10 + $0xcc] ss:$24 sps:$4 sm:$0xff]   ;;  %v5334_v17 = vld [vmem:[#allocation10 + $0x90] ss:$24 sps:$4 sm:$0xff]   ;;  %v5332_v20 = vld [vmem:[#allocation10 + $0xfc] ss:$24 sps:$4 sm:$0xff]  }
  0x4e   :  { %4820 = vmatpush1.bf16.msra.mxu1 %v5311_v4  ;;  %v5329_v18 = vld [vmem:[#allocation10 + $0xc8] ss:$24 sps:$4 sm:$0xff]   ;;  %v5336_v19 = vld [vmem:[#allocation10 + $0xc4] ss:$24 sps:$4 sm:$0xff]   ;;  %v5335_v22 = vld [vmem:[#allocation10 + $0xf8] ss:$24 sps:$4 sm:$0xff]  }
  0x4f   :  { %4822 = vmatprep.subr.bf16.mxu1 %v5314_v6  ;;  %4788 = vmatpush1.bf16.msra.mxu0 %v5322_v11  ;;  %v5340_v21 = vld [vmem:[#allocation10 + $0xc0] ss:$24 sps:$4 sm:$0xff]   ;;  %v5342_v23 = vld [vmem:[#allocation10 + $0xf4] ss:$24 sps:$4 sm:$0xff]   ;;  %v5346_v25 = vld [vmem:[#allocation10 + $0xf0] ss:$24 sps:$4 sm:$0xff]  }
  0x50   :  { %4790 = vmatprep.subr.bf16.mxu0 %v5324_v12  ;;  %v5338_v24 = vld [vmem:[#allocation10 + $0x12c] ss:$24 sps:$4 sm:$0xff]   ;;  %v5341_v26 = vld [vmem:[#allocation10 + $0x128] ss:$24 sps:$4 sm:$0xff]   ;;  %v5344_v28 = vld [vmem:[#allocation10 + $0x15c] ss:$24 sps:$4 sm:$0xff]  }
  0x51   :  { %v5348_v27 = vld [vmem:[#allocation10 + $0x124] ss:$24 sps:$4 sm:$0xff]   ;;  %v5350_v29 = vld [vmem:[#allocation10 + $0x120] ss:$24 sps:$4 sm:$0xff]   ;;  %v5351_v31 = vld [vmem:[#allocation10 + $0x154] ss:$24 sps:$4 sm:$0xff]  }
  0x52   :  { %4824 = vmatpush1.bf16.msra.mxu1 %v5317_v9  ;;  %v5347_v30 = vld [vmem:[#allocation10 + $0x158] ss:$24 sps:$4 sm:$0xff]   ;;  %v5933_v33 = vld [vmem:[#allocation5] sm:$0xff]  ;;  %v5354_v34 = vld [vmem:[#allocation10 + $0x14] ss:$24 sps:$4 sm:$0xff]   ;;  %s5825_s5 = smov 96  }
  0x53   :  { %4826 = vmatprep.subr.bf16.mxu1 %v5320_v10  ;;  %4792 = vmatpush1.bf16.msra.mxu0 %v5328_v14  ;;  %v5353_v32 = vld [vmem:[#allocation10 + $0x150] ss:$24 sps:$4 sm:$0xff]   ;;  %v5357_v37 = vld [vmem:[#allocation10 + $0x44] ss:$24 sps:$4 sm:$0xff]   ;;  %v5359_v39 = vld [vmem:[#allocation10 + $0x40] ss:$24 sps:$4 sm:$0xff]  }
  0x54   :  { %4794 = vmatprep.subr.bf16.mxu0 %v5330_v15  ;;  %v5937_v35 = vld [vmem:[#allocation5 + $0x8] sm:$0xff]  ;;  %v113_v38 = vld [vmem:[#allocation5 + $0x10] sm:$0xff]  ;;  %v114_v41 = vld [vmem:[#allocation5 + $0x18] sm:$0xff]  ;;  %s5826_s13 = smov 32   ;;  %s5827_s14 = smov [#allocation3]  }
  0x55   :  { %v5356_v36 = vld [vmem:[#allocation10 + $0x10] ss:$24 sps:$4 sm:$0xff]   ;;  %v5360_v40 = vld [vmem:[#allocation10 + $0x74] ss:$24 sps:$4 sm:$0xff]   ;;  %v5363_v43 = vld [vmem:[#allocation10 + $0xa4] ss:$24 sps:$4 sm:$0xff]  }
  0x56   :  { %4828 = vmatpush1.bf16.msra.mxu1 %v5323_v13  ;;  %v5362_v42 = vld [vmem:[#allocation10 + $0x70] ss:$24 sps:$4 sm:$0xff]   ;;  %v5365_v44 = vld [vmem:[#allocation10 + $0xa0] ss:$24 sps:$4 sm:$0xff]   ;;  %v5366_v45 = vld [vmem:[#allocation10 + $0xd4] ss:$24 sps:$4 sm:$0xff]  }
  0x57   :  { %4830 = vmatprep.subr.bf16.mxu1 %v5326_v16  ;;  %4796 = vmatpush1.bf16.msra.mxu0 %v5334_v17  ;;  %v115_v46 = vld [vmem:[#allocation8] sm:$0xff]  ;;  %v5368_v47 = vld [vmem:[#allocation10 + $0xd0] ss:$24 sps:$4 sm:$0xff]   ;;  %v5372_v51 = vld [vmem:[#allocation10 + $0x134] ss:$24 sps:$4 sm:$0xff]   ;;  %s107_s15 = sshll.u32 %s5827_s14, 4  ;;  %s108_s15 = int_to_ptr.vmem [resolvable:$true] %s107_s15 }
  0x58   :  { %4798 = vmatprep.subr.bf16.mxu0 %v5336_v19  ;;  %v5369_v48 = vld [vmem:[#allocation10 + $0x104] ss:$24 sps:$4 sm:$0xff]   ;;  %v116_v49 = vld [vmem:[#allocation8 + $0x8] sm:$0xff]  ;;  %v5371_v50 = vld [vmem:[#allocation10 + $0x100] ss:$24 sps:$4 sm:$0xff]   ;;  %s5756_s20 = scalar_lea.hbm %s7374_s6, 4096 }
  0x59   :  { %v117_v52 = vld [vmem:[#allocation8 + $0x10] sm:$0xff]  ;;  %v5375_v54 = vld [vmem:[#allocation10 + $0x164] ss:$24 sps:$4 sm:$0xff]   ;;  %v5377_v56 = vld [vmem:[#allocation10 + $0x160] ss:$24 sps:$4 sm:$0xff]   ;;  %p5757_p0 = scmp.ne.s32.totalorder %s7374_s6, %s5756_s20  ;;  %p5760_p1 = scmp.lt.u32.totalorder %s5756_s20, %s7374_s6 }
  0x5a   :  { %4832 = vmatpush1.bf16.msra.mxu1 %v5329_v18  ;;  %v5374_v53 = vld [vmem:[#allocation10 + $0x130] ss:$24 sps:$4 sm:$0xff]   ;;  %v118_v55 = vld [vmem:[#allocation8 + $0x18] sm:$0xff] }
  0x5b   :  { %4834 = vmatprep.subr.bf16.mxu1 %v5332_v20  ;;  %4800 = vmatpush1.bf16.msra.mxu0 %v5340_v21  ;;  %p5762_p2 = pnand %p5760_p1, %p5757_p0 }
  0x5c   :  { %4802 = vmatprep.subr.bf16.mxu0 %v5342_v23 }
  0x5e   :  { %4836 = vmatpush1.bf16.msra.mxu1 %v5335_v22 }
  0x5f   :  { %4838 = vmatprep.subr.bf16.mxu1 %v5338_v24  ;;  %4804 = vmatpush1.bf16.msra.mxu0 %v5346_v25 }
  0x60   :  { %4806 = vmatprep.subr.bf16.mxu0 %v5348_v27 }
  0x62   :  { %4840 = vmatpush1.bf16.msra.mxu1 %v5341_v26 }
  0x63   :  { %4842 = vmatprep.subr.bf16.mxu1 %v5344_v28  ;;  %4808 = vmatpush1.bf16.msra.mxu0 %v5350_v29 }
  0x64   :  { %4810 = vmatprep.subr.bf16.mxu0 %v5351_v31 }
  0x66   :  { %4844 = vmatpush1.bf16.msra.mxu1 %v5347_v30 }
  0x67   :  { %4812 = vmatpush1.bf16.msra.mxu0 %v5353_v32 }
  0x68   :  { %4846 = vmatprep.subr.bf16.mxu0 %v5354_v34 }
  0x69   :  { %433 = vmatmul.mubr.f32.vlgmr.msra.gmra.mrb[0].mxu1 %v5933_v33 }
  0x6a   :  { %437 = vmatprep.mubr.f32.mxu1 %v7376_v0  ;;  %328 = vmatmul.mubr.f32.vlgmr.msra.gmra.mrb[0].mxu0 %v5933_v33 }
  0x6b   :  { %333 = vmatprep.mubr.f32.mxu0 %v7376_v0  ;;  %4848 = vmatpush1.bf16.msra.mxu0 %v5356_v36 }
  0x6c   :  { %4850 = vmatprep.subr.bf16.mxu0 %v5357_v37 }
  0x6d   :  { %438 = vmatmul.mubr.f32.gmra.mrb[2].mxu1 %v5937_v35 }
  0x6e   :  { %442 = vmatprep.mubr.f32.mxu1 %v7376_v0  ;;  %334 = vmatmul.mubr.f32.gmra.mrb[2].mxu0 %v5937_v35 }
  0x6f   :  { %339 = vmatprep.mubr.f32.mxu0 %v7376_v0  ;;  %4852 = vmatpush1.bf16.msra.mxu0 %v5359_v39 }
  0x70   :  { %4854 = vmatprep.subr.bf16.mxu0 %v5360_v40 }
  0x71   :  { %443 = vmatmul.mubr.f32.gmra.mrb[4].mxu1 %v113_v38 }
  0x72   :  { %447 = vmatprep.mubr.f32.mxu1 %v7376_v0  ;;  %340 = vmatmul.mubr.f32.gmra.mrb[4].mxu0 %v113_v38 }
  0x73   :  { %345 = vmatprep.mubr.f32.mxu0 %v7376_v0  ;;  %4856 = vmatpush1.bf16.msra.mxu0 %v5362_v42 }
  0x74   :  { %4858 = vmatprep.subr.bf16.mxu0 %v5363_v43 }
  0x75   :  { %448 = vmatmul.mubr.f32.gmra.mrb[6].mxu1 %v114_v41 }
  0x76   :  { %452 = vmatprep.mubr.f32.mxu1 %v7376_v0  ;;  %346 = vmatmul.mubr.f32.gmra.mrb[6].mxu0 %v114_v41 }
  0x77   :  { %351 = vmatprep.mubr.f32.mxu0 %v7376_v0  ;;  %4860 = vmatpush1.bf16.msra.mxu0 %v5365_v44 }
  0x78   :  { %4862 = vmatprep.subr.bf16.mxu0 %v5366_v45 }
  0x79   :  { %453 = vmatmul.mubr.f32.gmra.mrb[8].mxu1 %v115_v46 }
  0x7a   :  { %457 = vmatprep.mubr.f32.mxu1 %v7376_v0  ;;  %352 = vmatmul.mubr.f32.gmra.mrb[8].mxu0 %v115_v46 }
  0x7b   :  { %355 = vmatprep.mubr.f32.mxu0 %v7376_v0  ;;  %4864 = vmatpush1.bf16.msra.mxu0 %v5368_v47 }
  0x7c   :  { %4866 = vmatprep.subr.bf16.mxu0 %v5369_v48 }
  0x7d   :  { %458 = vmatmul.mubr.f32.gmra.mrb[10].mxu1 %v116_v49 }
  0x7e   :  { %462 = vmatprep.mubr.f32.mxu1 %v7376_v0  ;;  %356 = vmatmul.mubr.f32.gmra.mrb[10].mxu0 %v116_v49 }
  0x7f   :  { %359 = vmatprep.mubr.f32.mxu0 %v7376_v0  ;;  %4868 = vmatpush1.bf16.msra.mxu0 %v5371_v50 }
  0x80   :  { %4870 = vmatprep.subr.bf16.mxu0 %v5372_v51 }
  0x81   :  { %463 = vmatmul.mubr.f32.gmra.mrb[12].mxu1 %v117_v52 }
  0x82   :  { %467 = vmatprep.mubr.f32.mxu1 %v7376_v0  ;;  %360 = vmatmul.mubr.f32.gmra.mrb[12].mxu0 %v117_v52 }
  0x83   :  { %363 = vmatprep.mubr.f32.mxu0 %v7376_v0  ;;  %4872 = vmatpush1.bf16.msra.mxu0 %v5374_v53 }
  0x84   :  { %4874 = vmatprep.subr.bf16.mxu0 %v5375_v54 }
  0x85   :  { %468 = vmatmul.mubr.f32.gmra.mrb[14].mxu1 %v118_v55 }
  0x86   :  { %364 = vmatmul.mubr.f32.gmra.mrb[14].mxu0 %v118_v55 }
  0x87   :  { %537 = vmatprep.mubr.f32.mxu0 %v7376_v0  ;;  %4876 = vmatpush1.bf16.msra.mxu0 %v5377_v56 }
  0x8a   :  { %538 = vmatmul.mubr.f32.vlgmr.msra.gmra.mrb[16].mxu0 %v5933_v33 }
  0x8b   :  { %541 = vmatprep.mubr.f32.mxu0 %v7376_v0 }
  0x8e   :  { %542 = vmatmul.mubr.f32.gmra.mrb[18].mxu0 %v5937_v35 }
  0x8f   :  { %545 = vmatprep.mubr.f32.mxu0 %v7376_v0 }
  0x92   :  { %546 = vmatmul.mubr.f32.gmra.mrb[20].mxu0 %v113_v38 }
  0x93   :  { %549 = vmatprep.mubr.f32.mxu0 %v7376_v0 }
  0x96   :  { %550 = vmatmul.mubr.f32.gmra.mrb[22].mxu0 %v114_v41 }
  0x97   :  { %553 = vmatprep.mubr.f32.mxu0 %v7376_v0 }
  0x9a   :  { %554 = vmatmul.mubr.f32.gmra.mrb[24].mxu0 %v115_v46 }
  0x9b   :  { %558 = vmatprep.mubr.f32.mxu0 %v7376_v0 }
  0x9e   :  { %559 = vmatmul.mubr.f32.gmra.mrb[26].mxu0 %v116_v49 }
  0x9f   :  { %563 = vmatprep.mubr.f32.mxu0 %v7376_v0 }
  0xa2   :  { %564 = vmatmul.mubr.f32.gmra.mrb[28].mxu0 %v117_v52 }
  0xa3   :  { %568 = vmatprep.mubr.f32.mxu0 %v7376_v0 }
  0xa6   :  { %569 = vmatmul.mubr.f32.gmra.mrb[30].mxu0 %v118_v55 }
 0x13c   :  { %v5965_v57 = vpop.f32.mrb[0].mxu1 }
 0x13d   :  { %7417 = vst [vmem:[#allocation23_spill] sm:$0xff] %v5965_v57  ;;  %1123 = vrot.lane.b32.xlu0 %v5965_v57, %s5825_s5  ;;  %v436_v58 = vpop.f32.mrb[1].mxu1  ;;  %v5969_v59 = vpop.f32.mrb[0].mxu0  ;;  %v1159_v29 = vmul.f32 %v5965_v57, %v5965_v57 }
 0x13e   :  { %v5973_v61 = vpop.f32.mrb[1].mxu0 }
 0x13f   :  { %v1175_v30 = vsel %vm630_vm0, %v1159_v29, 0.0  ;;  %v751_v43 = vmul.f32 %v5973_v61, %v5973_v61 }
 0x140   :  { %v5971_v60 = vpop.f32.mrb[2].mxu1 }
 0x141   :  { %7418 = vst [vmem:[#allocation24_spill] sm:$0xff] %v5971_v60  ;;  %1135 = vrot.lane.b32.xlu0 %v5965_v57, %s5820_s29  ;;  %1137 = vrot.lane.b32.xlu1 %v5971_v60, %s5820_s29  ;;  %v441_v62 = vpop.f32.mrb[3].mxu1  ;;  %v5981_v63 = vpack.c.bf16 %v5971_v60, %v5965_v57  ;;  %v5983_v1 = vpop.f32.mrb[2].mxu0  ;;  %v1160_v31 = vmul.f32 %v5971_v60, %v5971_v60  ;;  %v767_v46 = vsel %vm630_vm0, %v751_v43, 0.0 }
 0x142   :  { %7420 = vst [vmem:[#allocation26_spill] sm:$0xff] %v5983_v1  ;;  %v5985_v2 = vpop.f32.mrb[3].mxu0 }
 0x143   :  { %7419 = vst [vmem:[#allocation25_spill] sm:$0xff] %v5981_v63  ;;  %v1178_v32 = vsel %vm630_vm0, %v1160_v31, 0.0  ;;  %v752_v47 = vmul.f32 %v5985_v2, %v5985_v2 }
 0x144   :  { %v5987_v3 = vpop.f32.mrb[4].mxu1 }
 0x145   :  { %7421 = vst [vmem:[#allocation27_spill] sm:$0xff] %v5987_v3  ;;  %1147 = vrot.lane.b32.xlu0 %v5965_v57, %s5826_s13  ;;  %1149 = vrot.lane.b32.xlu1 %v5971_v60, %s5826_s13  ;;  %v446_v4 = vpop.f32.mrb[5].mxu1  ;;  %v6003_v8 = vpop.f32.mrb[4].mxu0  ;;  %v770_v48 = vsel %vm630_vm0, %v752_v47, 0.0 }
 0x146   :  { %v6005_v9 = vpop.f32.mrb[5].mxu0 }
 0x148   :  { %v5993_v5 = vpop.f32.mrb[6].mxu1 }
 0x149   :  { %7422 = vst [vmem:[#allocation28_spill] sm:$0xff] %v5993_v5  ;;  %578 = vrot.lane.b32.xlu0 %v5969_v59, %s5825_s5  ;;  %580 = vrot.lane.b32.xlu1 %v5983_v1, %s5825_s5  ;;  %v451_v6 = vpop.f32.mrb[7].mxu1  ;;  %v6001_v7 = vpack.c.bf16 %v5993_v5, %v5987_v3  ;;  %v6011_v11 = vpop.f32.mrb[6].mxu0 }
 0x14a   :  { %v6017_v12 = vpop.f32.mrb[7].mxu0 }
 0x14b   :  { %7423 = vst [vmem:[#allocation29_spill] sm:$0xff] %v6001_v7 }
 0x14c   :  { %v454_v10 = vpop.f32.mrb[8].mxu1 }
 0x14d   :  { %590 = vrot.lane.b32.xlu0 %v5969_v59, %s5820_s29  ;;  %592 = vrot.lane.b32.xlu1 %v5983_v1, %s5820_s29  ;;  %v353_v13 = vpop.f32.mrb[8].mxu0  ;;  %v6037_v33 = vpop.f32.mrb[9].mxu1  ;;  %v1161_v10 = vmul.f32 %v5987_v3, %v5987_v3 }
 0x14e   :  { %v354_v14 = vpop.f32.mrb[9].mxu0 }
 0x14f   :  { %v1162_v14 = vmul.f32 %v5993_v5, %v5993_v5 }
 0x150   :  { %v459_v34 = vpop.f32.mrb[10].mxu1 }
 0x151   :  { %602 = vrot.lane.b32.xlu0 %v5969_v59, %s5826_s13  ;;  %604 = vrot.lane.b32.xlu1 %v5983_v1, %s5826_s13  ;;  %v357_v15 = vpop.f32.mrb[10].mxu0  ;;  %v6039_v35 = vpop.f32.mrb[11].mxu1 }
 0x152   :  { %v358_v16 = vpop.f32.mrb[11].mxu0  ;;  %7424 = vst [vmem:[#allocation30_spill] sm:$0xff] %v6039_v35 }
 0x153   :  { %v1181_v16 = vsel %vm630_vm0, %v1161_v10, 0.0 }
 0x154   :  { %v464_v36 = vpop.f32.mrb[12].mxu1 }
 0x155   :  { %715 = vrot.lane.b32.xlu0 %v5973_v61, %s5825_s5  ;;  %717 = vrot.lane.b32.xlu1 %v5985_v2, %s5825_s5  ;;  %v361_v17 = vpop.f32.mrb[12].mxu0  ;;  %v6164_v31 = vpop.f32.mrb[13].mxu1  ;;  %v753_v36 = vmul.f32 %v6005_v9, %v6005_v9 }
 0x156   :  { %v362_v18 = vpop.f32.mrb[13].mxu0  ;;  %v1184_v17 = vsel %vm630_vm0, %v1162_v14, 0.0 }
 0x157   :  { %v754_v18 = vmul.f32 %v6017_v12, %v6017_v12 }
 0x159   :  { %727 = vrot.lane.b32.xlu0 %v5973_v61, %s5820_s29  ;;  %729 = vrot.lane.b32.xlu1 %v5985_v2, %s5820_s29  ;;  %v365_v19 = vpop.f32.mrb[14].mxu0 }
 0x15a   :  { %v366_v20 = vpop.f32.mrb[15].mxu0 }
 0x15d   :  { %739 = vrot.lane.b32.xlu0 %v5973_v61, %s5826_s13  ;;  %741 = vrot.lane.b32.xlu1 %v5985_v2, %s5826_s13  ;;  %v539_v21 = vpop.f32.mrb[16].mxu0 }
 0x15e   :  { %v540_v22 = vpop.f32.mrb[17].mxu0  ;;  %v776_v21 = vsel %vm630_vm0, %v754_v18, 0.0 }
 0x161   :  { %v543_v23 = vpop.f32.mrb[18].mxu0 }
 0x162   :  { %v544_v24 = vpop.f32.mrb[19].mxu0 }
 0x165   :  { %v547_v25 = vpop.f32.mrb[20].mxu0 }
 0x166   :  { %v548_v26 = vpop.f32.mrb[21].mxu0 }
 0x169   :  { %v551_v27 = vpop.f32.mrb[22].mxu0 }
 0x16a   :  { %v552_v28 = vpop.f32.mrb[23].mxu0 }
 0x16d   :  { %v6045_v37 = vpop.f32.mrb[24].mxu0 }
 0x16e   :  { %v557_v38 = vpop.f32.mrb[25].mxu0 }
 0x16f   :  { %v773_v38 = vsel %vm630_vm0, %v753_v36, 0.0 }
 0x171   :  { %v6047_v39 = vpop.f32.mrb[26].mxu0 }
 0x172   :  { %v562_v40 = vpop.f32.mrb[27].mxu0 }
 0x175   :  { %v6049_v41 = vpop.f32.mrb[28].mxu0 }
 0x176   :  { %v567_v42 = vpop.f32.mrb[29].mxu0 }
 0x179   :  { %v6053_v44 = vpop.f32.mrb[30].mxu0 }
 0x17a   :  { %v572_v45 = vpop.f32.mrb[31].mxu0 }
 0x17c   :  { %1176 = vadd.xlane.f32.xlu0 %v1175_v30 }
 0x181   :  { %1179 = vadd.xlane.f32.xlu1 %v1178_v32  ;;  %v469_v32 = vpop.f32.mrb[14].mxu1 }
 0x182   :  { %v6166_v34 = vpop.f32.mrb[15].mxu1 }
 0x183   :  { %7432 = vst [vmem:[#allocation36_spill] sm:$0xff] %v6166_v34 }
 0x192   :  { %1125 = vrot.lane.b32.xlu0 %v5971_v60, %s5825_s5  ;;  %1127 = vrot.lane.b32.xlu1 %v5987_v3, %s5825_s5 }
 0x1af   :  { %v6075_v49 = vpop.permute.xlu0 %1123 }
 0x1b0   :  { %7425 = vst [vmem:[#allocation31_spill] sm:$0xff] %v6075_v49  ;;  %v1163_v14 = vmul.f32 %v6075_v49, %v6075_v49 }
 0x1b1   :  { %768 = vadd.xlane.f32.xlu0 %v767_v46 }
 0x1b3   :  { %v6081_v50 = vpop.permute.xlu0 %1135  ;;  %v6093_v52 = vpop.permute.xlu1 %1137 }
 0x1b4   :  { %7426 = vst [vmem:[#allocation32_spill] sm:$0xff] %v6081_v50  ;;  %7428 = vst [vmem:[#allocation34_spill] sm:$0xff] %v6093_v52  ;;  %v1167_v18 = vmul.f32 %v6081_v50, %v6081_v50 }
 0x1b6   :  { %771 = vadd.xlane.f32.xlu1 %v770_v48 }
 0x1b7   :  { %v6091_v51 = vpop.permute.xlu0 %1147  ;;  %v6099_v54 = vpop.permute.xlu1 %1149 }
 0x1b8   :  { %7427 = vst [vmem:[#allocation33_spill] sm:$0xff] %v6091_v51  ;;  %7429 = vst [vmem:[#allocation35_spill] sm:$0xff] %v6099_v54 }
 0x1bb   :  { %v6097_v53 = vpop.permute.xlu0 %578  ;;  %v6101_v55 = vpop.permute.xlu1 %580 }
 0x1bf   :  { %v6103_v56 = vpop.permute.xlu0 %590  ;;  %v6105_v58 = vpop.permute.xlu1 %592 }
 0x1c3   :  { %v6107_v62 = vpop.permute.xlu0 %602  ;;  %v6109_v4 = vpop.permute.xlu1 %604 }
 0x1c7   :  { %1139 = vrot.lane.b32.xlu0 %v5987_v3, %s5820_s29  ;;  %1129 = vrot.lane.b32.xlu1 %v5993_v5, %s5825_s5  ;;  %v6111_v6 = vpop.permute.xlu0 %715  ;;  %v6115_v13 = vpop.permute.xlu1 %717 }
 0x1cb   :  { %1151 = vrot.lane.b32.xlu0 %v5987_v3, %s5826_s13  ;;  %1141 = vrot.lane.b32.xlu1 %v5993_v5, %s5820_s29  ;;  %v6119_v15 = vpop.permute.xlu0 %727  ;;  %v6125_v19 = vpop.permute.xlu1 %729 }
 0x1cf   :  { %1153 = vrot.lane.b32.xlu1 %v5993_v5, %s5826_s13  ;;  %582 = vrot.lane.b32.xlu0 %v6003_v8, %s5825_s5  ;;  %v6127_v20 = vpop.permute.xlu0 %739  ;;  %v6130_v23 = vpop.permute.xlu1 %741 }
 0x1d3   :  { %594 = vrot.lane.b32.xlu0 %v6003_v8, %s5820_s29  ;;  %596 = vrot.lane.b32.xlu1 %v6011_v11, %s5820_s29 }
 0x1d7   :  { %606 = vrot.lane.b32.xlu0 %v6003_v8, %s5826_s13  ;;  %721 = vrot.lane.b32.xlu1 %v6017_v12, %s5825_s5 }
 0x1db   :  { %719 = vrot.lane.b32.xlu0 %v6005_v9, %s5825_s5  ;;  %733 = vrot.lane.b32.xlu1 %v6017_v12, %s5820_s29 }
 0x1df   :  { %731 = vrot.lane.b32.xlu0 %v6005_v9, %s5820_s29  ;;  %745 = vrot.lane.b32.xlu1 %v6017_v12, %s5826_s13 }
 0x1e3   :  { %743 = vrot.lane.b32.xlu0 %v6005_v9, %s5826_s13 }
 0x202   :  { %1182 = vadd.xlane.f32.xlu0 %v1181_v16 }
 0x203   :  { %1185 = vadd.xlane.f32.xlu1 %v1184_v17  ;;  %v1187_v17 = vsel %vm630_vm0, %v1163_v14, 0.0 }
 0x207   :  { %777 = vadd.xlane.f32.xlu1 %v776_v21 }
 0x209   :  { %v1177_v22 = vpop.xlane.xlu0 %1176 }
 0x20a   :  { %5378 = vrsqrt.f32 %v1177_v22 }
 0x20d   :  { %v6173_v40 = vpop.permute.xlu0 %1125 }
 0x20e   :  { %v1180_v24 = vpop.xlane.xlu1 %1179  ;;  %7433 = vst [vmem:[#allocation37_spill] sm:$0xff] %v6173_v40 }
 0x20f   :  { %5380 = vrsqrt.f32 %v1180_v24 }
 0x212   :  { %v6175_v42 = vpop.permute.xlu1 %1127 }
 0x213   :  { %7434 = vst [vmem:[#allocation38_spill] sm:$0xff] %v6175_v42 }
 0x214   :  { %v5379_v25 = vpop.eup %5378 }
 0x215   :  { %v1239_v26 = vmul.f32 %v5379_v25, %v5965_v57 }
 0x217   :  { %4565 = vmatprep.mubr.msk.f32.mxu1 %vm630_vm0, %v1239_v26 }
 0x218   :  { %584 = vrot.lane.b32.xlu0 %v6011_v11, %s5825_s5  ;;  %853 = vrot.lane.b32.xlu1 %v6039_v35, %s5825_s5 }
 0x219   :  { %v5381_v27 = vpop.eup %5380 }
 0x21a   :  { %v6139_v28 = vmul.f32 %v5381_v27, %v5971_v60 }
 0x21c   :  { %608 = vrot.lane.b32.xlu0 %v6011_v11, %s5826_s13  ;;  %987 = vrot.lane.b32.xlu1 %v6045_v37, %s5825_s5  ;;  %v4877_v30 = vpack.c.bf16 %v6139_v28, %v1239_v26 }
 0x21e   :  { %4879 = vmatprep.subr.msk.bf16.mxu1 %vm6143_vm1, %v4877_v30 }
 0x21f   :  { %4882 = vmatpush3.bf16.xpose.msk.msra.mxu1 %vm6143_vm1, %v4877_v30 }
 0x220   :  { %989 = vrot.lane.b32.xlu1 %v6047_v39, %s5825_s5 }
 0x224   :  { %1001 = vrot.lane.b32.xlu1 %v6047_v39, %s5820_s29 }
 0x228   :  { %1013 = vrot.lane.b32.xlu1 %v6047_v39, %s5826_s13 }
 0x22c   :  { %1003 = vrot.lane.b32.xlu1 %v6049_v41, %s5820_s29 }
 0x230   :  { %993 = vrot.lane.b32.xlu1 %v6053_v44, %s5825_s5 }
 0x23b   :  { %774 = vadd.xlane.f32.xlu0 %v773_v38 }
 0x23e   :  { %v769_v43 = vpop.xlane.xlu0 %768 }
 0x23f   :  { %5382 = vrsqrt.f32 %v769_v43  ;;  %v1164_v43 = vmul.f32 %v6173_v40, %v6173_v40 }
 0x242   :  { %v6205_v26 = vpop.permute.xlu0 %1139 }
 0x243   :  { %v772_v45 = vpop.xlane.xlu1 %771  ;;  %7436 = vst [vmem:[#allocation40_spill] sm:$0xff] %v6205_v26 }
 0x244   :  { %5384 = vrsqrt.f32 %v772_v45 }
 0x246   :  { %v6207_v27 = vpop.permute.xlu0 %1151 }
 0x247   :  { %v6195_v21 = vpop.permute.xlu1 %1129  ;;  %7437 = vst [vmem:[#allocation41_spill] sm:$0xff] %v6207_v27 }
 0x248   :  { %7435 = vst [vmem:[#allocation39_spill] sm:$0xff] %v6195_v21  ;;  %v1166_v22 = vmul.f32 %v6195_v21, %v6195_v21 }
 0x249   :  { %v5383_v46 = vpop.eup %5382 }
 0x24a   :  { %v831_v48 = vmul.f32 %v5383_v46, %v5973_v61  ;;  %v1199_v61 = vsel %vm630_vm0, %v1167_v18, 0.0  ;;  %v1196_v25 = vsel %vm630_vm0, %v1166_v22, 0.0  ;;  %v6209_v30 = vpop.permute.xlu0 %582 }
 0x24b   :  { %v6211_v32 = vpop.permute.xlu1 %1141 }
 0x24c   :  { %7438 = vst [vmem:[#allocation42_spill] sm:$0xff] %v6211_v32 }
 0x24e   :  { %v5385_v47 = vpop.eup %5384  ;;  %v6215_v36 = vpop.permute.xlu0 %594 }
 0x24f   :  { %v832_v10 = vmul.f32 %v5385_v47, %v5985_v2  ;;  %v1168_v2 = vmul.f32 %v6093_v52, %v6093_v52  ;;  %v6219_v38 = vpop.permute.xlu1 %1153  ;;  %v1190_v47 = vsel %vm630_vm0, %v1164_v43, 0.0 }
 0x250   :  { %7439 = vst [vmem:[#allocation43_spill] sm:$0xff] %v6219_v38 }
 0x251   :  { %851 = vrot.lane.b32.xlu0 %v6037_v33, %s5825_s5  ;;  %v4925_v16 = vpack.c.bf16 %v832_v10, %v831_v48  ;;  %v1202_v24 = vsel %vm630_vm0, %v1168_v2, 0.0  ;;  %v1165_v48 = vmul.f32 %v6175_v42, %v6175_v42 }
 0x252   :  { %v6223_v45 = vpop.permute.xlu0 %606 }
 0x253   :  { %4927 = vmatprep.subr.msk.bf16.mxu0 %vm6143_vm1, %v4925_v16  ;;  %v6225_v46 = vpop.permute.xlu1 %596  ;;  %v1193_v14 = vsel %vm630_vm0, %v1165_v48, 0.0 }
 0x254   :  { %4930 = vmatpush3.bf16.xpose.msk.msra.mxu0 %vm6143_vm1, %v4925_v16  ;;  %1188 = vadd.xlane.f32.xlu1 %v1187_v17  ;;  %v1169_v16 = vmul.f32 %v6205_v26, %v6205_v26 }
 0x255   :  { %999 = vrot.lane.b32.xlu0 %v6045_v37, %s5820_s29 }
 0x256   :  { %v6230_v10 = vpop.permute.xlu0 %719  ;;  %v1205_v18 = vsel %vm630_vm0, %v1169_v16, 0.0 }
 0x257   :  { %7440 = vst [vmem:[#allocation44_spill] sm:$0xff] %v6230_v10  ;;  %v6235_v17 = vpop.permute.xlu1 %721 }
 0x258   :  { %1200 = vadd.xlane.f32.xlu1 %v1199_v61  ;;  %7441 = vst [vmem:[#allocation45_spill] sm:$0xff] %v6235_v17  ;;  %v1170_v61 = vmul.f32 %v6211_v32, %v6211_v32 }
 0x259   :  { %1011 = vrot.lane.b32.xlu0 %v6045_v37, %s5826_s13 }
 0x25a   :  { %v6240_v2 = vpop.permute.xlu0 %731 }
 0x25b   :  { %v6242_v22 = vpop.permute.xlu1 %733 }
 0x25c   :  { %1203 = vadd.xlane.f32.xlu1 %v1202_v24  ;;  %v1208_v24 = vsel %vm630_vm0, %v1170_v61, 0.0 }
 0x25d   :  { %991 = vrot.lane.b32.xlu0 %v6049_v41, %s5825_s5 }
 0x25f   :  { %v6247_v43 = vpop.permute.xlu1 %745 }
 0x260   :  { %1197 = vadd.xlane.f32.xlu1 %v1196_v25  ;;  %v6245_v25 = vpop.permute.xlu0 %743 }
 0x271   :  { %1015 = vrot.lane.b32.xlu1 %v6049_v41, %s5826_s13 }
 0x275   :  { %1017 = vrot.lane.b32.xlu1 %v6053_v44, %s5826_s13 }
 0x27c   :  { %1191 = vadd.xlane.f32.xlu0 %v1190_v47 }
 0x280   :  { %1194 = vadd.xlane.f32.xlu0 %v1193_v14  ;;  %v756_v14 = vmul.f32 %v6115_v13, %v6115_v13 }
 0x282   :  { %v782_v16 = vsel %vm630_vm0, %v756_v14, 0.0 }
 0x284   :  { %1206 = vadd.xlane.f32.xlu0 %v1205_v18  ;;  %v1171_v18 = vmul.f32 %v6091_v51, %v6091_v51 }
 0x286   :  { %v1211_v60 = vsel %vm630_vm0, %v1171_v18, 0.0  ;;  %v755_v18 = vmul.f32 %v6111_v6, %v6111_v6 }
 0x288   :  { %1209 = vadd.xlane.f32.xlu0 %v1208_v24 }
 0x28f   :  { %v1183_v47 = vpop.xlane.xlu0 %1182 }
 0x290   :  { %5386 = vrsqrt.f32 %v1183_v47  ;;  %v1186_v48 = vpop.xlane.xlu1 %1185  ;;  %v1172_v47 = vmul.f32 %v6099_v54, %v6099_v54 }
 0x291   :  { %5388 = vrsqrt.f32 %v1186_v48 }
 0x292   :  { %v1214_v14 = vsel %vm630_vm0, %v1172_v47, 0.0  ;;  %v779_v47 = vsel %vm630_vm0, %v755_v18, 0.0 }
 0x299   :  { %783 = vadd.xlane.f32.xlu1 %v782_v16 }
 0x29a   :  { %v5387_v0 = vpop.eup %5386 }
 0x29b   :  { %v5389_v61 = vpop.eup %5388  ;;  %v1241_v24 = vmul.f32 %v5387_v0, %v5987_v3  ;;  %v614_v0 = vmul.f32 %v5969_v59, %v5969_v59 }
 0x29c   :  { %v1242_v57 = vmul.f32 %v5389_v61, %v5993_v5 }
 0x29d   :  { %1212 = vadd.xlane.f32.xlu1 %v1211_v60  ;;  %v631_v16 = vsel %vm630_vm0, %v614_v0, 0.0  ;;  %v778_v60 = vpop.xlane.xlu1 %777 }
 0x29e   :  { %1005 = vrot.lane.b32.xlu0 %v6053_v44, %s5820_s29  ;;  %v4883_v48 = vpack.c.bf16 %v1242_v57, %v1241_v24  ;;  %5390 = vrsqrt.f32 %v778_v60 }
 0x2a0   :  { %4885 = vmatprep.subr.msk.bf16.mxu1 %vm6143_vm1, %v4883_v48 }
 0x2a1   :  { %4888 = vmatpush3.bf16.xpose.msk.msra.mxu1 %vm6143_vm1, %v4883_v48  ;;  %1215 = vadd.xlane.f32.xlu1 %v1214_v14  ;;  %v6279_v61 = vpop.permute.xlu1 %853 }
 0x2a2   :  { %7442 = vst [vmem:[#allocation46_spill] sm:$0xff] %v6279_v61  ;;  %v757_v61 = vmul.f32 %v6230_v10, %v6230_v10 }
 0x2a5   :  { %632 = vadd.xlane.f32.xlu1 %v631_v16 }
 0x2a8   :  { %4566 = vmatmul.mubr.msk.f32.vlgmr.msra.gmra.mrb[16].mxu1 %vm630_vm0, %v6139_v28  ;;  %v6282_v28 = vpop.permute.xlu0 %584  ;;  %v5391_v16 = vpop.eup %5390 }
 0x2a9   :  { %4568 = vmatprep.mubr.msk.f32.mxu1 %vm630_vm0, %v1241_v24  ;;  %v834_v3 = vmul.f32 %v5391_v16, %v6017_v12 }
 0x2ac   :  { %4569 = vmatmul.mubr.msk.f32.gmra.mrb[18].mxu1 %vm630_vm0, %v1242_v57  ;;  %v6286_v57 = vpop.permute.xlu1 %987  ;;  %v6290_v24 = vpop.permute.xlu0 %608 }
 0x2b0   :  { %v6294_v48 = vpop.permute.xlu1 %989 }
 0x2b4   :  { %v6296_v0 = vpop.permute.xlu1 %1001 }
 0x2b5   :  { %7443 = vst [vmem:[#allocation47_spill] sm:$0xff] %v6296_v0 }
 0x2b6   :  { %857 = vrot.lane.b32.xlu1 %v6166_v34, %s5825_s5 }
 0x2ba   :  { %863 = vrot.lane.b32.xlu1 %v6037_v33, %s5820_s29 }
 0x2bd   :  { %780 = vadd.xlane.f32.xlu0 %v779_v47  ;;  %v6298_v47 = vpop.permute.xlu1 %1013 }
 0x2be   :  { %865 = vrot.lane.b32.xlu1 %v6039_v35, %s5820_s29  ;;  %7444 = vst [vmem:[#allocation48_spill] sm:$0xff] %v6298_v47 }
 0x2c1   :  { %v6304_v63 = vpop.permute.xlu1 %1003 }
 0x2c2   :  { %875 = vrot.lane.b32.xlu1 %v6037_v33, %s5826_s13 }
 0x2c5   :  { %v6310_v60 = vpop.permute.xlu1 %993 }
 0x2c6   :  { %877 = vrot.lane.b32.xlu1 %v6039_v35, %s5826_s13 }
 0x2c8   :  { %v775_v14 = vpop.xlane.xlu0 %774 }
 0x2c9   :  { %5392 = vrsqrt.f32 %v775_v14 }
 0x2d3   :  { %v5393_v18 = vpop.eup %5392  ;;  %855 = vrot.lane.b32.xlu0 %v6164_v31, %s5825_s5 }
 0x2d4   :  { %v833_v5 = vmul.f32 %v5393_v18, %v6005_v9  ;;  %v785_v9 = vsel %vm630_vm0, %v757_v61, 0.0  ;;  %v758_v61 = vmul.f32 %v6235_v17, %v6235_v17 }
 0x2d6   :  { %v4931_v7 = vpack.c.bf16 %v834_v3, %v833_v5  ;;  %v1173_v3 = vmul.f32 %v6207_v27, %v6207_v27 }
 0x2d8   :  { %4933 = vmatprep.subr.msk.bf16.mxu0 %vm6143_vm1, %v4931_v7  ;;  %v1217_v12 = vsel %vm630_vm0, %v1173_v3, 0.0 }
 0x2d9   :  { %4936 = vmatpush3.bf16.xpose.msk.msra.mxu0 %vm6143_vm1, %v4931_v7  ;;  %v615_v7 = vmul.f32 %v5983_v1, %v5983_v1 }
 0x2db   :  { %v634_v18 = vsel %vm630_vm0, %v615_v7, 0.0 }
 0x2e1   :  { %v1189_v14 = vpop.xlane.xlu1 %1188 }
 0x2e2   :  { %5394 = vrsqrt.f32 %v1189_v14  ;;  %v6325_v14 = vpop.permute.xlu0 %851 }
 0x2e6   :  { %v6328_v3 = vpop.permute.xlu0 %999 }
 0x2ea   :  { %786 = vadd.xlane.f32.xlu1 %v785_v9  ;;  %v788_v9 = vsel %vm630_vm0, %v758_v61, 0.0 }
 0x2ec   :  { %v5395_v5 = vpop.eup %5394 }
 0x2ed   :  { %v1243_v16 = vmul.f32 %v5395_v5, %v6075_v49  ;;  %v1201_v5 = vpop.xlane.xlu1 %1200  ;;  %v6330_v49 = vpop.permute.xlu0 %1011 }
 0x2ee   :  { %1218 = vadd.xlane.f32.xlu1 %v1217_v12 }
 0x2ef   :  { %4579 = vmatprep.mubr.msk.f32.mxu1 %vm630_vm0, %v1243_v16 }
 0x2f1   :  { %v1204_v12 = vpop.xlane.xlu1 %1203  ;;  %v6334_v27 = vpop.permute.xlu0 %991 }
 0x2f2   :  { %635 = vadd.xlane.f32.xlu0 %v634_v18 }
 0x2f5   :  { %v1198_v7 = vpop.xlane.xlu1 %1197 }
 0x2f6   :  { %789 = vadd.xlane.f32.xlu0 %v788_v9 }
 0x2f9   :  { %v6349_v0 = vpop.permute.xlu1 %1015 }
 0x2fa   :  { %7445 = vst [vmem:[#allocation49_spill] sm:$0xff] %v6349_v0 }
 0x2ff   :  { %881 = vrot.lane.b32.xlu1 %v6166_v34, %s5826_s13 }
 0x309   :  { %v1192_v10 = vpop.xlane.xlu0 %1191 }
 0x30a   :  { %5396 = vrsqrt.f32 %v1192_v10 }
 0x30b   :  { %5398 = vrsqrt.f32 %v1198_v7 }
 0x30c   :  { %867 = vrot.lane.b32.xlu0 %v6164_v31, %s5820_s29 }
 0x30d   :  { %v1195_v18 = vpop.xlane.xlu0 %1194 }
 0x30e   :  { %5400 = vrsqrt.f32 %v1195_v18 }
 0x30f   :  { %5402 = vrsqrt.f32 %v1204_v12 }
 0x310   :  { %869 = vrot.lane.b32.xlu0 %v6166_v34, %s5820_s29  ;;  %5404 = vrsqrt.f32 %v1201_v5 }
 0x311   :  { %v1207_v61 = vpop.xlane.xlu0 %1206 }
 0x314   :  { %v5397_v9 = vpop.eup %5396  ;;  %879 = vrot.lane.b32.xlu0 %v6164_v31, %s5826_s13 }
 0x315   :  { %v1210_v17 = vpop.xlane.xlu0 %1209  ;;  %v1244_v1 = vmul.f32 %v5397_v9, %v6173_v40  ;;  %v5399_v10 = vpop.eup %5398 }
 0x316   :  { %5406 = vrsqrt.f32 %v1210_v17  ;;  %v1246_v18 = vmul.f32 %v5399_v10, %v6195_v21  ;;  %v761_v21 = vmul.f32 %v6240_v2, %v6240_v2 }
 0x317   :  { %v4889_v7 = vpack.c.bf16 %v1244_v1, %v1243_v16  ;;  %5408 = vrsqrt.f32 %v1207_v61  ;;  %v616_v16 = vmul.f32 %v6003_v8, %v6003_v8  ;;  %v6357_v61 = vpop.permute.xlu1 %1017 }
 0x318   :  { %v5401_v35 = vpop.eup %5400  ;;  %7446 = vst [vmem:[#allocation50_spill] sm:$0xff] %v6357_v61 }
 0x319   :  { %4891 = vmatprep.subr.msk.bf16.mxu1 %vm6143_vm1, %v4889_v7  ;;  %v1245_v12 = vmul.f32 %v5401_v35, %v6175_v42  ;;  %v5403_v34 = vpop.eup %5402  ;;  %v765_v42 = vmul.f32 %v6245_v25, %v6245_v25 }
 0x31a   :  { %4894 = vmatpush3.bf16.xpose.msk.msra.mxu1 %vm6143_vm1, %v4889_v7  ;;  %v5405_v47 = vpop.eup %5404  ;;  %v1248_v17 = vmul.f32 %v5403_v34, %v6093_v52  ;;  %v637_v7 = vsel %vm630_vm0, %v616_v16, 0.0 }
 0x31b   :  { %v4895_v5 = vpack.c.bf16 %v1246_v18, %v1245_v12  ;;  %v1247_v35 = vmul.f32 %v5405_v47, %v6081_v50  ;;  %v797_v50 = vsel %vm630_vm0, %v761_v21, 0.0  ;;  %v620_v21 = vmul.f32 %v6209_v30, %v6209_v30 }
 0x31d   :  { %4897 = vmatprep.subr.msk.bf16.mxu1 %vm6143_vm1, %v4895_v5  ;;  %v4901_v9 = vpack.c.bf16 %v1248_v17, %v1247_v35 }
 0x320   :  { %v5407_v10 = vpop.eup %5406 }
 0x321   :  { %v5409_v34 = vpop.eup %5408  ;;  %v1250_v52 = vmul.f32 %v5407_v10, %v6211_v32  ;;  %v809_v10 = vsel %vm630_vm0, %v765_v42, 0.0  ;;  %v1023_v42 = vmul.f32 %v6045_v37, %v6045_v37 }
 0x322   :  { %4900 = vmatpush3.bf16.xpose.msk.msra.mxu1 %vm6143_vm1, %v4895_v5  ;;  %v1249_v5 = vmul.f32 %v5409_v34, %v6205_v26 }
 0x323   :  { %638 = vadd.xlane.f32.xlu1 %v637_v7  ;;  %4903 = vmatprep.subr.msk.bf16.mxu1 %vm6143_vm1, %v4901_v9  ;;  %v1039_v34 = vsel %vm630_vm0, %v1023_v42, 0.0  ;;  %v626_v42 = vmul.f32 %v6107_v62, %v6107_v62 }
 0x324   :  { %v4907_v16 = vpack.c.bf16 %v1250_v52, %v1249_v5 }
 0x326   :  { %v6367_v47 = vpop.xlane.xlu1 %783 }
 0x327   :  { %798 = vadd.xlane.f32.xlu1 %v797_v50  ;;  %v649_v50 = vsel %vm630_vm0, %v620_v21, 0.0 }
 0x329   :  { %4580 = vmatmul.mubr.msk.f32.vlgmr.msra.gmra.mrb[16].mxu1 %vm630_vm0, %v1244_v1 }
 0x32a   :  { %4582 = vmatprep.mubr.msk.f32.mxu1 %vm630_vm0, %v1245_v12  ;;  %4906 = vmatpush3.bf16.xpose.msk.msra.mxu1 %vm6143_vm1, %v4901_v9  ;;  %v1213_v7 = vpop.xlane.xlu1 %1212  ;;  %v1174_v12 = vmul.f32 %v6219_v38, %v6219_v38  ;;  %v1027_v9 = vmul.f32 %v6286_v57, %v6286_v57 }
 0x32b   :  { %810 = vadd.xlane.f32.xlu1 %v809_v10  ;;  %4909 = vmatprep.subr.msk.bf16.mxu1 %vm6143_vm1, %v4907_v16  ;;  %5410 = vrsqrt.f32 %v1213_v7  ;;  %v617_v7 = vmul.f32 %v6011_v11, %v6011_v11  ;;  %v622_v10 = vmul.f32 %v6103_v56, %v6103_v56 }
 0x32d   :  { %4583 = vmatmul.mubr.msk.f32.gmra.mrb[18].mxu1 %vm630_vm0, %v1246_v18  ;;  %v640_v21 = vsel %vm630_vm0, %v617_v7, 0.0  ;;  %v760_v7 = vmul.f32 %v6125_v19, %v6125_v19 }
 0x32e   :  { %4593 = vmatprep.mubr.msk.f32.mxu1 %vm630_vm0, %v1247_v35  ;;  %v1216_v1 = vpop.xlane.xlu1 %1215  ;;  %v1220_v35 = vsel %vm630_vm0, %v1174_v12, 0.0 }
 0x32f   :  { %5412 = vrsqrt.f32 %v1216_v1  ;;  %650 = vadd.xlane.f32.xlu1 %v649_v50  ;;  %v1051_v1 = vsel %vm630_vm0, %v1027_v9, 0.0 }
 0x332   :  { %4912 = vmatpush3.bf16.xpose.msk.msra.mxu1 %vm6143_vm1, %v4907_v16  ;;  %v633_v18 = vpop.xlane.xlu1 %632  ;;  %v759_v16 = vmul.f32 %v6119_v15, %v6119_v15 }
 0x333   :  { %5414 = vrsqrt.f32 %v633_v18  ;;  %1221 = vadd.xlane.f32.xlu0 %v1220_v35  ;;  %1040 = vadd.xlane.f32.xlu1 %v1039_v34  ;;  %v655_v18 = vsel %vm630_vm0, %v622_v10, 0.0 }
 0x334   :  { %v791_v35 = vsel %vm630_vm0, %v759_v16, 0.0  ;;  %v763_v16 = vmul.f32 %v6127_v20, %v6127_v20  ;;  %5416 = vrsqrt.f32 %v6367_v47 }
 0x335   :  { %v5411_v50 = vpop.eup %5410 }
 0x336   :  { %v1251_v9 = vmul.f32 %v5411_v50, %v6091_v51  ;;  %v1025_v50 = vmul.f32 %v6049_v41, %v6049_v41 }
 0x337   :  { %641 = vadd.xlane.f32.xlu0 %v640_v21  ;;  %1052 = vadd.xlane.f32.xlu1 %v1051_v1 }
 0x339   :  { %v5413_v12 = vpop.eup %5412  ;;  %4594 = vmatmul.mubr.msk.f32.vlgmr.msra.gmra.mrb[16].mxu1 %vm630_vm0, %v1248_v17  ;;  %v667_v17 = vsel %vm630_vm0, %v626_v42, 0.0  ;;  %v764_v42 = vmul.f32 %v6130_v23, %v6130_v23 }
 0x33a   :  { %4596 = vmatprep.mubr.msk.f32.mxu1 %vm630_vm0, %v1249_v5  ;;  %v6411_v34 = vmul.f32 %v5413_v12, %v6099_v54  ;;  %v794_v5 = vsel %vm630_vm0, %v760_v7, 0.0  ;;  %v803_v12 = vsel %vm630_vm0, %v763_v16, 0.0  ;;  %v619_v16 = vmul.f32 %v6101_v55, %v6101_v55 }
 0x33b   :  { %792 = vadd.xlane.f32.xlu0 %v791_v35  ;;  %656 = vadd.xlane.f32.xlu1 %v655_v18  ;;  %v624_v18 = vmul.f32 %v6215_v36, %v6215_v36  ;;  %v6438_v35 = vpop.permute.xlu0 %1005 }
 0x33c   :  { %v4913_v21 = vpack.c.bf16 %v6411_v34, %v1251_v9 }
 0x33d   :  { %v5415_v1 = vpop.eup %5414  ;;  %4597 = vmatmul.mubr.msk.f32.gmra.mrb[18].mxu1 %vm630_vm0, %v1250_v52  ;;  %v1029_v52 = vmul.f32 %v6334_v27, %v6334_v27 }
 0x33e   :  { %4915 = vmatprep.subr.msk.bf16.mxu1 %vm6143_vm1, %v4913_v21  ;;  %4607 = vmatprep.mubr.msk.f32.mxu1 %vm630_vm0, %v1251_v9  ;;  %v695_v10 = vmul.f32 %v5415_v1, %v5969_v59  ;;  %v1045_v59 = vsel %vm630_vm0, %v1025_v50, 0.0  ;;  %v806_v9 = vsel %vm630_vm0, %v764_v42, 0.0  ;;  %v628_v1 = vmul.f32 %v6223_v45, %v6223_v45 }
 0x33f   :  { %795 = vadd.xlane.f32.xlu0 %v794_v5  ;;  %668 = vadd.xlane.f32.xlu1 %v667_v17  ;;  %v1057_v7 = vsel %vm630_vm0, %v1029_v52, 0.0  ;;  %v1031_v50 = vmul.f32 %v6328_v3, %v6328_v3  ;;  %v646_v52 = vsel %vm630_vm0, %v619_v16, 0.0  ;;  %v1035_v42 = vmul.f32 %v6330_v49, %v6330_v49 }
 0x340   :  { %4918 = vmatpush3.bf16.xpose.msk.msra.mxu1 %vm6143_vm1, %v4913_v21  ;;  %4621 = vmatprep.mubr.msk.f32.mxu0 %vm630_vm0, %v695_v10  ;;  %v618_v21 = vmul.f32 %v6097_v53, %v6097_v53  ;;  %v661_v10 = vsel %vm630_vm0, %v624_v18, 0.0  ;;  %v673_v47 = vsel %vm630_vm0, %v628_v1, 0.0 }
 0x342   :  { %v643_v5 = vsel %vm630_vm0, %v618_v21, 0.0 }
 0x343   :  { %804 = vadd.xlane.f32.xlu0 %v803_v12  ;;  %1046 = vadd.xlane.f32.xlu1 %v1045_v59  ;;  %v762_v12 = vmul.f32 %v6242_v22, %v6242_v22  ;;  %v766_v59 = vmul.f32 %v6247_v43, %v6247_v43 }
 0x345   :  { %v800_v18 = vsel %vm630_vm0, %v762_v12, 0.0  ;;  %v812_v1 = vsel %vm630_vm0, %v766_v59, 0.0 }
 0x347   :  { %807 = vadd.xlane.f32.xlu0 %v806_v9  ;;  %1058 = vadd.xlane.f32.xlu1 %v1057_v7  ;;  %v1063_v9 = vsel %vm630_vm0, %v1031_v50, 0.0  ;;  %v5417_v7 = vpop.eup %5416 }
 0x34a   :  { %v781_v17 = vpop.xlane.xlu0 %780 }
 0x34b   :  { %5418 = vrsqrt.f32 %v781_v17  ;;  %644 = vadd.xlane.f32.xlu0 %v643_v5  ;;  %662 = vadd.xlane.f32.xlu1 %v661_v10  ;;  %v887_v17 = vmul.f32 %v6037_v33, %v6037_v33  ;;  %v621_v5 = vmul.f32 %v6282_v28, %v6282_v28  ;;  %v1075_v10 = vsel %vm630_vm0, %v1035_v42, 0.0 }
 0x34c   :  { %v1028_v42 = vmul.f32 %v6294_v48, %v6294_v48 }
 0x34d   :  { %v652_v12 = vsel %vm630_vm0, %v621_v5, 0.0  ;;  %v903_v59 = vsel %vm630_vm0, %v887_v17, 0.0 }
 0x34e   :  { %v1054_v17 = vsel %vm630_vm0, %v1028_v42, 0.0 }
 0x34f   :  { %647 = vadd.xlane.f32.xlu0 %v646_v52  ;;  %674 = vadd.xlane.f32.xlu1 %v673_v47  ;;  %v836_v52 = vmul.f32 %v5417_v7, %v6115_v13  ;;  %v891_v47 = vmul.f32 %v6325_v14, %v6325_v14  ;;  %v6482_v13 = vpop.permute.xlu1 %857 }
 0x351   :  { %v915_v7 = vsel %vm630_vm0, %v891_v47, 0.0 }
 0x353   :  { %801 = vadd.xlane.f32.xlu0 %v800_v18  ;;  %1064 = vadd.xlane.f32.xlu1 %v1063_v9  ;;  %v1033_v18 = vmul.f32 %v6304_v63, %v6304_v63 }
 0x355   :  { %v5419_v21 = vpop.eup %5418  ;;  %v1069_v5 = vsel %vm630_vm0, %v1033_v18, 0.0 }
 0x356   :  { %v835_v16 = vmul.f32 %v5419_v21, %v6111_v6  ;;  %v1024_v6 = vmul.f32 %v6047_v39, %v6047_v39  ;;  %v623_v21 = vmul.f32 %v6105_v58, %v6105_v58 }
 0x357   :  { %813 = vadd.xlane.f32.xlu0 %v812_v1  ;;  %1076 = vadd.xlane.f32.xlu1 %v1075_v10  ;;  %v1037_v1 = vmul.f32 %v6349_v0, %v6349_v0  ;;  %v6496_v10 = vpop.permute.xlu1 %863 }
 0x358   :  { %v6471_v50 = vpack.c.bf16 %v836_v52, %v835_v16  ;;  %v1042_v9 = vsel %vm630_vm0, %v1024_v6, 0.0  ;;  %7447 = vst [vmem:[#allocation51_spill] sm:$0xff] %v6496_v10  ;;  %v627_v16 = vmul.f32 %v6109_v4, %v6109_v4  ;;  %v658_v52 = vsel %vm630_vm0, %v623_v21, 0.0 }
 0x359   :  { %v1081_v47 = vsel %vm630_vm0, %v1037_v1, 0.0  ;;  %v1030_v21 = vmul.f32 %v6310_v60, %v6310_v60  ;;  %v895_v1 = vmul.f32 %v6496_v10, %v6496_v10 }
 0x35a   :  { %4939 = vmatprep.subr.msk.bf16.mxu0 %vm6143_vm1, %v6471_v50  ;;  %v670_v18 = vsel %vm630_vm0, %v627_v16, 0.0  ;;  %v625_v16 = vmul.f32 %v6225_v46, %v6225_v46 }
 0x35b   :  { %653 = vadd.xlane.f32.xlu0 %v652_v12  ;;  %904 = vadd.xlane.f32.xlu1 %v903_v59  ;;  %v889_v12 = vmul.f32 %v6164_v31, %v6164_v31  ;;  %v6504_v59 = vpop.permute.xlu0 %855  ;;  %v6506_v6 = vpop.permute.xlu1 %865 }
 0x35c   :  { %7448 = vst [vmem:[#allocation52_spill] sm:$0xff] %v6506_v6  ;;  %v893_v42 = vmul.f32 %v6504_v59, %v6504_v59 }
 0x35f   :  { %1043 = vadd.xlane.f32.xlu0 %v1042_v9  ;;  %916 = vadd.xlane.f32.xlu1 %v915_v7  ;;  %v909_v9 = vsel %vm630_vm0, %v889_v12, 0.0  ;;  %v1026_v7 = vmul.f32 %v6053_v44, %v6053_v44  ;;  %v927_v12 = vsel %vm630_vm0, %v895_v1, 0.0 }
 0x363   :  { %1055 = vadd.xlane.f32.xlu0 %v1054_v17  ;;  %1070 = vadd.xlane.f32.xlu1 %v1069_v5  ;;  %v921_v17 = vsel %vm630_vm0, %v893_v42, 0.0  ;;  %v1048_v5 = vsel %vm630_vm0, %v1026_v7, 0.0  ;;  %v629_v42 = vmul.f32 %v6290_v24, %v6290_v24  ;;  %v664_v7 = vsel %vm630_vm0, %v625_v16, 0.0 }
 0x365   :  { %v676_v32 = vsel %vm630_vm0, %v629_v42, 0.0  ;;  %v7454_v42 = vld [vmem:[#allocation46_spill] sm:$0xff] }
 0x367   :  { %659 = vadd.xlane.f32.xlu0 %v658_v52  ;;  %1082 = vadd.xlane.f32.xlu1 %v1081_v47  ;;  %v6520_v52 = vpop.permute.xlu1 %875 }
 0x368   :  { %7449 = vst [vmem:[#allocation53_spill] sm:$0xff] %v6520_v52  ;;  %v899_v47 = vmul.f32 %v6520_v52, %v6520_v52 }
 0x36b   :  { %671 = vadd.xlane.f32.xlu0 %v670_v18  ;;  %910 = vadd.xlane.f32.xlu1 %v909_v9  ;;  %v1060_v18 = vsel %vm630_vm0, %v1030_v21, 0.0  ;;  %v939_v9 = vsel %vm630_vm0, %v899_v47, 0.0  ;;  %v6535_v26 = vpop.permute.xlu1 %877  ;;  %v7452_v21 = vld [vmem:[#allocation48_spill] sm:$0xff]  ;;  %v7453_v47 = vld [vmem:[#allocation30_spill] sm:$0xff] }
 0x36c   :  { %v1036_v1 = vmul.f32 %v7452_v21, %v7452_v21 }
 0x36e   :  { %v1078_v16 = vsel %vm630_vm0, %v1036_v1, 0.0  ;;  %v1034_v1 = vmul.f32 %v6438_v35, %v6438_v35 }
 0x36f   :  { %922 = vadd.xlane.f32.xlu1 %v921_v17  ;;  %1049 = vadd.xlane.f32.xlu0 %v1048_v5  ;;  %v7450_v17 = vld [vmem:[#allocation47_spill] sm:$0xff] }
 0x370   :  { %v1032_v5 = vmul.f32 %v7450_v17, %v7450_v17  ;;  %7451 = vst [vmem:[#allocation47_spill] sm:$0xff] %v6535_v26 }
 0x373   :  { %928 = vadd.xlane.f32.xlu1 %v927_v12  ;;  %1061 = vadd.xlane.f32.xlu0 %v1060_v18  ;;  %v1066_v12 = vsel %vm630_vm0, %v1032_v5, 0.0 }
 0x377   :  { %940 = vadd.xlane.f32.xlu1 %v939_v9  ;;  %665 = vadd.xlane.f32.xlu0 %v664_v7  ;;  %v787_v18 = vpop.xlane.xlu1 %786  ;;  %v888_v9 = vmul.f32 %v7453_v47, %v7453_v47 }
 0x379   :  { %v906_v51 = vsel %vm630_vm0, %v888_v9, 0.0 }
 0x37b   :  { %677 = vadd.xlane.f32.xlu0 %v676_v32  ;;  %v892_v32 = vmul.f32 %v7454_v42, %v7454_v42 }
 0x37f   :  { %v636_v54 = vpop.xlane.xlu0 %635  ;;  %1067 = vadd.xlane.f32.xlu0 %v1066_v12 }
 0x380   :  { %5420 = vrsqrt.f32 %v636_v54 }
 0x381   :  { %5422 = vrsqrt.f32 %v787_v18  ;;  %v918_v18 = vsel %vm630_vm0, %v892_v32, 0.0 }
 0x383   :  { %v790_v7 = vpop.xlane.xlu0 %789  ;;  %1079 = vadd.xlane.f32.xlu0 %v1078_v16  ;;  %v7456_v16 = vld [vmem:[#allocation26_spill] sm:$0xff] }
 0x384   :  { %5424 = vrsqrt.f32 %v790_v7 }
 0x387   :  { %v6546_v52 = vpop.permute.xlu0 %867  ;;  %907 = vadd.xlane.f32.xlu0 %v906_v51 }
 0x388   :  { %7455 = vst [vmem:[#allocation48_spill] sm:$0xff] %v6546_v52  ;;  %v897_v54 = vmul.f32 %v6546_v52, %v6546_v52  ;;  %v1072_v52 = vsel %vm630_vm0, %v1034_v1, 0.0  ;;  %v7461_v1 = vld [vmem:[#allocation36_spill] sm:$0xff] }
 0x38a   :  { %v5421_v5 = vpop.eup %5420  ;;  %v933_v12 = vsel %vm630_vm0, %v897_v54, 0.0  ;;  %v1038_v54 = vmul.f32 %v6357_v61, %v6357_v61  ;;  %v890_v61 = vmul.f32 %v7461_v1, %v7461_v1 }
 0x38b   :  { %v696_v7 = vmul.f32 %v5421_v5, %v7456_v16  ;;  %v6555_v10 = vpop.permute.xlu0 %869  ;;  %934 = vadd.xlane.f32.xlu1 %v933_v12  ;;  %919 = vadd.xlane.f32.xlu0 %v918_v18  ;;  %v5423_v9 = vpop.eup %5422  ;;  %v7459_v5 = vld [vmem:[#allocation44_spill] sm:$0xff]  ;;  %v7460_v12 = vld [vmem:[#allocation45_spill] sm:$0xff] }
 0x38c   :  { %7457 = vst [vmem:[#allocation30_spill] sm:$0xff] %v6555_v10  ;;  %v837_v16 = vmul.f32 %v5423_v9, %v7459_v5  ;;  %v912_v9 = vsel %vm630_vm0, %v890_v61, 0.0  ;;  %v900_v5 = vmul.f32 %v6535_v26, %v6535_v26 }
 0x38d   :  { %4622 = vmatmul.mubr.msk.f32.vlgmr.msra.gmra.mrb[32].mxu0 %vm630_vm0, %v696_v7 }
 0x38e   :  { %v5425_v51 = vpop.eup %5424  ;;  %4942 = vmatpush3.bf16.xpose.msk.msra.mxu0 %vm6143_vm1, %v6471_v50  ;;  %v1084_v50 = vsel %vm630_vm0, %v1038_v54, 0.0  ;;  %v1219_v54 = vpop.xlane.xlu1 %1218 }
 0x38f   :  { %v6564_v32 = vpop.permute.xlu0 %879  ;;  %1073 = vadd.xlane.f32.xlu0 %v1072_v52  ;;  %v838_v18 = vmul.f32 %v5425_v51, %v7460_v12  ;;  %v894_v52 = vmul.f32 %v6482_v13, %v6482_v13  ;;  %v942_v12 = vsel %vm630_vm0, %v900_v5, 0.0 }
 0x390   :  { %7458 = vst [vmem:[#allocation46_spill] sm:$0xff] %v6564_v32  ;;  %v901_v7 = vmul.f32 %v6564_v32, %v6564_v32 }
 0x391   :  { %v4943_v40 = vpack.c.bf16 %v838_v18, %v837_v16  ;;  %v924_v51 = vsel %vm630_vm0, %v894_v52, 0.0 }
 0x392   :  { %v945_v0 = vsel %vm630_vm0, %v901_v7, 0.0  ;;  %v6590_v61 = vpop.permute.xlu1 %881 }
 0x393   :  { %946 = vadd.xlane.f32.xlu1 %v945_v0  ;;  %4945 = vmatprep.subr.msk.bf16.mxu0 %vm6143_vm1, %v4943_v40  ;;  %v896_v0 = vmul.f32 %v6506_v6, %v6506_v6  ;;  %7462 = vst [vmem:[#allocation26_spill] sm:$0xff] %v6590_v61  ;;  %v902_v18 = vmul.f32 %v6590_v61, %v6590_v61  ;;  %v7463_v6 = vld [vmem:[#allocation41_spill] sm:$0xff] }
 0x394   :  { %1085 = vadd.xlane.f32.xlu0 %v1084_v50 }
 0x395   :  { %v930_v16 = vsel %vm630_vm0, %v896_v0, 0.0  ;;  %v948_v50 = vsel %vm630_vm0, %v902_v18, 0.0 }
 0x396   :  { %4948 = vmatpush3.bf16.xpose.msk.msra.mxu0 %vm6143_vm1, %v4943_v40  ;;  %v898_v40 = vmul.f32 %v6555_v10, %v6555_v10 }
 0x398   :  { %913 = vadd.xlane.f32.xlu0 %v912_v9  ;;  %v936_v7 = vsel %vm630_vm0, %v898_v40, 0.0 }
 0x39c   :  { %925 = vadd.xlane.f32.xlu0 %v924_v51 }
 0x3a0   :  { %931 = vadd.xlane.f32.xlu0 %v930_v16 }
 0x3a4   :  { %943 = vadd.xlane.f32.xlu0 %v942_v12 }
 0x3a8   :  { %937 = vadd.xlane.f32.xlu0 %v936_v7 }
 0x3ac   :  { %949 = vadd.xlane.f32.xlu0 %v948_v50 }
 0x3b0   :  { %v639_v52 = vpop.xlane.xlu1 %638 }
 0x3b1   :  { %5426 = vrsqrt.f32 %v639_v52 }
 0x3b2   :  { %5428 = vrsqrt.f32 %v1219_v54 }
 0x3b4   :  { %v799_v9 = vpop.xlane.xlu1 %798 }
 0x3b8   :  { %v811_v0 = vpop.xlane.xlu1 %810 }
 0x3bb   :  { %v5427_v51 = vpop.eup %5426 }
 0x3bc   :  { %v651_v16 = vpop.xlane.xlu1 %650  ;;  %v697_v5 = vmul.f32 %v5427_v51, %v6003_v8  ;;  %v5429_v52 = vpop.eup %5428 }
 0x3bd   :  { %v1253_v8 = vmul.f32 %v5429_v52, %v7463_v6 }
 0x3be   :  { %4624 = vmatprep.mubr.msk.f32.mxu0 %vm630_vm0, %v697_v5 }
 0x3c0   :  { %v1222_v12 = vpop.xlane.xlu0 %1221  ;;  %v6598_v10 = vpop.xlane.xlu1 %1040 }
 0x3c1   :  { %5430 = vrsqrt.f32 %v1222_v12 }
 0x3c4   :  { %v642_v40 = vpop.xlane.xlu0 %641  ;;  %v6600_v7 = vpop.xlane.xlu1 %1052 }
 0x3c5   :  { %5432 = vrsqrt.f32 %v642_v40 }
 0x3c8   :  { %v793_v18 = vpop.xlane.xlu0 %792  ;;  %v657_v50 = vpop.xlane.xlu1 %656 }
 0x3c9   :  { %5434 = vrsqrt.f32 %v793_v18 }
 0x3cb   :  { %v5431_v61 = vpop.eup %5430 }
 0x3cc   :  { %v796_v32 = vpop.xlane.xlu0 %795  ;;  %v669_v26 = vpop.xlane.xlu1 %668  ;;  %v1254_v51 = vmul.f32 %v5431_v61, %v6219_v38 }
 0x3cd   :  { %5436 = vrsqrt.f32 %v796_v32 }
 0x3ce   :  { %5438 = vrsqrt.f32 %v669_v26  ;;  %v4919_v54 = vpack.c.bf16 %v1254_v51, %v1253_v8 }
 0x3cf   :  { %v5433_v5 = vpop.eup %5432 }
 0x3d0   :  { %v805_v12 = vpop.xlane.xlu0 %804  ;;  %4921 = vmatprep.subr.msk.bf16.mxu1 %vm6143_vm1, %v4919_v54  ;;  %v698_v40 = vmul.f32 %v5433_v5, %v6011_v11  ;;  %v6610_v18 = vpop.xlane.xlu1 %1046 }
 0x3d1   :  { %4924 = vmatpush3.bf16.xpose.msk.msra.mxu1 %vm6143_vm1, %v4919_v54  ;;  %5440 = vrsqrt.f32 %v805_v12 }
 0x3d2   :  { %4625 = vmatmul.mubr.msk.f32.gmra.mrb[34].mxu0 %vm630_vm0, %v698_v40 }
 0x3d3   :  { %v5435_v61 = vpop.eup %5434 }
 0x3d4   :  { %v808_v52 = vpop.xlane.xlu0 %807  ;;  %v839_v6 = vmul.f32 %v5435_v61, %v6119_v15  ;;  %v6617_v54 = vpop.xlane.xlu1 %1058 }
 0x3d5   :  { %5442 = vrsqrt.f32 %v808_v52 }
 0x3d7   :  { %v5437_v26 = vpop.eup %5436 }
 0x3d8   :  { %v5439_v32 = vpop.eup %5438  ;;  %v645_v38 = vpop.xlane.xlu0 %644  ;;  %4608 = vmatmul.mubr.msk.f32.vlgmr.msra.gmra.mrb[16].mxu1 %vm630_vm0, %v6411_v34  ;;  %v840_v11 = vmul.f32 %v5437_v26, %v6125_v19 }
 0x3d9   :  { %5444 = vrsqrt.f32 %v645_v38  ;;  %4610 = vmatprep.mubr.msk.f32.mxu1 %vm630_vm0, %v1253_v8  ;;  %v707_v12 = vmul.f32 %v5439_v32, %v6107_v62  ;;  %v663_v19 = vpop.xlane.xlu1 %662 }
 0x3da   :  { %v4949_v5 = vpack.c.bf16 %v840_v11, %v839_v6  ;;  %5446 = vrsqrt.f32 %v651_v16 }
 0x3db   :  { %v5441_v34 = vpop.eup %5440 }
 0x3dc   :  { %v648_v40 = vpop.xlane.xlu0 %647  ;;  %4611 = vmatmul.mubr.msk.f32.gmra.mrb[18].mxu1 %vm630_vm0, %v1254_v51  ;;  %4951 = vmatprep.subr.msk.bf16.mxu0 %vm6143_vm1, %v4949_v5  ;;  %v843_v8 = vmul.f32 %v5441_v34, %v6127_v20 }
 0x3dd   :  { %5448 = vrsqrt.f32 %v648_v40  ;;  %4663 = vmatprep.mubr.msk.f32.mxu1 %vm630_vm0, %v707_v12  ;;  %v675_v61 = vpop.xlane.xlu1 %674 }
 0x3de   :  { %5450 = vrsqrt.f32 %v799_v9 }
 0x3df   :  { %v5443_v15 = vpop.eup %5442 }
 0x3e0   :  { %v802_v38 = vpop.xlane.xlu0 %801  ;;  %v844_v6 = vmul.f32 %v5443_v15, %v6130_v23 }
 0x3e1   :  { %5452 = vrsqrt.f32 %v802_v38  ;;  %v6639_v11 = vpop.xlane.xlu1 %1064 }
 0x3e2   :  { %v4961_v62 = vpack.c.bf16 %v844_v6, %v843_v8  ;;  %5454 = vrsqrt.f32 %v811_v0 }
 0x3e3   :  { %v5445_v16 = vpop.eup %5444 }
 0x3e4   :  { %v814_v51 = vpop.xlane.xlu0 %813  ;;  %4963 = vmatprep.subr.msk.bf16.mxu1 %vm6143_vm1, %v4961_v62  ;;  %v699_v52 = vmul.f32 %v5445_v16, %v6097_v53  ;;  %v5447_v9 = vpop.eup %5446 }
 0x3e5   :  { %5456 = vrsqrt.f32 %v814_v51  ;;  %4966 = vmatpush3.bf16.xpose.msk.msra.mxu1 %vm6143_vm1, %v4961_v62  ;;  %v701_v32 = vmul.f32 %v5447_v9, %v6209_v30  ;;  %v6648_v8 = vpop.xlane.xlu1 %1076 }
 0x3e6   :  { %4635 = vmatprep.mubr.msk.f32.mxu0 %vm630_vm0, %v699_v52  ;;  %5458 = vrsqrt.f32 %v657_v50 }
 0x3e7   :  { %v5449_v20 = vpop.eup %5448 }
 0x3e8   :  { %v700_v23 = vmul.f32 %v5449_v20, %v6101_v55  ;;  %v654_v26 = vpop.xlane.xlu0 %653  ;;  %v5451_v0 = vpop.eup %5450 }
 0x3e9   :  { %5460 = vrsqrt.f32 %v654_v26  ;;  %v841_v55 = vmul.f32 %v5451_v0, %v6240_v2 }
 0x3ea   :  { %4636 = vmatmul.mubr.msk.f32.vlgmr.msra.gmra.mrb[36].mxu0 %vm630_vm0, %v700_v23  ;;  %5462 = vrsqrt.f32 %v6598_v10 }
 0x3eb   :  { %v5453_v53 = vpop.eup %5452  ;;  %4954 = vmatpush3.bf16.xpose.msk.msra.mxu0 %vm6143_vm1, %v4949_v5  ;;  %4638 = vmatprep.mubr.msk.f32.mxu0 %vm630_vm0, %v701_v32 }
 0x3ec   :  { %v1044_v50 = vpop.xlane.xlu0 %1043  ;;  %v842_v12 = vmul.f32 %v5453_v53, %v6242_v22  ;;  %v5455_v40 = vpop.eup %5454 }
 0x3ed   :  { %5464 = vrsqrt.f32 %v1044_v50  ;;  %v845_v10 = vmul.f32 %v5455_v40, %v6245_v25 }
 0x3ee   :  { %v4955_v30 = vpack.c.bf16 %v842_v12, %v841_v55  ;;  %5466 = vrsqrt.f32 %v6600_v7 }
 0x3ef   :  { %v5457_v34 = vpop.eup %5456 }
 0x3f0   :  { %v1056_v15 = vpop.xlane.xlu0 %1055  ;;  %4957 = vmatprep.subr.msk.bf16.mxu0 %vm6143_vm1, %v4955_v30  ;;  %v846_v5 = vmul.f32 %v5457_v34, %v6247_v43  ;;  %v5459_v38 = vpop.eup %5458 }
 0x3f1   :  { %5468 = vrsqrt.f32 %v1056_v15  ;;  %v703_v25 = vmul.f32 %v5459_v38, %v6103_v56 }
 0x3f2   :  { %v4967_v2 = vpack.c.bf16 %v846_v5, %v845_v10  ;;  %5470 = vrsqrt.f32 %v663_v19  ;;  %v905_v19 = vpop.xlane.xlu1 %904 }
 0x3f3   :  { %v5461_v22 = vpop.eup %5460  ;;  %4960 = vmatpush3.bf16.xpose.msk.msra.mxu0 %vm6143_vm1, %v4955_v30 }
 0x3f4   :  { %v660_v6 = vpop.xlane.xlu0 %659  ;;  %4969 = vmatprep.subr.msk.bf16.mxu1 %vm6143_vm1, %v4967_v2  ;;  %v702_v7 = vmul.f32 %v5461_v22, %v6282_v28  ;;  %v5463_v62 = vpop.eup %5462 }
 0x3f5   :  { %5472 = vrsqrt.f32 %v660_v6  ;;  %4972 = vmatpush3.bf16.xpose.msk.msra.mxu1 %vm6143_vm1, %v4967_v2  ;;  %v1103_v51 = vmul.f32 %v5463_v62, %v6045_v37 }
 0x3f6   :  { %4639 = vmatmul.mubr.msk.f32.gmra.mrb[38].mxu0 %vm630_vm0, %v702_v7  ;;  %5474 = vrsqrt.f32 %v675_v61  ;;  %v917_v0 = vpop.xlane.xlu1 %916 }
 0x3f7   :  { %v5465_v43 = vpop.eup %5464  ;;  %4649 = vmatprep.mubr.msk.f32.mxu0 %vm630_vm0, %v703_v25 }
 0x3f8   :  { %v672_v16 = vpop.xlane.xlu0 %671  ;;  %v1104_v52 = vmul.f32 %v5465_v43, %v6047_v39  ;;  %v5467_v28 = vpop.eup %5466 }
 0x3f9   :  { %5476 = vrsqrt.f32 %v672_v16  ;;  %v1107_v23 = vmul.f32 %v5467_v28, %v6286_v57 }
 0x3fa   :  { %v4973_v9 = vpack.c.bf16 %v1104_v52, %v1103_v51  ;;  %5478 = vrsqrt.f32 %v6610_v18 }
 0x3fb   :  { %v5469_v20 = vpop.eup %5468 }
 0x3fc   :  { %4975 = vmatprep.subr.msk.bf16.mxu0 %vm6143_vm1, %v4973_v9  ;;  %v1050_v56 = vpop.xlane.xlu0 %1049  ;;  %v1108_v61 = vmul.f32 %v5469_v20, %v6294_v48  ;;  %v5471_v26 = vpop.eup %5470 }
 0x3fd   :  { %5480 = vrsqrt.f32 %v1050_v56  ;;  %v705_v53 = vmul.f32 %v5471_v26, %v6215_v36  ;;  %v1071_v48 = vpop.xlane.xlu1 %1070 }
 0x3fe   :  { %v4985_v37 = vpack.c.bf16 %v1108_v61, %v1107_v23  ;;  %5482 = vrsqrt.f32 %v6617_v54 }
 0x3ff   :  { %v5473_v32 = vpop.eup %5472 }
 0x400   :  { %v704_v39 = vmul.f32 %v5473_v32, %v6105_v58  ;;  %4987 = vmatprep.subr.msk.bf16.mxu1 %vm6143_vm1, %v4985_v37  ;;  %v1062_v18 = vpop.xlane.xlu0 %1061  ;;  %v5475_v50 = vpop.eup %5474 }
 0x401   :  { %5484 = vrsqrt.f32 %v1062_v18  ;;  %v709_v55 = vmul.f32 %v5475_v50, %v6223_v45  ;;  %v1083_v15 = vpop.xlane.xlu1 %1082 }
 0x402   :  { %4650 = vmatmul.mubr.msk.f32.vlgmr.msra.gmra.mrb[40].mxu0 %vm630_vm0, %v704_v39  ;;  %5486 = vrsqrt.f32 %v905_v19 }
 0x403   :  { %v5477_v57 = vpop.eup %5476  ;;  %4978 = vmatpush3.bf16.xpose.msk.msra.mxu0 %vm6143_vm1, %v4973_v9  ;;  %4652 = vmatprep.mubr.msk.f32.mxu0 %vm630_vm0, %v705_v53 }
 0x404   :  { %v708_v54 = vmul.f32 %v5477_v57, %v6109_v4  ;;  %v666_v58 = vpop.xlane.xlu0 %665  ;;  %v5479_v12 = vpop.eup %5478 }
 0x405   :  { %5488 = vrsqrt.f32 %v666_v58  ;;  %v1105_v30 = vmul.f32 %v5479_v12, %v6049_v41  ;;  %v7464_v12 = vld [vmem:[#allocation49_spill] sm:$0xff] }
 0x406   :  { %4664 = vmatmul.mubr.msk.f32.vlgmr.msra.gmra.mrb[20].mxu1 %vm630_vm0, %v708_v54  ;;  %5490 = vrsqrt.f32 %v917_v0 }
 0x407   :  { %4990 = vmatpush3.bf16.xpose.msk.msra.mxu1 %vm6143_vm1, %v4985_v37  ;;  %4666 = vmatprep.mubr.msk.f32.mxu1 %vm630_vm0, %v709_v55  ;;  %v5481_v36 = vpop.eup %5480 }
 0x408   :  { %v678_v40 = vpop.xlane.xlu0 %677  ;;  %v1106_v4 = vmul.f32 %v5481_v36, %v6053_v44  ;;  %v5483_v34 = vpop.eup %5482 }
 0x409   :  { %5492 = vrsqrt.f32 %v678_v40  ;;  %v1109_v38 = vmul.f32 %v5483_v34, %v6334_v27 }
 0x40a   :  { %5494 = vrsqrt.f32 %v6639_v11  ;;  %v4979_v45 = vpack.c.bf16 %v1106_v4, %v1105_v30  ;;  %v911_v11 = vpop.xlane.xlu1 %910  ;;  %v7466_v30 = vld [vmem:[#allocation25_spill] sm:$0xff] }
 0x40b   :  { %v5485_v10 = vpop.eup %5484 }
 0x40c   :  { %v1068_v5 = vpop.xlane.xlu0 %1067  ;;  %4981 = vmatprep.subr.msk.bf16.mxu0 %vm6143_vm1, %v4979_v45  ;;  %v1110_v2 = vmul.f32 %v5485_v10, %v6310_v60  ;;  %v5487_v41 = vpop.eup %5486 }
 0x40d   :  { %5496 = vrsqrt.f32 %v1068_v5  ;;  %4984 = vmatpush3.bf16.xpose.msk.msra.mxu0 %vm6143_vm1, %v4979_v45  ;;  %v967_v27 = vmul.f32 %v5487_v41, %v6037_v33  ;;  %v7467_v5 = vld [vmem:[#allocation31_spill] sm:$0xff] }
 0x40e   :  { %5498 = vrsqrt.f32 %v6648_v8  ;;  %v4991_v44 = vpack.c.bf16 %v1110_v2, %v1109_v38  ;;  %v7468_v38 = vld [vmem:[#allocation37_spill] sm:$0xff]  ;;  %v7469_v41 = vld [vmem:[#allocation51_spill] sm:$0xff] }
 0x40f   :  { %v5489_v22 = vpop.eup %5488  ;;  %v5029_v2 = vpack.c.bf16 %v7468_v38, %v7467_v5 }
 0x410   :  { %v1080_v6 = vpop.xlane.xlu0 %1079  ;;  %4993 = vmatprep.subr.msk.bf16.mxu1 %vm6143_vm1, %v4991_v44  ;;  %v706_v7 = vmul.f32 %v5489_v22, %v6225_v46  ;;  %v5491_v62 = vpop.eup %5490 }
 0x411   :  { %5500 = vrsqrt.f32 %v1080_v6  ;;  %4996 = vmatpush3.bf16.xpose.msk.msra.mxu1 %vm6143_vm1, %v4991_v44  ;;  %v971_v19 = vmul.f32 %v5491_v62, %v6325_v14  ;;  %v923_v46 = vpop.xlane.xlu1 %922 }
 0x412   :  { %4653 = vmatmul.mubr.msk.f32.gmra.mrb[42].mxu0 %vm630_vm0, %v706_v7  ;;  %5502 = vrsqrt.f32 %v911_v11 }
 0x413   :  { %v5493_v60 = vpop.eup %5492  ;;  %4677 = vmatprep.mubr.msk.f32.mxu0 %vm630_vm0, %v967_v27 }
 0x414   :  { %v908_v8 = vpop.xlane.xlu0 %907  ;;  %v710_v25 = vmul.f32 %v5493_v60, %v6290_v24  ;;  %v5495_v43 = vpop.eup %5494  ;;  %v7471_v60 = vld [vmem:[#allocation52_spill] sm:$0xff] }
 0x415   :  { %5504 = vrsqrt.f32 %v908_v8  ;;  %v1111_v51 = vmul.f32 %v5495_v43, %v6328_v3  ;;  %v7472_v43 = vld [vmem:[#allocation48_spill] sm:$0xff] }
 0x416   :  { %4667 = vmatmul.mubr.msk.f32.gmra.mrb[22].mxu1 %vm630_vm0, %v710_v25  ;;  %5506 = vrsqrt.f32 %v923_v46 }
 0x417   :  { %v5497_v16 = vpop.eup %5496  ;;  %4691 = vmatprep.mubr.msk.f32.mxu1 %vm630_vm0, %v971_v19 }
 0x418   :  { %v920_v33 = vpop.xlane.xlu0 %919  ;;  %v1112_v52 = vmul.f32 %v5497_v16, %v7450_v17  ;;  %v5499_v28 = vpop.eup %5498 }
 0x419   :  { %5508 = vrsqrt.f32 %v920_v33  ;;  %v1115_v20 = vmul.f32 %v5499_v28, %v6330_v49  ;;  %v929_v17 = vpop.xlane.xlu1 %928 }
 0x41a   :  { %v4997_v9 = vpack.c.bf16 %v1112_v52, %v1111_v51  ;;  %5510 = vrsqrt.f32 %v1071_v48  ;;  %v7474_v51 = vld [vmem:[#allocation29_spill] sm:$0xff]  ;;  %v7475_v52 = vld [vmem:[#allocation46_spill] sm:$0xff] }
 0x41b   :  { %v5501_v24 = vpop.eup %5500 }
 0x41c   :  { %4999 = vmatprep.subr.msk.bf16.mxu0 %vm6143_vm1, %v4997_v9  ;;  %v1074_v14 = vpop.xlane.xlu0 %1073  ;;  %v1116_v56 = vmul.f32 %v5501_v24, %v7452_v21  ;;  %v5503_v23 = vpop.eup %5502  ;;  %v7477_v24 = vld [vmem:[#allocation39_spill] sm:$0xff] }
 0x41d   :  { %5512 = vrsqrt.f32 %v1074_v14  ;;  %v969_v37 = vmul.f32 %v5503_v23, %v6164_v31  ;;  %v941_v18 = vpop.xlane.xlu1 %940  ;;  %v7479_v23 = vld [vmem:[#allocation34_spill] sm:$0xff] }
 0x41e   :  { %v5009_v61 = vpack.c.bf16 %v1116_v56, %v1115_v20  ;;  %5514 = vrsqrt.f32 %v1083_v15  ;;  %v7478_v56 = vld [vmem:[#allocation32_spill] sm:$0xff] }
 0x41f   :  { %v5505_v3 = vpop.eup %5504 }
 0x420   :  { %v968_v26 = vmul.f32 %v5505_v3, %v7453_v47  ;;  %5011 = vmatprep.subr.msk.bf16.mxu1 %vm6143_vm1, %v5009_v61  ;;  %v5507_v49 = vpop.eup %5506  ;;  %v7480_v3 = vld [vmem:[#allocation30_spill] sm:$0xff] }
 0x421   :  { %v1086_v0 = vpop.xlane.xlu0 %1085  ;;  %v973_v53 = vmul.f32 %v5507_v49, %v6504_v59  ;;  %v935_v54 = vpop.xlane.xlu1 %934 }
 0x422   :  { %5516 = vrsqrt.f32 %v1086_v0  ;;  %4678 = vmatmul.mubr.msk.f32.vlgmr.msra.gmra.mrb[44].mxu0 %vm630_vm0, %v968_v26  ;;  %v7481_v26 = vld [vmem:[#allocation33_spill] sm:$0xff]  ;;  %v7482_v0 = vld [vmem:[#allocation35_spill] sm:$0xff] }
 0x423   :  { %5002 = vmatpush3.bf16.xpose.msk.msra.mxu0 %vm6143_vm1, %v4997_v9  ;;  %4680 = vmatprep.mubr.msk.f32.mxu0 %vm630_vm0, %v969_v37  ;;  %v5509_v21 = vpop.eup %5508  ;;  %5518 = vrsqrt.f32 %v929_v17  ;;  %v7476_v9 = vld [vmem:[#allocation38_spill] sm:$0xff]  ;;  %v6769_v37 = vpack.c.bf16 %v7482_v0, %v7481_v26 }
 0x424   :  { %v5511_v32 = vpop.eup %5510  ;;  %v972_v47 = vmul.f32 %v5509_v21, %v7454_v42  ;;  %v5033_v14 = vpack.c.bf16 %v7477_v24, %v7476_v9  ;;  %v7483_v21 = vld [vmem:[#allocation26_spill] sm:$0xff] }
 0x425   :  { %v914_v39 = vpop.xlane.xlu0 %913  ;;  %v1113_v50 = vmul.f32 %v5511_v32, %v6304_v63  ;;  %v7465_v63 = vld [vmem:[#allocation50_spill] sm:$0xff] }
 0x426   :  { %5520 = vrsqrt.f32 %v914_v39  ;;  %4692 = vmatmul.mubr.msk.f32.vlgmr.msra.gmra.mrb[24].mxu1 %vm630_vm0, %v972_v47 }
 0x427   :  { %v5513_v31 = vpop.eup %5512  ;;  %5014 = vmatpush3.bf16.xpose.msk.msra.mxu1 %vm6143_vm1, %v5009_v61  ;;  %4694 = vmatprep.mubr.msk.f32.mxu1 %vm630_vm0, %v973_v53  ;;  %5522 = vrsqrt.f32 %v941_v18  ;;  %v6761_v61 = vpack.c.bf16 %v7479_v23, %v7478_v56 }
 0x428   :  { %v1114_v57 = vmul.f32 %v5513_v31, %v6438_v35  ;;  %v5515_v42 = vpop.eup %5514  ;;  %v947_v35 = vpop.xlane.xlu1 %946 }
 0x429   :  { %v926_v48 = vpop.xlane.xlu0 %925  ;;  %v1117_v36 = vmul.f32 %v5515_v42, %v7464_v12 }
 0x42a   :  { %5524 = vrsqrt.f32 %v926_v48  ;;  %v5003_v58 = vpack.c.bf16 %v1114_v57, %v1113_v50 }
 0x42b   :  { %5526 = vrsqrt.f32 %v935_v54 }
 0x42c   :  { %v5517_v55 = vpop.eup %5516  ;;  %5005 = vmatprep.subr.msk.bf16.mxu0 %vm6143_vm1, %v5003_v58 }
 0x42d   :  { %v932_v59 = vpop.xlane.xlu0 %931  ;;  %5008 = vmatpush3.bf16.xpose.msk.msra.mxu0 %vm6143_vm1, %v5003_v58  ;;  %v1118_v40 = vmul.f32 %v5517_v55, %v7465_v63  ;;  %v5519_v4 = vpop.eup %5518 }
 0x42e   :  { %5528 = vrsqrt.f32 %v932_v59  ;;  %5022 = vmatprep.subr.bf16.mxu0 %v7466_v30  ;;  %v975_v44 = vmul.f32 %v5519_v4, %v7469_v41 }
 0x42f   :  { %v5015_v34 = vpack.c.bf16 %v1118_v40, %v1117_v36  ;;  %5530 = vrsqrt.f32 %v947_v35 }
 0x430   :  { %v5521_v15 = vpop.eup %5520 }
 0x431   :  { %5017 = vmatprep.subr.msk.bf16.mxu1 %vm6143_vm1, %v5015_v34  ;;  %v944_v45 = vpop.xlane.xlu0 %943  ;;  %v970_v10 = vmul.f32 %v5521_v15, %v7461_v1  ;;  %v5523_v22 = vpop.eup %5522  ;;  %v7470_v1 = vld [vmem:[#allocation53_spill] sm:$0xff] }
 0x432   :  { %5532 = vrsqrt.f32 %v944_v45  ;;  %5020 = vmatpush3.bf16.xpose.msk.msra.mxu1 %vm6143_vm1, %v5015_v34  ;;  %v979_v62 = vmul.f32 %v5523_v22, %v7470_v1 }
 0x433   :  { %4681 = vmatmul.mubr.msk.f32.gmra.mrb[46].mxu0 %vm630_vm0, %v970_v10  ;;  %5030 = vmatprep.subr.bf16.mxu1 %v5029_v2 }
 0x434   :  { %v5525_v11 = vpop.eup %5524  ;;  %4705 = vmatprep.mubr.msk.f32.mxu0 %vm630_vm0, %v975_v44 }
 0x435   :  { %v938_v6 = vpop.xlane.xlu0 %937  ;;  %v974_v7 = vmul.f32 %v5525_v11, %v6482_v13  ;;  %v5527_v27 = vpop.eup %5526  ;;  %v7473_v13 = vld [vmem:[#allocation47_spill] sm:$0xff] }
 0x436   :  { %5534 = vrsqrt.f32 %v938_v6  ;;  %v977_v19 = vmul.f32 %v5527_v27, %v7472_v43 }
 0x437   :  { %4695 = vmatmul.mubr.msk.f32.gmra.mrb[26].mxu1 %vm630_vm0, %v974_v7 }
 0x438   :  { %v5529_v29 = vpop.eup %5528  ;;  %4719 = vmatprep.mubr.msk.f32.mxu1 %vm630_vm0, %v979_v62 }
 0x439   :  { %v976_v8 = vmul.f32 %v5529_v29, %v7471_v60  ;;  %v950_v25 = vpop.xlane.xlu0 %949  ;;  %v5531_v46 = vpop.eup %5530 }
 0x43a   :  { %5536 = vrsqrt.f32 %v950_v25  ;;  %v981_v28 = vmul.f32 %v5531_v46, %v7475_v52 }
 0x43b   :  { %4706 = vmatmul.mubr.msk.f32.vlgmr.msra.gmra.mrb[48].mxu0 %vm630_vm0, %v976_v8 }
 0x43c   :  { %v5533_v16 = vpop.eup %5532  ;;  %5024 = vmatpush3.bf16.msra.mxu0 %v7466_v30  ;;  %4708 = vmatprep.mubr.msk.f32.mxu0 %vm630_vm0, %v977_v19 }
 0x43d   :  { %v980_v33 = vmul.f32 %v5533_v16, %v7473_v13  ;;  %5026 = vmatprep.subr.bf16.mxu0 %v7474_v51 }
 0x43f   :  { %4720 = vmatmul.mubr.msk.f32.vlgmr.msra.gmra.mrb[28].mxu1 %vm630_vm0, %v980_v33 }
 0x440   :  { %v5535_v20 = vpop.eup %5534  ;;  %5028 = vmatpush3.bf16.msra.mxu0 %v7474_v51  ;;  %5032 = vmatpush3.bf16.msra.mxu1 %v5029_v2 }
 0x441   :  { %4722 = vmatprep.mubr.msk.f32.mxu1 %vm630_vm0, %v981_v28  ;;  %5034 = vmatprep.subr.bf16.mxu1 %v5033_v14  ;;  %v978_v17 = vmul.f32 %v5535_v20, %v7480_v3 }
 0x442   :  { %5038 = vmatprep.subr.bf16.mxu0 %v6761_v61 }
 0x443   :  { %4709 = vmatmul.mubr.msk.f32.gmra.mrb[50].mxu0 %vm630_vm0, %v978_v17 }
 0x444   :  { %v5537_v49 = vpop.eup %5536  ;;  %5036 = vmatpush3.bf16.msra.mxu1 %v5033_v14 }
 0x445   :  { %5046 = vmatprep.subr.bf16.mxu1 %v6769_v37  ;;  %v982_v32 = vmul.f32 %v5537_v49, %v7483_v21 }
 0x447   :  { %4723 = vmatmul.mubr.msk.f32.gmra.mrb[30].mxu1 %vm630_vm0, %v982_v32 }
 0x460   :  { %v4623_v47 = vpop.f32.mrb[32].mxu0 }
 0x461   :  { %v1733_v39 = vpop.f32.mrb[33].mxu0  ;;  %v6776_v53 = vmul.f32 25.0, %v4623_v47 }
 0x462   :  { %v6774_v18 = vmul.f32 25.0, %v1733_v39 }
 0x463   :  { %v2550_v50 = vsel %vm630_vm0, %v6776_v53, -inf }
 0x464   :  { %v2547_v31 = vsel %vm630_vm0, %v6774_v18, -inf }
 0x465   :  { %2548 = vmax.xlane.f32.xlu1 %v2547_v31 }
 0x469   :  { %2551 = vmax.xlane.f32.xlu1 %v2550_v50 }
 0x4a5   :  { %v4626_v57 = vpop.f32.mrb[34].mxu0 }
 0x4a6   :  { %v1743_v48 = vpop.f32.mrb[35].mxu0  ;;  %v6784_v54 = vmul.f32 25.0, %v4626_v57 }
 0x4a7   :  { %v6782_v42 = vmul.f32 25.0, %v1743_v48 }
 0x4a8   :  { %v2556_v12 = vsel %vm630_vm0, %v6784_v54, -inf }
 0x4a9   :  { %v2553_v58 = vsel %vm630_vm0, %v6782_v42, -inf }
 0x4aa   :  { %2554 = vmax.xlane.f32.xlu1 %v2553_v58 }
 0x4ab   :  { %v6788_v55 = vpop.f32.mrb[16].mxu1 }
 0x4ac   :  { %v6790_v59 = vpop.f32.mrb[17].mxu1 }
 0x4ae   :  { %2557 = vmax.xlane.f32.xlu1 %v2556_v12 }
 0x4af   :  { %v6794_v36 = vpop.f32.mrb[18].mxu1 }
 0x4b0   :  { %v6796_v63 = vpop.f32.mrb[19].mxu1 }
 0x4bd   :  { %v4637_v40 = vpop.f32.mrb[36].mxu0 }
 0x4be   :  { %v6798_v35 = vmul.f32 25.0, %v4637_v40  ;;  %v1842_v30 = vpop.f32.mrb[37].mxu0 }
 0x4bf   :  { %v6800_v4 = vmul.f32 25.0, %v1842_v30 }
 0x4c0   :  { %v2562_v34 = vsel %vm630_vm0, %v6798_v35, -inf }
 0x4c1   :  { %2563 = vmax.xlane.f32.xlu1 %v2562_v34  ;;  %v2559_v15 = vsel %vm630_vm0, %v6800_v4, -inf }
 0x4c2   :  { %2560 = vmax.xlane.f32.xlu0 %v2559_v15 }
 0x4c9   :  { %v4640_v45 = vpop.f32.mrb[38].mxu0 }
 0x4ca   :  { %v6806_v10 = vmul.f32 25.0, %v4640_v45  ;;  %v1852_v5 = vpop.f32.mrb[39].mxu0 }
 0x4cb   :  { %v6808_v38 = vmul.f32 25.0, %v1852_v5 }
 0x4cc   :  { %v2568_v2 = vsel %vm630_vm0, %v6806_v10, -inf }
 0x4cd   :  { %2569 = vmax.xlane.f32.xlu1 %v2568_v2  ;;  %v2565_v41 = vsel %vm630_vm0, %v6808_v38, -inf }
 0x4ce   :  { %2566 = vmax.xlane.f32.xlu0 %v2565_v41 }
 0x4d5   :  { %v4651_v44 = vpop.f32.mrb[40].mxu0 }
 0x4d6   :  { %v6814_v22 = vmul.f32 25.0, %v4651_v44  ;;  %v1951_v11 = vpop.f32.mrb[41].mxu0 }
 0x4d7   :  { %v6816_v6 = vmul.f32 25.0, %v1951_v11 }
 0x4d8   :  { %v2574_v7 = vsel %vm630_vm0, %v6814_v22, -inf }
 0x4d9   :  { %v4665_v1 = vpop.f32.mrb[20].mxu1  ;;  %2575 = vmax.xlane.f32.xlu1 %v2574_v7  ;;  %v2571_v27 = vsel %vm630_vm0, %v6816_v6, -inf }
 0x4da   :  { %v2060_v62 = vpop.f32.mrb[21].mxu1  ;;  %v6842_v26 = vmul.f32 25.0, %v4665_v1 }
 0x4db   :  { %v6846_v49 = vmul.f32 25.0, %v2060_v62 }
 0x4dc   :  { %v2586_v50 = vsel %vm630_vm0, %v6842_v26, -inf }
 0x4dd   :  { %2572 = vmax.xlane.f32.xlu1 %v2571_v27  ;;  %v2583_v48 = vsel %vm630_vm0, %v6846_v49, -inf }
 0x4e5   :  { %v4654_v29 = vpop.f32.mrb[42].mxu0 }
 0x4e6   :  { %v6822_v60 = vmul.f32 25.0, %v4654_v29  ;;  %v1961_v8 = vpop.f32.mrb[43].mxu0 }
 0x4e7   :  { %v6824_v25 = vmul.f32 25.0, %v1961_v8 }
 0x4e8   :  { %v2580_v19 = vsel %vm630_vm0, %v6822_v60, -inf }
 0x4e9   :  { %v4668_v43 = vpop.f32.mrb[22].mxu1  ;;  %2581 = vmax.xlane.f32.xlu1 %v2580_v19  ;;  %v2577_v16 = vsel %vm630_vm0, %v6824_v25, -inf }
 0x4ea   :  { %v2070_v46 = vpop.f32.mrb[23].mxu1  ;;  %v6872_v62 = vmul.f32 25.0, %v4668_v43 }
 0x4eb   :  { %v6862_v15 = vmul.f32 25.0, %v2070_v46 }
 0x4ed   :  { %2578 = vmax.xlane.f32.xlu1 %v2577_v16  ;;  %v2592_v16 = vsel %vm630_vm0, %v6872_v62, -inf }
 0x4f2   :  { %v2549_v56 = vpop.xlane.xlu1 %2548 }
 0x4f3   :  { %v2595_v39 = vsub.f32 %v6774_v18, %v2549_v56 }
 0x4f5   :  { %v4679_v13 = vpop.f32.mrb[44].mxu0  ;;  %v2611_v40 = vmul.f32 1.442695, %v2595_v39 }
 0x4f6   :  { %v6830_v33 = vmul.f32 25.0, %v4679_v13  ;;  %v2185_v51 = vpop.f32.mrb[45].mxu0  ;;  %v2552_v31 = vpop.xlane.xlu1 %2551 }
 0x4f7   :  { %v6832_v52 = vmul.f32 25.0, %v2185_v51  ;;  %v2596_v30 = vsub.f32 %v6776_v53, %v2552_v31  ;;  %5538 = vpow2.f32 %v2611_v40  ;;  %v2589_v53 = vsel %vm630_vm0, %v6862_v15, -inf }
 0x4f8   :  { %v2726_v28 = vsel %vm630_vm0, %v6830_v33, -inf }
 0x4f9   :  { %2727 = vmax.xlane.f32.xlu1 %v2726_v28  ;;  %v2723_v9 = vsel %vm630_vm0, %v6832_v52, -inf  ;;  %v4693_v24 = vpop.f32.mrb[24].mxu1  ;;  %v2613_v41 = vmul.f32 1.442695, %v2596_v30 }
 0x4fa   :  { %2724 = vmax.xlane.f32.xlu0 %v2723_v9  ;;  %v2294_v14 = vpop.f32.mrb[25].mxu1  ;;  %v6876_v29 = vmul.f32 25.0, %v4693_v24 }
 0x4fb   :  { %5540 = vpow2.f32 %v2613_v41  ;;  %v6884_v51 = vmul.f32 25.0, %v2294_v14 }
 0x4fc   :  { %v2738_v43 = vsel %vm630_vm0, %v6876_v29, -inf }
 0x501   :  { %v6882_v13 = vpop.eup %5538 }
 0x502   :  { %v2643_v28 = vsel %vm630_vm0, %v6882_v13, 0.0 }
 0x505   :  { %v6890_v9 = vpop.eup %5540 }
 0x506   :  { %v4682_v20 = vpop.f32.mrb[46].mxu0  ;;  %v2646_v14 = vsel %vm630_vm0, %v6890_v9, 0.0 }
 0x507   :  { %v6838_v23 = vmul.f32 25.0, %v4682_v20  ;;  %v2195_v3 = vpop.f32.mrb[47].mxu0  ;;  %v2735_v20 = vsel %vm630_vm0, %v6884_v51, -inf }
 0x508   :  { %v6840_v17 = vmul.f32 25.0, %v2195_v3 }
 0x509   :  { %v2732_v0 = vsel %vm630_vm0, %v6838_v23, -inf }
 0x50a   :  { %v4696_v21 = vpop.f32.mrb[26].mxu1  ;;  %2733 = vmax.xlane.f32.xlu1 %v2732_v0  ;;  %v2729_v32 = vsel %vm630_vm0, %v6840_v17, -inf }
 0x50b   :  { %v2304_v47 = vpop.f32.mrb[27].mxu1  ;;  %2730 = vmax.xlane.f32.xlu0 %v2729_v32  ;;  %v6892_v24 = vmul.f32 25.0, %v4696_v21 }
 0x50c   :  { %v6898_v56 = vmul.f32 25.0, %v2304_v47 }
 0x50d   :  { %v2744_v3 = vsel %vm630_vm0, %v6892_v24, -inf }
 0x50e   :  { %v4707_v57 = vpop.f32.mrb[48].mxu0  ;;  %2587 = vmax.xlane.f32.xlu1 %v2586_v50  ;;  %v2741_v21 = vsel %vm630_vm0, %v6898_v56, -inf }
 0x50f   :  { %v6855_v58 = vmul.f32 25.0, %v4707_v57  ;;  %2584 = vmax.xlane.f32.xlu0 %v2583_v48  ;;  %v2403_v12 = vpop.f32.mrb[49].mxu0 }
 0x510   :  { %v6858_v34 = vmul.f32 25.0, %v2403_v12 }
 0x511   :  { %v2750_v18 = vsel %vm630_vm0, %v6855_v58, -inf }
 0x512   :  { %v4721_v45 = vpop.f32.mrb[28].mxu1  ;;  %2751 = vmax.xlane.f32.xlu1 %v2750_v18  ;;  %v2747_v5 = vsel %vm630_vm0, %v6858_v34, -inf }
 0x513   :  { %v2512_v2 = vpop.f32.mrb[29].mxu1  ;;  %2748 = vmax.xlane.f32.xlu0 %v2747_v5  ;;  %v6902_v0 = vmul.f32 25.0, %v4721_v45 }
 0x514   :  { %v6906_v32 = vmul.f32 25.0, %v2512_v2 }
 0x515   :  { %v2762_v39 = vsel %vm630_vm0, %v6902_v0, -inf }
 0x516   :  { %v4710_v44 = vpop.f32.mrb[50].mxu0  ;;  %v2759_v47 = vsel %vm630_vm0, %v6906_v32, -inf }
 0x517   :  { %v6868_v11 = vmul.f32 25.0, %v4710_v44  ;;  %2590 = vmax.xlane.f32.xlu0 %v2589_v53  ;;  %v2413_v7 = vpop.f32.mrb[51].mxu0 }
 0x518   :  { %v6870_v1 = vmul.f32 25.0, %v2413_v7 }
 0x519   :  { %v2756_v27 = vsel %vm630_vm0, %v6868_v11, -inf }
 0x51a   :  { %v4724_v8 = vpop.f32.mrb[30].mxu1  ;;  %2757 = vmax.xlane.f32.xlu1 %v2756_v27  ;;  %v2753_v19 = vsel %vm630_vm0, %v6870_v1, -inf }
 0x51b   :  { %v2522_v46 = vpop.f32.mrb[31].mxu1  ;;  %2754 = vmax.xlane.f32.xlu0 %v2753_v19  ;;  %v6914_v50 = vmul.f32 25.0, %v4724_v8 }
 0x51c   :  { %v6910_v31 = vmul.f32 25.0, %v2522_v46 }
 0x51d   :  { %v2768_v30 = vsel %vm630_vm0, %v6914_v50, -inf }
 0x51e   :  { %2593 = vmax.xlane.f32.xlu1 %v2592_v16  ;;  %v2765_v57 = vsel %vm630_vm0, %v6910_v31, -inf }
 0x51f   :  { %2739 = vmax.xlane.f32.xlu0 %v2738_v43 }
 0x522   :  { %2644 = vadd.xlane.f32.xlu1 %v2643_v28 }
 0x523   :  { %2736 = vmax.xlane.f32.xlu0 %v2735_v20 }
 0x526   :  { %2647 = vadd.xlane.f32.xlu1 %v2646_v14 }
 0x527   :  { %2745 = vmax.xlane.f32.xlu0 %v2744_v3 }
 0x52b   :  { %2742 = vmax.xlane.f32.xlu0 %v2741_v21 }
 0x52f   :  { %2763 = vmax.xlane.f32.xlu0 %v2762_v39 }
 0x533   :  { %2760 = vmax.xlane.f32.xlu0 %v2759_v47 }
 0x537   :  { %2766 = vmax.xlane.f32.xlu0 %v2765_v57  ;;  %v2555_v48 = vpop.xlane.xlu1 %2554 }
 0x538   :  { %v2597_v12 = vsub.f32 %v6782_v42, %v2555_v48 }
 0x53a   :  { %v2615_v40 = vmul.f32 1.442695, %v2597_v12 }
 0x53b   :  { %2769 = vmax.xlane.f32.xlu0 %v2768_v30  ;;  %v2558_v18 = vpop.xlane.xlu1 %2557 }
 0x53c   :  { %5542 = vpow2.f32 %v2615_v40  ;;  %v2598_v45 = vsub.f32 %v6784_v54, %v2558_v18 }
 0x53e   :  { %v2617_v5 = vmul.f32 1.442695, %v2598_v45 }
 0x540   :  { %5544 = vpow2.f32 %v2617_v5 }
 0x546   :  { %v6922_v2 = vpop.eup %5542 }
 0x547   :  { %v2649_v41 = vsel %vm630_vm0, %v6922_v2, 0.0 }
 0x548   :  { %2650 = vadd.xlane.f32.xlu1 %v2649_v41 }
 0x54a   :  { %v6926_v44 = vpop.eup %5544 }
 0x54b   :  { %v2652_v42 = vsel %vm630_vm0, %v6926_v44, 0.0 }
 0x54c   :  { %2653 = vadd.xlane.f32.xlu1 %v2652_v42 }
 0x54e   :  { %v2564_v53 = vpop.xlane.xlu1 %2563 }
 0x54f   :  { %v2600_v7 = vsub.f32 %v6798_v35, %v2564_v53  ;;  %v2561_v27 = vpop.xlane.xlu0 %2560 }
 0x550   :  { %v2599_v54 = vsub.f32 %v6800_v4, %v2561_v27 }
 0x551   :  { %v2621_v8 = vmul.f32 1.442695, %v2600_v7 }
 0x552   :  { %v2619_v19 = vmul.f32 1.442695, %v2599_v54 }
 0x553   :  { %5546 = vpow2.f32 %v2621_v8 }
 0x554   :  { %5548 = vpow2.f32 %v2619_v19 }
 0x55a   :  { %v2570_v46 = vpop.xlane.xlu1 %2569 }
 0x55b   :  { %v2602_v16 = vsub.f32 %v6806_v10, %v2570_v46  ;;  %v2567_v43 = vpop.xlane.xlu0 %2566 }
 0x55c   :  { %v2601_v28 = vsub.f32 %v6808_v38, %v2567_v43 }
 0x55d   :  { %v6934_v20 = vpop.eup %5546  ;;  %v2625_v14 = vmul.f32 1.442695, %v2602_v16 }
 0x55e   :  { %v6936_v3 = vpop.eup %5548  ;;  %v2623_v21 = vmul.f32 1.442695, %v2601_v28  ;;  %v2658_v35 = vsel %vm630_vm0, %v6934_v20, 0.0 }
 0x55f   :  { %5550 = vpow2.f32 %v2625_v14  ;;  %2659 = vadd.xlane.f32.xlu1 %v2658_v35  ;;  %v2655_v4 = vsel %vm630_vm0, %v6936_v3, 0.0 }
 0x560   :  { %5552 = vpow2.f32 %v2623_v21  ;;  %2656 = vadd.xlane.f32.xlu0 %v2655_v4 }
 0x566   :  { %v2576_v10 = vpop.xlane.xlu1 %2575 }
 0x567   :  { %v2604_v39 = vsub.f32 %v6814_v22, %v2576_v10 }
 0x569   :  { %v6943_v38 = vpop.eup %5550  ;;  %v2629_v47 = vmul.f32 1.442695, %v2604_v39 }
 0x56a   :  { %v6945_v57 = vpop.eup %5552  ;;  %v2573_v48 = vpop.xlane.xlu1 %2572  ;;  %v2664_v12 = vsel %vm630_vm0, %v6943_v38, 0.0 }
 0x56b   :  { %5554 = vpow2.f32 %v2629_v47  ;;  %v2603_v40 = vsub.f32 %v6816_v6, %v2573_v48  ;;  %2665 = vadd.xlane.f32.xlu1 %v2664_v12  ;;  %v2661_v30 = vsel %vm630_vm0, %v6945_v57, 0.0 }
 0x56c   :  { %2662 = vadd.xlane.f32.xlu0 %v2661_v30 }
 0x56d   :  { %v2627_v18 = vmul.f32 1.442695, %v2603_v40 }
 0x56f   :  { %5556 = vpow2.f32 %v2627_v18 }
 0x575   :  { %v6952_v22 = vpop.eup %5554 }
 0x576   :  { %v2670_v45 = vsel %vm630_vm0, %v6952_v22, 0.0  ;;  %v2582_v5 = vpop.xlane.xlu1 %2581 }
 0x577   :  { %2671 = vadd.xlane.f32.xlu1 %v2670_v45  ;;  %v2606_v41 = vsub.f32 %v6822_v60, %v2582_v5 }
 0x579   :  { %v6957_v42 = vpop.eup %5556  ;;  %v2633_v53 = vmul.f32 1.442695, %v2606_v41 }
 0x57a   :  { %v2667_v6 = vsel %vm630_vm0, %v6957_v42, 0.0  ;;  %v2579_v7 = vpop.xlane.xlu1 %2578 }
 0x57b   :  { %2668 = vadd.xlane.f32.xlu1 %v2667_v6  ;;  %5558 = vpow2.f32 %v2633_v53  ;;  %v2605_v27 = vsub.f32 %v6824_v25, %v2579_v7 }
 0x57d   :  { %v2631_v54 = vmul.f32 1.442695, %v2605_v27 }
 0x57f   :  { %5560 = vpow2.f32 %v2631_v54 }
 0x585   :  { %v6962_v8 = vpop.eup %5558 }
 0x586   :  { %v2728_v19 = vpop.xlane.xlu1 %2727  ;;  %v2676_v60 = vsel %vm630_vm0, %v6962_v8, 0.0 }
 0x587   :  { %v2772_v46 = vsub.f32 %v6830_v33, %v2728_v19  ;;  %v2725_v16 = vpop.xlane.xlu0 %2724  ;;  %2677 = vadd.xlane.f32.xlu1 %v2676_v60 }
 0x588   :  { %v2771_v43 = vsub.f32 %v6832_v52, %v2725_v16 }
 0x589   :  { %v2789_v28 = vmul.f32 1.442695, %v2772_v46  ;;  %v6968_v14 = vpop.eup %5560 }
 0x58a   :  { %v2787_v21 = vmul.f32 1.442695, %v2771_v43  ;;  %v2673_v25 = vsel %vm630_vm0, %v6968_v14, 0.0 }
 0x58b   :  { %5562 = vpow2.f32 %v2789_v28  ;;  %2674 = vadd.xlane.f32.xlu1 %v2673_v25 }
 0x58c   :  { %5564 = vpow2.f32 %v2787_v21 }
 0x595   :  { %v6972_v35 = vpop.eup %5562 }
 0x596   :  { %v6974_v33 = vpop.eup %5564  ;;  %v2822_v4 = vsel %vm630_vm0, %v6972_v35, 0.0 }
 0x597   :  { %v2734_v10 = vpop.xlane.xlu1 %2733  ;;  %2823 = vadd.xlane.f32.xlu1 %v2822_v4  ;;  %v2819_v52 = vsel %vm630_vm0, %v6974_v33, 0.0 }
 0x598   :  { %v2774_v39 = vsub.f32 %v6838_v23, %v2734_v10  ;;  %v2731_v47 = vpop.xlane.xlu0 %2730  ;;  %2820 = vadd.xlane.f32.xlu0 %v2819_v52 }
 0x599   :  { %v2773_v48 = vsub.f32 %v6840_v17, %v2731_v47 }
 0x59a   :  { %v2793_v12 = vmul.f32 1.442695, %v2774_v39 }
 0x59b   :  { %v2791_v40 = vmul.f32 1.442695, %v2773_v48  ;;  %v2588_v30 = vpop.xlane.xlu1 %2587 }
 0x59c   :  { %5566 = vpow2.f32 %v2793_v12  ;;  %v2608_v18 = vsub.f32 %v6842_v26, %v2588_v30  ;;  %v2585_v45 = vpop.xlane.xlu0 %2584 }
 0x59d   :  { %5568 = vpow2.f32 %v2791_v40  ;;  %v2607_v5 = vsub.f32 %v6846_v49, %v2585_v45 }
 0x59e   :  { %v2637_v41 = vmul.f32 1.442695, %v2608_v18 }
 0x59f   :  { %v2635_v53 = vmul.f32 1.442695, %v2607_v5  ;;  %v2752_v6 = vpop.xlane.xlu1 %2751 }
 0x5a0   :  { %5570 = vpow2.f32 %v2637_v41  ;;  %v2780_v23 = vsub.f32 %v6855_v58, %v2752_v6  ;;  %v2749_v7 = vpop.xlane.xlu0 %2748 }
 0x5a1   :  { %5572 = vpow2.f32 %v2635_v53  ;;  %v2779_v17 = vsub.f32 %v6858_v34, %v2749_v7 }
 0x5a2   :  { %v2805_v27 = vmul.f32 1.442695, %v2780_v23 }
 0x5a3   :  { %v2803_v54 = vmul.f32 1.442695, %v2779_v17 }
 0x5a4   :  { %5574 = vpow2.f32 %v2805_v27  ;;  %v2591_v19 = vpop.xlane.xlu0 %2590 }
 0x5a5   :  { %5576 = vpow2.f32 %v2803_v54  ;;  %v2609_v26 = vsub.f32 %v6862_v15, %v2591_v19 }
 0x5a6   :  { %v6987_v46 = vpop.eup %5566 }
 0x5a7   :  { %v6989_v49 = vpop.eup %5568  ;;  %v2639_v16 = vmul.f32 1.442695, %v2609_v26  ;;  %v2758_v60 = vpop.xlane.xlu1 %2757  ;;  %v2828_v58 = vsel %vm630_vm0, %v6987_v46, 0.0 }
 0x5a8   :  { %v2782_v43 = vsub.f32 %v6868_v11, %v2758_v60  ;;  %v2755_v28 = vpop.xlane.xlu0 %2754  ;;  %2829 = vadd.xlane.f32.xlu1 %v2828_v58  ;;  %v2825_v34 = vsel %vm630_vm0, %v6989_v49, 0.0 }
 0x5a9   :  { %5578 = vpow2.f32 %v2639_v16  ;;  %v2781_v21 = vsub.f32 %v6870_v1, %v2755_v28  ;;  %2826 = vadd.xlane.f32.xlu0 %v2825_v34 }
 0x5aa   :  { %v6997_v15 = vpop.eup %5570  ;;  %v2809_v25 = vmul.f32 1.442695, %v2782_v43 }
 0x5ab   :  { %v6999_v4 = vpop.eup %5572  ;;  %v2807_v10 = vmul.f32 1.442695, %v2781_v21  ;;  %v2594_v52 = vpop.xlane.xlu1 %2593  ;;  %v2682_v39 = vsel %vm630_vm0, %v6997_v15, 0.0 }
 0x5ac   :  { %5580 = vpow2.f32 %v2809_v25  ;;  %v2610_v11 = vsub.f32 %v6872_v62, %v2594_v52  ;;  %v2740_v47 = vpop.xlane.xlu0 %2739  ;;  %2683 = vadd.xlane.f32.xlu1 %v2682_v39  ;;  %v2679_v48 = vsel %vm630_vm0, %v6999_v4, 0.0 }
 0x5ad   :  { %5582 = vpow2.f32 %v2807_v10  ;;  %v2776_v1 = vsub.f32 %v6876_v29, %v2740_v47  ;;  %2680 = vadd.xlane.f32.xlu0 %v2679_v48 }
 0x5ae   :  { %v7007_v12 = vpop.eup %5574  ;;  %v2641_v40 = vmul.f32 1.442695, %v2610_v11 }
 0x5af   :  { %v7009_v30 = vpop.eup %5576  ;;  %v2797_v18 = vmul.f32 1.442695, %v2776_v1  ;;  %v2846_v45 = vsel %vm630_vm0, %v7007_v12, 0.0 }
 0x5b0   :  { %5584 = vpow2.f32 %v2641_v40  ;;  %v2737_v62 = vpop.xlane.xlu0 %2736  ;;  %2847 = vadd.xlane.f32.xlu1 %v2846_v45  ;;  %v2843_v5 = vsel %vm630_vm0, %v7009_v30, 0.0 }
 0x5b1   :  { %5586 = vpow2.f32 %v2797_v18  ;;  %v2775_v41 = vsub.f32 %v6884_v51, %v2737_v62  ;;  %2844 = vadd.xlane.f32.xlu0 %v2843_v5 }
 0x5b3   :  { %v7016_v29 = vpop.eup %5578  ;;  %v2795_v53 = vmul.f32 1.442695, %v2775_v41 }
 0x5b4   :  { %v2746_v6 = vpop.xlane.xlu0 %2745  ;;  %v2685_v23 = vsel %vm630_vm0, %v7016_v29, 0.0 }
 0x5b5   :  { %5588 = vpow2.f32 %v2795_v53  ;;  %v2778_v7 = vsub.f32 %v6892_v24, %v2746_v6  ;;  %2686 = vadd.xlane.f32.xlu0 %v2685_v23 }
 0x5b6   :  { %v7021_v17 = vpop.eup %5580 }
 0x5b7   :  { %v7023_v27 = vpop.eup %5582  ;;  %v2801_v54 = vmul.f32 1.442695, %v2778_v7  ;;  %v2852_v51 = vsel %vm630_vm0, %v7021_v17, 0.0 }
 0x5b8   :  { %v2743_v19 = vpop.xlane.xlu0 %2742  ;;  %2853 = vadd.xlane.f32.xlu1 %v2852_v51  ;;  %v2849_v26 = vsel %vm630_vm0, %v7023_v27, 0.0  ;;  %v2645_v51 = vpop.xlane.xlu1 %2644 }
 0x5b9   :  { %5590 = vpow2.f32 %v2801_v54  ;;  %v2777_v16 = vsub.f32 %v6898_v56, %v2743_v19  ;;  %2850 = vadd.xlane.f32.xlu0 %v2849_v26 }
 0x5ba   :  { %v7030_v60 = vpop.eup %5584 }
 0x5bb   :  { %v7032_v24 = vpop.eup %5586  ;;  %v2799_v58 = vmul.f32 1.442695, %v2777_v16  ;;  %v2688_v43 = vsel %vm630_vm0, %v7030_v60, 0.0 }
 0x5bc   :  { %v2764_v28 = vpop.xlane.xlu0 %2763  ;;  %2689 = vadd.xlane.f32.xlu1 %v2688_v43  ;;  %v2834_v34 = vsel %vm630_vm0, %v7032_v24, 0.0  ;;  %v2648_v19 = vpop.xlane.xlu1 %2647 }
 0x5bd   :  { %5592 = vpow2.f32 %v2799_v58  ;;  %v2784_v21 = vsub.f32 %v6902_v0, %v2764_v28  ;;  %2835 = vadd.xlane.f32.xlu0 %v2834_v34 }
 0x5bf   :  { %v7039_v25 = vpop.eup %5588  ;;  %v2813_v56 = vmul.f32 1.442695, %v2784_v21 }
 0x5c0   :  { %v2761_v10 = vpop.xlane.xlu0 %2760  ;;  %v2831_v52 = vsel %vm630_vm0, %v7039_v25, 0.0 }
 0x5c1   :  { %5594 = vpow2.f32 %v2813_v56  ;;  %v2783_v39 = vsub.f32 %v6906_v32, %v2761_v10  ;;  %2832 = vadd.xlane.f32.xlu0 %v2831_v52 }
 0x5c3   :  { %v7044_v11 = vpop.eup %5590  ;;  %v2811_v47 = vmul.f32 1.442695, %v2783_v39 }
 0x5c4   :  { %v2767_v48 = vpop.xlane.xlu0 %2766  ;;  %v2840_v1 = vsel %vm630_vm0, %v7044_v11, 0.0 }
 0x5c5   :  { %5596 = vpow2.f32 %v2811_v47  ;;  %v2785_v0 = vsub.f32 %v6910_v31, %v2767_v48  ;;  %2841 = vadd.xlane.f32.xlu0 %v2840_v1 }
 0x5c7   :  { %v7049_v40 = vpop.eup %5592  ;;  %v2815_v18 = vmul.f32 1.442695, %v2785_v0 }
 0x5c8   :  { %v2770_v45 = vpop.xlane.xlu0 %2769  ;;  %v2837_v62 = vsel %vm630_vm0, %v7049_v40, 0.0 }
 0x5c9   :  { %5598 = vpow2.f32 %v2815_v18  ;;  %v2786_v32 = vsub.f32 %v6914_v50, %v2770_v45  ;;  %2838 = vadd.xlane.f32.xlu0 %v2837_v62 }
 0x5cb   :  { %v7054_v5 = vpop.eup %5594  ;;  %v2817_v41 = vmul.f32 1.442695, %v2786_v32 }
 0x5cc   :  { %v2858_v53 = vsel %vm630_vm0, %v7054_v5, 0.0 }
 0x5cd   :  { %5600 = vpow2.f32 %v2817_v41  ;;  %2859 = vadd.xlane.f32.xlu0 %v2858_v53 }
 0x5ce   :  { %5602 = vrcp.f32 %v2648_v19 }
 0x5cf   :  { %v7058_v31 = vpop.eup %5596  ;;  %5604 = vrcp.f32 %v2645_v51 }
 0x5d0   :  { %v2855_v6 = vsel %vm630_vm0, %v7058_v31, 0.0 }
 0x5d1   :  { %2856 = vadd.xlane.f32.xlu0 %v2855_v6 }
 0x5d3   :  { %v7062_v23 = vpop.eup %5598 }
 0x5d4   :  { %v2861_v50 = vsel %vm630_vm0, %v7062_v23, 0.0 }
 0x5d5   :  { %2862 = vadd.xlane.f32.xlu0 %v2861_v50  ;;  %v2651_v26 = vpop.xlane.xlu1 %2650 }
 0x5d7   :  { %v7066_v7 = vpop.eup %5600 }
 0x5d8   :  { %v2864_v54 = vsel %vm630_vm0, %v7066_v7, 0.0  ;;  %v5603_v48 = vpop.eup %5602 }
 0x5d9   :  { %2865 = vadd.xlane.f32.xlu0 %v2864_v54  ;;  %v2654_v16 = vpop.xlane.xlu1 %2653  ;;  %v5605_v1 = vpop.eup %5604  ;;  %v2708_v45 = vmul.f32 %v5603_v48, %v6890_v9  ;;  %v7485_v9 = vld [vmem:[#allocation42_spill] sm:$0xff] }
 0x5da   :  { %v2707_v32 = vmul.f32 %v5605_v1, %v6882_v13  ;;  %v7484_v13 = vld [vmem:[#allocation40_spill] sm:$0xff] }
 0x5ec   :  { %v7070_v58 = vpop.xlane.xlu1 %2659 }
 0x5ed   :  { %v7074_v56 = vpop.xlane.xlu0 %2656 }
 0x5f8   :  { %v7072_v43 = vpop.xlane.xlu1 %2665 }
 0x5f9   :  { %v7076_v52 = vpop.xlane.xlu0 %2662 }
 0x604   :  { %v2672_v28 = vpop.xlane.xlu1 %2671 }
 0x608   :  { %v2669_v34 = vpop.xlane.xlu1 %2668 }
 0x614   :  { %v2678_v21 = vpop.xlane.xlu1 %2677 }
 0x618   :  { %v2675_v10 = vpop.xlane.xlu1 %2674 }
 0x624   :  { %v2824_v39 = vpop.xlane.xlu1 %2823 }
 0x625   :  { %5606 = vrcp.f32 %v2824_v39  ;;  %v2821_v47 = vpop.xlane.xlu0 %2820 }
 0x626   :  { %5608 = vrcp.f32 %v2821_v47 }
 0x627   :  { %5610 = vrcp.f32 %v2654_v16 }
 0x628   :  { %5612 = vrcp.f32 %v2651_v26 }
 0x62f   :  { %v5607_v0 = vpop.eup %5606 }
 0x630   :  { %v5609_v18 = vpop.eup %5608  ;;  %v2884_v62 = vmul.f32 %v5607_v0, %v6972_v35  ;;  %v5041_v35 = vpack.c.bf16 %v7485_v9, %v7484_v13 }
 0x631   :  { %v2883_v41 = vmul.f32 %v5609_v18, %v6974_v33  ;;  %v5611_v39 = vpop.eup %5610 }
 0x632   :  { %v2900_v53 = vadd.f32 %v2884_v62, %v2708_v45  ;;  %v5613_v48 = vpop.eup %5612  ;;  %v2710_v18 = vmul.f32 %v5611_v39, %v6926_v44 }
 0x633   :  { %v2899_v6 = vadd.f32 %v2883_v41, %v2707_v32  ;;  %v2709_v62 = vmul.f32 %v5613_v48, %v6922_v2 }
 0x634   :  { %v7084_v51 = vmul.f32 0.5, %v2900_v53 }
 0x635   :  { %v2830_v50 = vpop.xlane.xlu1 %2829  ;;  %v7082_v54 = vmul.f32 0.5, %v2899_v6 }
 0x636   :  { %5614 = vrcp.f32 %v2830_v50  ;;  %v2827_v19 = vpop.xlane.xlu0 %2826 }
 0x637   :  { %5616 = vrcp.f32 %v2827_v19  ;;  %4733 = vmatprep.mubr.msk.f32.mxu0 %vm630_vm0, %v7082_v54 }
 0x638   :  { %4734 = vmatmul.mubr.msk.f32.vlgmr.msra.gmra.mrb[52].mxu0 %vm630_vm0, %v7084_v51  ;;  %5618 = vrcp.f32 %v2672_v28 }
 0x639   :  { %5040 = vmatpush3.bf16.msra.mxu0 %v6761_v61  ;;  %v7093_v33 = vpop.xlane.xlu1 %2683  ;;  %5620 = vrcp.f32 %v2669_v34 }
 0x63a   :  { %v7095_v26 = vpop.xlane.xlu0 %2680  ;;  %5042 = vmatprep.subr.bf16.mxu0 %v5041_v35 }
 0x63d   :  { %5044 = vmatpush3.bf16.msra.mxu0 %v5041_v35  ;;  %v2848_v16 = vpop.xlane.xlu1 %2847 }
 0x63e   :  { %5622 = vrcp.f32 %v2848_v16  ;;  %v2845_v47 = vpop.xlane.xlu0 %2844 }
 0x63f   :  { %5624 = vrcp.f32 %v2845_v47 }
 0x640   :  { %v5615_v1 = vpop.eup %5614  ;;  %5626 = vrcp.f32 %v2678_v21 }
 0x641   :  { %v5617_v0 = vpop.eup %5616  ;;  %v2886_v61 = vmul.f32 %v5615_v1, %v6987_v46  ;;  %5628 = vrcp.f32 %v2675_v10 }
 0x642   :  { %v7099_v45 = vpop.xlane.xlu0 %2686  ;;  %v2885_v28 = vmul.f32 %v5617_v0, %v6989_v49  ;;  %v5619_v53 = vpop.eup %5618 }
 0x643   :  { %v2902_v34 = vadd.f32 %v2886_v61, %v2710_v18  ;;  %v5621_v19 = vpop.eup %5620  ;;  %v2716_v49 = vmul.f32 %v5619_v53, %v6952_v22 }
 0x644   :  { %v2901_v32 = vadd.f32 %v2885_v28, %v2709_v62  ;;  %v2715_v13 = vmul.f32 %v5621_v19, %v6957_v42 }
 0x645   :  { %v2854_v41 = vpop.xlane.xlu1 %2853  ;;  %v7105_v44 = vmul.f32 0.5, %v2902_v34 }
 0x646   :  { %5630 = vrcp.f32 %v2854_v41  ;;  %v2851_v6 = vpop.xlane.xlu0 %2850  ;;  %v7103_v50 = vmul.f32 0.5, %v2901_v32 }
 0x647   :  { %5632 = vrcp.f32 %v2851_v6 }
 0x648   :  { %v5623_v46 = vpop.eup %5622  ;;  %4736 = vmatprep.mubr.msk.f32.mxu0 %vm630_vm0, %v7103_v50 }
 0x649   :  { %v5625_v2 = vpop.eup %5624  ;;  %v2892_v21 = vmul.f32 %v5623_v46, %v7007_v12  ;;  %4737 = vmatmul.mubr.msk.f32.gmra.mrb[54].mxu0 %vm630_vm0, %v7105_v44 }
 0x64a   :  { %v2836_v10 = vpop.xlane.xlu0 %2835  ;;  %v2891_v9 = vmul.f32 %v5625_v2, %v7009_v30  ;;  %v5627_v39 = vpop.eup %5626 }
 0x64b   :  { %v2908_v35 = vadd.f32 %v2892_v21, %v2716_v49  ;;  %5634 = vrcp.f32 %v2836_v10  ;;  %v5629_v12 = vpop.eup %5628  ;;  %v2718_v30 = vmul.f32 %v5627_v39, %v6962_v8 }
 0x64c   :  { %5636 = vrcp.f32 %v7070_v58  ;;  %v2907_v16 = vadd.f32 %v2891_v9, %v2715_v13  ;;  %v2717_v0 = vmul.f32 %v5629_v12, %v6968_v14  ;;  %v7486_v13 = vld [vmem:[#allocation41_spill] sm:$0xff]  ;;  %v7487_v9 = vld [vmem:[#allocation43_spill] sm:$0xff] }
 0x64d   :  { %5638 = vrcp.f32 %v7074_v56  ;;  %v7119_v48 = vmul.f32 0.5, %v2908_v35  ;;  %v5049_v35 = vpack.c.bf16 %v7487_v9, %v7486_v13 }
 0x64e   :  { %v2833_v47 = vpop.xlane.xlu0 %2832  ;;  %v7117_v22 = vmul.f32 0.5, %v2907_v16 }
 0x64f   :  { %5640 = vrcp.f32 %v2833_v47 }
 0x650   :  { %v5631_v1 = vpop.eup %5630  ;;  %4761 = vmatprep.mubr.msk.f32.mxu0 %vm630_vm0, %v7117_v22 }
 0x651   :  { %v5633_v42 = vpop.eup %5632  ;;  %4762 = vmatmul.mubr.msk.f32.vlgmr.msra.gmra.mrb[56].mxu0 %vm630_vm0, %v7119_v48  ;;  %v2894_v58 = vmul.f32 %v5631_v1, %v7021_v17 }
 0x652   :  { %v2842_v56 = vpop.xlane.xlu0 %2841  ;;  %v2893_v18 = vmul.f32 %v5633_v42, %v7023_v27 }
 0x653   :  { %5642 = vrcp.f32 %v2842_v56  ;;  %v2910_v61 = vadd.f32 %v2894_v58, %v2718_v30 }
 0x654   :  { %5644 = vrcp.f32 %v7072_v43  ;;  %v2909_v62 = vadd.f32 %v2893_v18, %v2717_v0 }
 0x655   :  { %v5635_v28 = vpop.eup %5634  ;;  %5646 = vrcp.f32 %v7076_v52  ;;  %v7134_v53 = vmul.f32 0.5, %v2910_v61 }
 0x656   :  { %v5637_v34 = vpop.eup %5636  ;;  %v2839_v32 = vpop.xlane.xlu0 %2838  ;;  %v7131_v41 = vmul.f32 0.5, %v2909_v62  ;;  %v2888_v17 = vmul.f32 %v5635_v28, %v7032_v24 }
 0x657   :  { %v5639_v8 = vpop.eup %5638  ;;  %5648 = vrcp.f32 %v2839_v32  ;;  %v2712_v27 = vmul.f32 %v5637_v34, %v6934_v20 }
 0x658   :  { %4764 = vmatprep.mubr.msk.f32.mxu0 %vm630_vm0, %v7131_v41  ;;  %5650 = vrcp.f32 %v7093_v33  ;;  %v2711_v52 = vmul.f32 %v5639_v8, %v6936_v3 }
 0x659   :  { %v5641_v14 = vpop.eup %5640  ;;  %4765 = vmatmul.mubr.msk.f32.gmra.mrb[58].mxu0 %vm630_vm0, %v7134_v53  ;;  %v2904_v24 = vadd.f32 %v2888_v17, %v2712_v27 }
 0x65a   :  { %v2860_v43 = vpop.xlane.xlu0 %2859  ;;  %v2887_v6 = vmul.f32 %v5641_v14, %v7039_v25  ;;  %v2690_v25 = vpop.xlane.xlu1 %2689 }
 0x65b   :  { %5652 = vrcp.f32 %v2860_v43  ;;  %v2920_v10 = vmul.f32 0.5, %v2904_v24 }
 0x65c   :  { %v2903_v19 = vadd.f32 %v2887_v6, %v2711_v52  ;;  %5654 = vrcp.f32 %v7095_v26 }
 0x65d   :  { %v5643_v46 = vpop.eup %5642 }
 0x65e   :  { %v5645_v2 = vpop.eup %5644  ;;  %v2857_v49 = vpop.xlane.xlu0 %2856  ;;  %v2919_v21 = vmul.f32 0.5, %v2903_v19  ;;  %v2890_v33 = vmul.f32 %v5643_v46, %v7044_v11 }
 0x65f   :  { %v5647_v20 = vpop.eup %5646  ;;  %5656 = vrcp.f32 %v2857_v49  ;;  %v2714_v26 = vmul.f32 %v5645_v2, %v6943_v38 }
 0x660   :  { %5658 = vrcp.f32 %v7099_v45  ;;  %4747 = vmatprep.mubr.msk.f32.mxu1 %vm630_vm0, %v2919_v21  ;;  %v2713_v39 = vmul.f32 %v5647_v20, %v6945_v57  ;;  %v3405_v18 = vadd.f32 %v2919_v21, %v7082_v54 }
 0x661   :  { %v5649_v3 = vpop.eup %5648  ;;  %4748 = vmatmul.mubr.msk.f32.vlgmr.msra.gmra.mrb[32].mxu1 %vm630_vm0, %v2920_v10  ;;  %v2906_v45 = vadd.f32 %v2890_v33, %v2714_v26 }
 0x662   :  { %5048 = vmatpush3.bf16.msra.mxu1 %v6769_v37  ;;  %v2863_v16 = vpop.xlane.xlu0 %2862  ;;  %v2889_v11 = vmul.f32 %v5649_v3, %v7049_v40  ;;  %v5651_v47 = vpop.eup %5650  ;;  %v3406_v37 = vadd.f32 %v2920_v10, %v7084_v51  ;;  %v3409_v17 = vadd.f32 %v3405_v18, %v7117_v22 }
 0x663   :  { %5660 = vrcp.f32 %v2863_v16  ;;  %5050 = vmatprep.subr.bf16.mxu1 %v5049_v35  ;;  %v2720_v42 = vmul.f32 %v5651_v47, %v6997_v15  ;;  %v2922_v57 = vmul.f32 0.5, %v2906_v45 }
 0x664   :  { %5662 = vrcp.f32 %v2690_v25  ;;  %v2905_v12 = vadd.f32 %v2889_v11, %v2713_v39  ;;  %v3410_v28 = vadd.f32 %v3406_v37, %v7119_v48 }
 0x665   :  { %v5653_v1 = vpop.eup %5652  ;;  %v3408_v22 = vadd.f32 %v2922_v57, %v7105_v44 }
 0x666   :  { %v2896_v30 = vmul.f32 %v5653_v1, %v7054_v5  ;;  %5052 = vmatpush3.bf16.msra.mxu1 %v5049_v35  ;;  %v2866_v38 = vpop.xlane.xlu0 %2865  ;;  %v2921_v58 = vmul.f32 0.5, %v2905_v12  ;;  %v5655_v56 = vpop.eup %5654 }
 0x667   :  { %5664 = vrcp.f32 %v2866_v38  ;;  %v2719_v5 = vmul.f32 %v5655_v56, %v6999_v4  ;;  %v3412_v10 = vadd.f32 %v3408_v22, %v7134_v53 }
 0x668   :  { %v2912_v40 = vadd.f32 %v2896_v30, %v2720_v42  ;;  %4750 = vmatprep.mubr.msk.f32.mxu1 %vm630_vm0, %v2921_v58  ;;  %v3407_v52 = vadd.f32 %v2921_v58, %v7103_v50 }
 0x669   :  { %v5657_v0 = vpop.eup %5656  ;;  %4751 = vmatmul.mubr.msk.f32.gmra.mrb[34].mxu1 %vm630_vm0, %v2922_v57 }
 0x66a   :  { %v5659_v61 = vpop.eup %5658  ;;  %v2928_v15 = vmul.f32 0.5, %v2912_v40  ;;  %v2895_v62 = vmul.f32 %v5657_v0, %v7058_v31  ;;  %v3411_v50 = vadd.f32 %v3407_v52, %v7131_v41 }
 0x66b   :  { %v2721_v8 = vmul.f32 %v5659_v61, %v7016_v29 }
 0x66c   :  { %v2911_v51 = vadd.f32 %v2895_v62, %v2719_v5  ;;  %v3414_v34 = vadd.f32 %v3410_v28, %v2928_v15 }
 0x66d   :  { %v5661_v32 = vpop.eup %5660 }
 0x66e   :  { %v5663_v14 = vpop.eup %5662  ;;  %v2927_v27 = vmul.f32 0.5, %v2911_v51  ;;  %v3418_v43 = vmul.f32 0.25, %v3414_v34  ;;  %v2897_v54 = vmul.f32 %v5661_v32, %v7062_v23 }
 0x66f   :  { %v2722_v29 = vmul.f32 %v5663_v14, %v7030_v60 }
 0x670   :  { %4775 = vmatprep.mubr.msk.f32.mxu1 %vm630_vm0, %v2927_v27  ;;  %v3436_v4 = vsel %vm630_vm0, %v3418_v43, -inf  ;;  %v2913_v31 = vadd.f32 %v2897_v54, %v2721_v8  ;;  %v3413_v48 = vadd.f32 %v3409_v17, %v2927_v27 }
 0x671   :  { %v5665_v6 = vpop.eup %5664  ;;  %4776 = vmatmul.mubr.msk.f32.vlgmr.msra.gmra.mrb[36].mxu1 %vm630_vm0, %v2928_v15  ;;  %3437 = vmax.xlane.f32.xlu0 %v3436_v4 }
 0x672   :  { %v2929_v24 = vmul.f32 0.5, %v2913_v31  ;;  %v3417_v19 = vmul.f32 0.25, %v3413_v48  ;;  %v2898_v23 = vmul.f32 %v5665_v6, %v7066_v7 }
 0x674   :  { %4778 = vmatprep.mubr.msk.f32.mxu1 %vm630_vm0, %v2929_v24  ;;  %v3433_v46 = vsel %vm630_vm0, %v3417_v19, -inf  ;;  %v2914_v2 = vadd.f32 %v2898_v23, %v2722_v29  ;;  %v3415_v49 = vadd.f32 %v3411_v50, %v2929_v24  ;;  %v3398_v29 = vmul.f32 0.25, %v6788_v55 }
 0x675   :  { %3434 = vmax.xlane.f32.xlu1 %v3433_v46  ;;  %v3397_v24 = vmul.f32 0.25, %v6790_v59  ;;  %v7488_v46 = vmov 0.0  }
 0x676   :  { %v2930_v21 = vmul.f32 0.5, %v2914_v2  ;;  %v3419_v20 = vmul.f32 0.25, %v3415_v49  ;;  %vm3422_vm2 = vcmp.gt.f32.partialorder %v3398_v29, 0.75  ;;  %v3399_v49 = vmul.f32 0.25, %v6796_v63 }
 0x677   :  { %v4331_v2 = vsel %vm3422_vm2, 1.0, %v7488_v46  ;;  %vm3421_vm3 = vcmp.gt.f32.partialorder %v3397_v24, 0.75 }
 0x678   :  { %4779 = vmatmul.mubr.msk.f32.gmra.mrb[38].mxu1 %vm630_vm0, %v2930_v21  ;;  %v3439_v60 = vsel %vm630_vm0, %v3419_v20, -inf  ;;  %v3416_v44 = vadd.f32 %v3412_v10, %v2930_v21  ;;  %v4330_v55 = vsel %vm3421_vm3, 1.0, %v7488_v46  ;;  %vm3423_vm4 = vcmp.gt.f32.partialorder %v3399_v49, 0.75 }
 0x679   :  { %3440 = vmax.xlane.f32.xlu1 %v3439_v60  ;;  %v4332_v63 = vsel %vm3423_vm4, 1.0, %v7488_v46 }
 0x67a   :  { %v3420_v7 = vmul.f32 0.25, %v3416_v44  ;;  %v3400_v44 = vmul.f32 0.25, %v6794_v36 }
 0x67c   :  { %v3442_v41 = vsel %vm630_vm0, %v3420_v7, -inf  ;;  %vm3424_vm5 = vcmp.gt.f32.partialorder %v3400_v44, 0.75 }
 0x67d   :  { %3443 = vmax.xlane.f32.xlu0 %v3442_v41  ;;  %v4333_v36 = vsel %vm3424_vm5, 1.0, %v7488_v46 }
 0x6fe   :  { %v3438_v33 = vpop.xlane.xlu0 %3437 }
 0x6ff   :  { %v3446_v3 = vsub.f32 %v3418_v43, %v3438_v33 }
 0x701   :  { %v3451_v25 = vmul.f32 1.442695, %v3446_v3 }
 0x702   :  { %v3435_v13 = vpop.xlane.xlu1 %3434 }
 0x703   :  { %5666 = vpow2.f32 %v3451_v25  ;;  %v3445_v9 = vsub.f32 %v3417_v19, %v3435_v13 }
 0x705   :  { %v3449_v35 = vmul.f32 1.442695, %v3445_v9 }
 0x706   :  { %v3441_v26 = vpop.xlane.xlu1 %3440 }
 0x707   :  { %5668 = vpow2.f32 %v3449_v35  ;;  %v3447_v53 = vsub.f32 %v3419_v20, %v3441_v26 }
 0x709   :  { %v3453_v16 = vmul.f32 1.442695, %v3447_v53 }
 0x70a   :  { %v3444_v39 = vpop.xlane.xlu0 %3443 }
 0x70b   :  { %5670 = vpow2.f32 %v3453_v16  ;;  %v3448_v11 = vsub.f32 %v3420_v7, %v3444_v39  ;;  %v7181_v47 = vpop.f32.mrb[52].mxu0 }
 0x70c   :  { %v7183_v45 = vpop.f32.mrb[53].mxu0 }
 0x70d   :  { %v5667_v12 = vpop.eup %5666  ;;  %v3455_v1 = vmul.f32 1.442695, %v3448_v11 }
 0x70e   :  { %v3460_v42 = vsel %vm630_vm0, %v5667_v12, 0.0 }
 0x70f   :  { %5672 = vpow2.f32 %v3455_v1  ;;  %3461 = vadd.xlane.f32.xlu0 %v3460_v42 }
 0x711   :  { %v5669_v30 = vpop.eup %5668 }
 0x712   :  { %v3457_v38 = vsel %vm630_vm0, %v5669_v30, 0.0 }
 0x713   :  { %3458 = vadd.xlane.f32.xlu1 %v3457_v38 }
 0x715   :  { %v5671_v58 = vpop.eup %5670 }
 0x716   :  { %v3463_v37 = vsel %vm630_vm0, %v5671_v58, 0.0 }
 0x717   :  { %3464 = vadd.xlane.f32.xlu1 %v3463_v37 }
 0x719   :  { %v5673_v56 = vpop.eup %5672 }
 0x71a   :  { %v3466_v57 = vsel %vm630_vm0, %v5673_v56, 0.0 }
 0x71b   :  { %3467 = vadd.xlane.f32.xlu0 %v3466_v57 }
 0x71c   :  { %v7189_v40 = vpop.f32.mrb[54].mxu0 }
 0x71d   :  { %v7191_v0 = vpop.f32.mrb[55].mxu0 }
 0x724   :  { %v4763_v18 = vpop.f32.mrb[56].mxu0 }
 0x725   :  { %v3203_v61 = vpop.f32.mrb[57].mxu0 }
 0x726   :  { %v5276_v15 = vpack.i.bf16 %v4763_v18, %v3203_v61 }
 0x728   :  { %5277 = vrot.lane.b32.xlu1 %v5276_v15, %s5820_s29 }
 0x72c   :  { %v4766_v5 = vpop.f32.mrb[58].mxu0 }
 0x72d   :  { %v3213_v62 = vpop.f32.mrb[59].mxu0 }
 0x72e   :  { %v5281_v28 = vpack.i.bf16 %v4766_v5, %v3213_v62 }
 0x730   :  { %5282 = vrot.lane.b32.xlu1 %v5281_v28, %s5820_s29 }
 0x734   :  { %v4749_v51 = vpop.f32.mrb[32].mxu1 }
 0x735   :  { %v3106_v34 = vpop.f32.mrb[33].mxu1 }
 0x736   :  { %v5286_v32 = vpack.i.bf16 %v4749_v51, %v3106_v34 }
 0x738   :  { %5287 = vrot.lane.b32.xlu1 %v5286_v32, %s5826_s13 }
 0x73c   :  { %v4752_v8 = vpop.f32.mrb[34].mxu1 }
 0x73d   :  { %v3116_v17 = vpop.f32.mrb[35].mxu1 }
 0x73e   :  { %v5291_v14 = vpack.i.bf16 %v4752_v8, %v3116_v17 }
 0x740   :  { %5292 = vrot.lane.b32.xlu0 %v5291_v14, %s5826_s13 }
 0x744   :  { %v4777_v27 = vpop.f32.mrb[36].mxu1 }
 0x745   :  { %v3300_v43 = vpop.f32.mrb[37].mxu1 }
 0x746   :  { %v5296_v54 = vpack.i.bf16 %v4777_v27, %v3300_v43 }
 0x74b   :  { %v4780_v52 = vpop.f32.mrb[38].mxu1 }
 0x74c   :  { %v3310_v4 = vpop.f32.mrb[39].mxu1 }
 0x74d   :  { %v5301_v31 = vpack.i.bf16 %v4780_v52, %v3310_v4 }
 0x79c   :  { %v3462_v48 = vpop.xlane.xlu0 %3461 }
 0x79d   :  { %5674 = vrcp.f32 %v3462_v48 }
 0x7a0   :  { %v3459_v6 = vpop.xlane.xlu1 %3458 }
 0x7a1   :  { %5676 = vrcp.f32 %v3459_v6 }
 0x7a4   :  { %v3465_v22 = vpop.xlane.xlu1 %3464 }
 0x7a5   :  { %5678 = vrcp.f32 %v3465_v22 }
 0x7a7   :  { %v5675_v19 = vpop.eup %5674 }
 0x7a8   :  { %v3468_v23 = vpop.xlane.xlu0 %3467  ;;  %v3472_v50 = vmul.f32 %v5675_v19, %v5667_v12 }
 0x7a9   :  { %5680 = vrcp.f32 %v3468_v23 }
 0x7aa   :  { %v3478_v21 = vmul.f32 %v4331_v2, %v3472_v50 }
 0x7ab   :  { %v5677_v20 = vpop.eup %5676 }
 0x7ac   :  { %v3484_v10 = vsel %vm630_vm0, %v3478_v21, 0.0  ;;  %v3470_v60 = vmul.f32 %v5677_v20, %v5669_v30 }
 0x7ad   :  { %3485 = vadd.xlane.f32.xlu0 %v3484_v10 }
 0x7ae   :  { %v7204_v59 = vmul.f32 %v4330_v55, %v3470_v60 }
 0x7af   :  { %v5679_v7 = vpop.eup %5678 }
 0x7b0   :  { %v3481_v41 = vsel %vm630_vm0, %v7204_v59, 0.0  ;;  %v3474_v33 = vmul.f32 %v5679_v7, %v5671_v58 }
 0x7b1   :  { %3482 = vadd.xlane.f32.xlu1 %v3481_v41 }
 0x7b2   :  { %v7209_v3 = vmul.f32 %v4332_v63, %v3474_v33 }
 0x7b3   :  { %v5681_v25 = vpop.eup %5680 }
 0x7b4   :  { %v3487_v13 = vsel %vm630_vm0, %v7209_v3, 0.0  ;;  %v3476_v9 = vmul.f32 %v5681_v25, %v5673_v56 }
 0x7b5   :  { %3488 = vadd.xlane.f32.xlu1 %v3487_v13 }
 0x7b6   :  { %v7214_v35 = vmul.f32 %v4333_v36, %v3476_v9 }
 0x7b8   :  { %v3490_v26 = vsel %vm630_vm0, %v7214_v35, 0.0 }
 0x7b9   :  { %3491 = vadd.xlane.f32.xlu0 %v3490_v26 }
 0x7c6   :  { %5302 = vrot.lane.b32.xlu1 %v5301_v31, %s5825_s5 }
 0x7cf   :  { %5297 = vrot.lane.b32.xlu0 %v5296_v54, %s5825_s5 }
 0x7d0   :  { %5765 = shalt.err (!%p5762_p2)  }
 0x7d1   :  { %s5766_s23 = scalar_lea.vmem %s108_s15, 4096  ;;  %p5771_p4 = scmp.lt.s32.totalorder %s108_s15, %s108_s15 }
 0x7d2   :  { %p5767_p3 = scmp.ne.s32.totalorder %s108_s15, %s5766_s23  ;;  %p5772_p5 = scmp.lt.s32.totalorder %s5766_s23, %s5766_s23 }
 0x7d4   :  { %p5773_p6 = por %p5772_p5, %p5771_p4 }
 0x7d6   :  { %p5774_p7 = pnand %p5773_p6, %p5767_p3 }
 0x7d8   :  { %5777 = shalt.err (!%p5774_p7)  }
 0x7d9   :  { %110 = dma.hbm_to_vmem [thread:$0]  %s7374_s6, 4096, %s108_s15, [#allocation4 + $0x1]  ;;  %v5278_v53 = vpop.permute.xlu1 %5277  ;;  %v5293_v39 = vpop.permute.xlu0 %5292  ;;  %vm3376_vm6 = vcmask 785408   ;;  %vm3371_vm7 = vcmask 523264  }
 0x7da   :  { %v5295_v42 = vunpack.i.h.bf16 %v5293_v39  ;;  %v5294_v30 = vunpack.i.l.bf16 %v5293_v39  ;;  %v5280_v43 = vunpack.i.h.bf16 %v5278_v53  ;;  %v5279_v54 = vunpack.i.l.bf16 %v5278_v53 }
 0x7dc   :  { %v3370_v57 = vsel %vm630_vm0, %v7189_v40, %v5295_v42  ;;  %v3369_v18 = vsel %vm630_vm0, %v7191_v0, %v5294_v30 }
 0x7dd   :  { %v5283_v16 = vpop.permute.xlu1 %5282 }
 0x7de   :  { %v5285_v61 = vunpack.i.h.bf16 %v5283_v16  ;;  %v5284_v15 = vunpack.i.l.bf16 %v5283_v16 }
 0x7e0   :  { %v3374_v32 = vsel %vm3371_vm7, %v3369_v18, %v5284_v15  ;;  %v3375_v8 = vsel %vm3371_vm7, %v3370_v57, %v5285_v61 }
 0x7e1   :  { %v5288_v11 = vpop.permute.xlu1 %5287 }
 0x7e2   :  { %v5290_v37 = vunpack.i.h.bf16 %v5288_v11  ;;  %v5289_v56 = vunpack.i.l.bf16 %v5288_v11 }
 0x7e4   :  { %v3368_v40 = vsel %vm630_vm0, %v7181_v47, %v5290_v37  ;;  %v3367_v0 = vsel %vm630_vm0, %v7183_v45, %v5289_v56 }
 0x7e5   :  { %v3372_v6 = vsel %vm3371_vm7, %v3367_v0, %v5279_v54  ;;  %v3373_v47 = vsel %vm3371_vm7, %v3368_v40, %v5280_v43 }
 0x83a   :  { %v3486_v12 = vpop.xlane.xlu0 %3485 }
 0x83b   :  { %5682 = vrcp.f32 %v3486_v12 }
 0x83e   :  { %v3483_v1 = vpop.xlane.xlu1 %3482 }
 0x83f   :  { %5684 = vrcp.f32 %v3483_v1 }
 0x842   :  { %v3489_v38 = vpop.xlane.xlu1 %3488 }
 0x843   :  { %5686 = vrcp.f32 %v3489_v38 }
 0x845   :  { %v5683_v58 = vpop.eup %5682 }
 0x846   :  { %v7236_v5 = vmul.f32 %v5683_v58, %v3478_v21  ;;  %v3492_v62 = vpop.xlane.xlu0 %3491  ;;  %v5303_v28 = vpop.permute.xlu1 %5302 }
 0x847   :  { %5688 = vrcp.f32 %v3492_v62  ;;  %v5305_v51 = vunpack.i.h.bf16 %v5303_v28  ;;  %v5304_v34 = vunpack.i.l.bf16 %v5303_v28 }
 0x849   :  { %v5685_v17 = vpop.eup %5684  ;;  %v7245_v14 = vsel %vm3376_vm6, %v3374_v32, %v5304_v34  ;;  %v7248_v27 = vsel %vm3376_vm6, %v3375_v8, %v5305_v51 }
 0x84a   :  { %v7251_v52 = vmul.f32 %v5685_v17, %v7204_v59  ;;  %v5298_v4 = vpop.permute.xlu0 %5297 }
 0x84b   :  { %v5300_v31 = vunpack.i.h.bf16 %v5298_v4  ;;  %v5299_v48 = vunpack.i.l.bf16 %v5298_v4 }
 0x84d   :  { %v5687_v29 = vpop.eup %5686  ;;  %v7256_v45 = vsel %vm3376_vm6, %v3372_v6, %v5299_v48  ;;  %v7259_v22 = vsel %vm3376_vm6, %v3373_v47, %v5300_v31 }
 0x84e   :  { %v7262_v24 = vmul.f32 %v5687_v29, %v7209_v3 }
 0x851   :  { %v5689_v19 = vpop.eup %5688 }
 0x852   :  { %v7265_v23 = vmul.f32 %v5689_v19, %v7214_v35 }
 0x853   :  { %5804 = dma.done.wait [#allocation4], 4096 }
 0x854   :  { %5805 = vsyncadd [#allocation4], 4294963200  ;;  %3665 = vmatprep.mubr.f32.mxu0 %v7488_v46  ;;  %3875 = vmatprep.mubr.f32.mxu1 %v7488_v46  ;;  %v3522_v50 = vld [vmem:[#allocation2 + $0x88] sm:$0xff]  ;;  %v3521_v2 = vld [vmem:[#allocation2 + $0x80] sm:$0xff]  ;;  %v3781_v15 = vlaneseq }
 0x855   :  { %v3524_v49 = vld [vmem:[#allocation2 + $0x98] sm:$0xff]  ;;  %5054 = vmatprep.subr.bf16.mxu0 %v3522_v50  ;;  %v3523_v21 = vld [vmem:[#allocation2 + $0x90] sm:$0xff]  ;;  %v3526_v20 = vld [vmem:[#allocation2 + $0xa8] sm:$0xff] }
 0x856   :  { %5056 = vmatpush1.bf16.msra.mxu0 %v3521_v2  ;;  %v3525_v10 = vld [vmem:[#allocation2 + $0xa0] sm:$0xff]  ;;  %v3528_v60 = vld [vmem:[#allocation2 + $0xb8] sm:$0xff]  ;;  %v3527_v55 = vld [vmem:[#allocation2 + $0xb0] sm:$0xff]  ;;  %v3782_v62 = vshrl.u32 %v3781_v15, 7 }
 0x857   :  { %5058 = vmatprep.subr.bf16.mxu0 %v3524_v49  ;;  %v3530_v44 = vld [vmem:[#allocation2 + $0xc8] sm:$0xff]  ;;  %v3529_v59 = vld [vmem:[#allocation2 + $0xc0] sm:$0xff]  ;;  %v3532_v7 = vld [vmem:[#allocation2 + $0xd8] sm:$0xff] }
 0x858   :  { %v3531_v41 = vld [vmem:[#allocation2 + $0xd0] sm:$0xff]  ;;  %v3534_v33 = vld [vmem:[#allocation2 + $0xe8] sm:$0xff]  ;;  %v3533_v63 = vld [vmem:[#allocation2 + $0xe0] sm:$0xff]  ;;  %v3783_v28 = vsub.s32 0, %v3782_v62  ;;  %v3787_v34 = vsub.s32 1, %v3782_v62 }
 0x859   :  { %v3536_v3 = vld [vmem:[#allocation2 + $0xf8] sm:$0xff]  ;;  %v3535_v25 = vld [vmem:[#allocation2 + $0xf0] sm:$0xff]  ;;  %v3506_v13 = vld [vmem:[#allocation2 + $0x8] sm:$0xff] }
 0x85a   :  { %5060 = vmatpush1.bf16.msra.mxu0 %v3523_v21  ;;  %v3505_v9 = vld [vmem:[#allocation2] sm:$0xff]  ;;  %v3508_v36 = vld [vmem:[#allocation2 + $0x18] sm:$0xff]  ;;  %v3507_v26 = vld [vmem:[#allocation2 + $0x10] sm:$0xff] }
 0x85b   :  { %5062 = vmatprep.subr.bf16.mxu0 %v3526_v20  ;;  %v7489_v35 = vld [vmem:[#allocation23_spill] sm:$0xff]  ;;  %v3510_v53 = vld [vmem:[#allocation2 + $0x28] sm:$0xff]  ;;  %v3512_v11 = vld [vmem:[#allocation2 + $0x38] sm:$0xff] }
 0x85c   :  { %v7490_v16 = vld [vmem:[#allocation24_spill] sm:$0xff]  ;;  %v3509_v39 = vld [vmem:[#allocation2 + $0x20] sm:$0xff]  ;;  %v3511_v1 = vld [vmem:[#allocation2 + $0x30] sm:$0xff] }
 0x85d   :  { %v7491_v12 = vld [vmem:[#allocation27_spill] sm:$0xff]  ;;  %v3514_v42 = vld [vmem:[#allocation2 + $0x48] sm:$0xff]  ;;  %v3516_v58 = vld [vmem:[#allocation2 + $0x58] sm:$0xff] }
 0x85e   :  { %5064 = vmatpush1.bf16.msra.mxu0 %v3525_v10  ;;  %v7492_v30 = vld [vmem:[#allocation28_spill] sm:$0xff]  ;;  %v3513_v38 = vld [vmem:[#allocation2 + $0x40] sm:$0xff]  ;;  %v3515_v37 = vld [vmem:[#allocation2 + $0x50] sm:$0xff] }
 0x85f   :  { %5066 = vmatprep.subr.bf16.mxu0 %v3528_v60  ;;  %v3518_v56 = vld [vmem:[#allocation2 + $0x68] sm:$0xff]  ;;  %v3517_v57 = vld [vmem:[#allocation2 + $0x60] sm:$0xff]  ;;  %v3520_v18 = vld [vmem:[#allocation2 + $0x78] sm:$0xff] }
 0x860   :  { %v3519_v61 = vld [vmem:[#allocation2 + $0x70] sm:$0xff]  ;;  %v3779_v51 = vld [vmem:[%s7371_s3] sm:$0x3] }
 0x861   :  { %v3784_v8 = vrot.slane %v3779_v51, %v3783_v28  ;;  %v3788_v40 = vrot.slane %v3779_v51, %v3787_v34 }
 0x862   :  { %5068 = vmatpush1.bf16.msra.mxu0 %v3527_v55 }
 0x863   :  { %5070 = vmatprep.subr.bf16.mxu0 %v3530_v44 }
 0x866   :  { %5072 = vmatpush1.bf16.msra.mxu0 %v3529_v59 }
 0x867   :  { %5074 = vmatprep.subr.bf16.mxu0 %v3532_v7 }
 0x86a   :  { %5076 = vmatpush1.bf16.msra.mxu0 %v3531_v41 }
 0x86b   :  { %5078 = vmatprep.subr.bf16.mxu0 %v3534_v33 }
 0x86e   :  { %5080 = vmatpush1.bf16.msra.mxu0 %v3533_v63 }
 0x86f   :  { %5082 = vmatprep.subr.bf16.mxu0 %v3536_v3 }
 0x872   :  { %5084 = vmatpush1.bf16.msra.mxu0 %v3535_v25 }
 0x873   :  { %5086 = vmatprep.subr.bf16.mxu0 %v3506_v13 }
 0x875   :  { %3666 = vmatmul.mubr.f32.vlgmr.msra.gmra.mrb[60].mxu0 %v7489_v35 }
 0x876   :  { %5088 = vmatpush1.bf16.msra.mxu0 %v3505_v9  ;;  %3671 = vmatprep.mubr.f32.mxu0 %v7488_v46 }
 0x877   :  { %5090 = vmatprep.subr.bf16.mxu0 %v3508_v36 }
 0x879   :  { %3672 = vmatmul.mubr.f32.gmra.mrb[62].mxu0 %v7490_v16 }
 0x87a   :  { %5092 = vmatpush1.bf16.msra.mxu0 %v3507_v26  ;;  %3677 = vmatprep.mubr.f32.mxu0 %v7488_v46 }
 0x87b   :  { %5094 = vmatprep.subr.bf16.mxu0 %v3510_v53 }
 0x87d   :  { %3678 = vmatmul.mubr.f32.gmra.mrb[64].mxu0 %v7491_v12 }
 0x87e   :  { %5096 = vmatpush1.bf16.msra.mxu0 %v3509_v39  ;;  %3683 = vmatprep.mubr.f32.mxu0 %v7488_v46 }
 0x87f   :  { %5098 = vmatprep.subr.bf16.mxu0 %v3512_v11 }
 0x881   :  { %3684 = vmatmul.mubr.f32.gmra.mrb[66].mxu0 %v7492_v30 }
 0x882   :  { %5100 = vmatpush1.bf16.msra.mxu0 %v3511_v1  ;;  %3754 = vmatprep.mubr.f32.mxu0 %v7488_v46 }
 0x883   :  { %5102 = vmatprep.subr.bf16.mxu0 %v3514_v42 }
 0x886   :  { %5104 = vmatpush1.bf16.msra.mxu0 %v3513_v38 }
 0x887   :  { %5106 = vmatprep.subr.bf16.mxu0 %v3516_v58 }
 0x88a   :  { %5108 = vmatpush1.bf16.msra.mxu0 %v3515_v37 }
 0x88b   :  { %5110 = vmatprep.subr.bf16.mxu0 %v3518_v56 }
 0x88e   :  { %5112 = vmatpush1.bf16.msra.mxu0 %v3517_v57 }
 0x88f   :  { %5114 = vmatprep.subr.bf16.mxu0 %v3520_v18 }
 0x892   :  { %5116 = vmatpush1.bf16.msra.mxu0 %v3519_v61 }
 0x895   :  { %3755 = vmatmul.mubr.f32.vlgmr.msra.gmra.mrb[60].mxu0 %v7256_v45 }
 0x896   :  { %3760 = vmatprep.mubr.f32.mxu0 %v7488_v46 }
 0x899   :  { %3761 = vmatmul.mubr.f32.gmra.mrb[62].mxu0 %v7259_v22 }
 0x89a   :  { %3766 = vmatprep.mubr.f32.mxu0 %v7488_v46 }
 0x89d   :  { %3767 = vmatmul.mubr.f32.gmra.mrb[64].mxu0 %v7245_v14 }
 0x89e   :  { %3772 = vmatprep.mubr.f32.mxu0 %v7488_v46 }
 0x8a1   :  { %3773 = vmatmul.mubr.f32.gmra.mrb[66].mxu0 %v7248_v27 }
 0x968   :  { %v3756_v32 = vpop.f32.mrb[60].mxu0 }
 0x969   :  { %v3758_v17 = vpop.f32.mrb[61].mxu0  ;;  %v7287_v43 = vadd.f32 %v3784_v8, %v3756_v32 }
 0x96a   :  { %v3792_v4 = vadd.f32 %v3788_v40, %v3758_v17 }
 0x96c   :  { %v3762_v0 = vpop.f32.mrb[62].mxu0 }
 0x96d   :  { %v7289_v14 = vadd.f32 %v3784_v8, %v3762_v0  ;;  %v3764_v54 = vpop.f32.mrb[63].mxu0 }
 0x96e   :  { %v7291_v27 = vadd.f32 %v3788_v40, %v3764_v54 }
 0x96f   :  { %v5119_v31 = vpack.c.bf16 %v7289_v14, %v7287_v43 }
 0x970   :  { %v3768_v48 = vpop.f32.mrb[64].mxu0  ;;  %v5117_v6 = vpack.c.bf16 %v7291_v27, %v3792_v4 }
 0x971   :  { %v3770_v47 = vpop.f32.mrb[65].mxu0  ;;  %v7296_v45 = vadd.f32 %v3784_v8, %v3768_v48 }
 0x972   :  { %5118 = vmatprep.subr.bf16.mxu1 %v5117_v6  ;;  %v7300_v50 = vadd.f32 %v3788_v40, %v3770_v47 }
 0x973   :  { %5120 = vmatpush1.bf16.msra.mxu1 %v5119_v31 }
 0x974   :  { %v3774_v29 = vpop.f32.mrb[66].mxu0 }
 0x975   :  { %v7298_v22 = vadd.f32 %v3784_v8, %v3774_v29  ;;  %v3776_v19 = vpop.f32.mrb[67].mxu0 }
 0x976   :  { %v7302_v2 = vadd.f32 %v3788_v40, %v3776_v19 }
 0x977   :  { %v5123_v49 = vpack.c.bf16 %v7298_v22, %v7296_v45 }
 0x978   :  { %v5121_v21 = vpack.c.bf16 %v7302_v2, %v7300_v50 }
 0x97a   :  { %5122 = vmatprep.subr.bf16.mxu1 %v5121_v21 }
 0x97b   :  { %5124 = vmatpush1.bf16.msra.mxu1 %v5123_v49 }
 0x97e   :  { %4334 = vmatmul.mubr.msk.f32.vlgmr.msra.gmra.mrb[40].mxu1 %vm630_vm0, %v7251_v52 }
 0x97f   :  { %3881 = vmatprep.mubr.f32.mxu1 %v7488_v46 }
 0x982   :  { %4335 = vmatmul.mubr.msk.f32.gmra.mrb[42].mxu1 %vm630_vm0, %v7236_v5 }
 0x983   :  { %3887 = vmatprep.mubr.f32.mxu1 %v7488_v46 }
 0x986   :  { %4336 = vmatmul.mubr.msk.f32.gmra.mrb[44].mxu1 %vm630_vm0, %v7262_v24 }
 0x987   :  { %3893 = vmatprep.mubr.f32.mxu1 %v7488_v46 }
 0x98a   :  { %4337 = vmatmul.mubr.msk.f32.gmra.mrb[46].mxu1 %vm630_vm0, %v7265_v23 }
 0xa51   :  { %v7319_v20 = vpop.f32.mrb[40].mxu1 }
 0xa52   :  { %v7321_v10 = vpop.f32.mrb[41].mxu1 }
 0xa55   :  { %v7323_v52 = vpop.f32.mrb[42].mxu1 }
 0xa56   :  { %v7325_v60 = vpop.f32.mrb[43].mxu1 }
 0xa59   :  { %v7327_v55 = vpop.f32.mrb[44].mxu1 }
 0xa5a   :  { %v7329_v5 = vpop.f32.mrb[45].mxu1 }
 0xa5d   :  { %v7331_v44 = vpop.f32.mrb[46].mxu1 }
 0xa5e   :  { %v7333_v24 = vpop.f32.mrb[47].mxu1 }
 0xa5f   :  { %5806 = dma.done.wait [#allocation4 + $0x1], 4096 }
 0xa60   :  { %5807 = vsyncadd [#allocation4 + $0x1], 4294963200  ;;  %4064 = vmatprep.mubr.f32.mxu1 %v3792_v4  ;;  %v3928_v46 = vld [vmem:[#allocation3 + $0xc0] sm:$0xff]  ;;  %v3929_v59 = vld [vmem:[#allocation3 + $0xc8] sm:$0xff]  ;;  %s5828_s2 = smov [#allocation11]  }
 0xa61   :  { %v3920_v23 = vld [vmem:[#allocation3 + $0x80] sm:$0xff]  ;;  %5126 = vmatprep.subr.bf16.mxu1 %v3928_v46  ;;  %v3921_v7 = vld [vmem:[#allocation3 + $0x88] sm:$0xff]  ;;  %v3930_v41 = vld [vmem:[#allocation3 + $0xd0] sm:$0xff]  ;;  %s4190_s30 = sshll.u32 %s5828_s2, 4  ;;  %s4191_s30 = int_to_ptr.vmem [resolvable:$true] %s4190_s30 }
 0xa62   :  { %5128 = vmatpush3.bf16.msra.mxu1 %v3920_v23  ;;  %v3922_v33 = vld [vmem:[#allocation3 + $0x90] sm:$0xff]  ;;  %v3931_v63 = vld [vmem:[#allocation3 + $0xd8] sm:$0xff]  ;;  %v3932_v25 = vld [vmem:[#allocation3 + $0xe0] sm:$0xff]  ;;  %p5783_p9 = scmp.lt.s32.totalorder %s4191_s30, %s4191_s30 }
 0xa63   :  { %5130 = vmatprep.subr.bf16.mxu1 %v3929_v59  ;;  %v3923_v3 = vld [vmem:[#allocation3 + $0x98] sm:$0xff]  ;;  %v3924_v13 = vld [vmem:[#allocation3 + $0xa0] sm:$0xff]  ;;  %v3933_v9 = vld [vmem:[#allocation3 + $0xe8] sm:$0xff] }
 0xa64   :  { %v3925_v36 = vld [vmem:[#allocation3 + $0xa8] sm:$0xff]  ;;  %v3934_v35 = vld [vmem:[#allocation3 + $0xf0] sm:$0xff]  ;;  %v3935_v53 = vld [vmem:[#allocation3 + $0xf8] sm:$0xff] }
 0xa65   :  { %v3926_v26 = vld [vmem:[#allocation3 + $0xb0] sm:$0xff]  ;;  %v3927_v16 = vld [vmem:[#allocation3 + $0xb8] sm:$0xff]  ;;  %v3912_v39 = vld [vmem:[#allocation3 + $0x40] sm:$0xff] }
 0xa66   :  { %5132 = vmatpush3.bf16.msra.mxu1 %v3921_v7  ;;  %v3904_v11 = vld [vmem:[#allocation3] sm:$0xff]  ;;  %v3913_v12 = vld [vmem:[#allocation3 + $0x48] sm:$0xff]  ;;  %v3914_v42 = vld [vmem:[#allocation3 + $0x50] sm:$0xff] }
 0xa67   :  { %5134 = vmatprep.subr.bf16.mxu1 %v3930_v41  ;;  %v3905_v1 = vld [vmem:[#allocation3 + $0x8] sm:$0xff]  ;;  %v3906_v30 = vld [vmem:[#allocation3 + $0x10] sm:$0xff]  ;;  %v3915_v38 = vld [vmem:[#allocation3 + $0x58] sm:$0xff] }
 0xa68   :  { %v3907_v58 = vld [vmem:[#allocation3 + $0x18] sm:$0xff]  ;;  %v3916_v37 = vld [vmem:[#allocation3 + $0x60] sm:$0xff]  ;;  %v3917_v57 = vld [vmem:[#allocation3 + $0x68] sm:$0xff] }
 0xa69   :  { %v3908_v56 = vld [vmem:[#allocation3 + $0x20] sm:$0xff]  ;;  %v3909_v18 = vld [vmem:[#allocation3 + $0x28] sm:$0xff]  ;;  %v3918_v61 = vld [vmem:[#allocation3 + $0x70] sm:$0xff] }
 0xa6a   :  { %5136 = vmatpush3.bf16.msra.mxu1 %v3922_v33  ;;  %v3910_v15 = vld [vmem:[#allocation3 + $0x30] sm:$0xff]  ;;  %v3919_v62 = vld [vmem:[#allocation3 + $0x78] sm:$0xff]  ;;  %v4338_v47 = vld [vmem:[%s7372_s4] ss:$0 sm:$0xff]  ;;  %s5778_s4 = scalar_lea.vmem %s4191_s30, 512 }
 0xa6b   :  { %5138 = vmatprep.subr.bf16.mxu1 %v3931_v63  ;;  %v3911_v28 = vld [vmem:[#allocation3 + $0x38] sm:$0xff]  ;;  %p5779_p8 = scmp.ne.s32.totalorder %s4191_s30, %s5778_s4  ;;  %p5784_p10 = scmp.lt.s32.totalorder %s5778_s4, %s5778_s4 }
 0xa6d   :  { %p5785_p11 = por %p5784_p10, %p5783_p9 }
 0xa6e   :  { %5140 = vmatpush3.bf16.msra.mxu1 %v3923_v3 }
 0xa6f   :  { %5142 = vmatprep.subr.bf16.mxu1 %v3932_v25  ;;  %p5786_p12 = pnand %p5785_p11, %p5779_p8 }
 0xa72   :  { %5144 = vmatpush3.bf16.msra.mxu1 %v3924_v13 }
 0xa73   :  { %5146 = vmatprep.subr.bf16.mxu1 %v3933_v9 }
 0xa76   :  { %5148 = vmatpush3.bf16.msra.mxu1 %v3925_v36 }
 0xa77   :  { %5150 = vmatprep.subr.bf16.mxu1 %v3934_v35 }
 0xa7a   :  { %5152 = vmatpush3.bf16.msra.mxu1 %v3926_v26 }
 0xa7b   :  { %5154 = vmatprep.subr.bf16.mxu1 %v3935_v53 }
 0xa7e   :  { %5156 = vmatpush3.bf16.msra.mxu1 %v3927_v16 }
 0xa7f   :  { %5158 = vmatprep.subr.bf16.mxu1 %v3912_v39 }
 0xa81   :  { %4065 = vmatmul.mubr.f32.vlgmr.msra.gmra.mrb[48].mxu1 %v7287_v43 }
 0xa82   :  { %5160 = vmatpush3.bf16.msra.mxu1 %v3904_v11  ;;  %4069 = vmatprep.mubr.f32.mxu1 %v7291_v27 }
 0xa83   :  { %5162 = vmatprep.subr.bf16.mxu1 %v3913_v12 }
 0xa85   :  { %4070 = vmatmul.mubr.f32.gmra.mrb[50].mxu1 %v7289_v14 }
 0xa86   :  { %5164 = vmatpush3.bf16.msra.mxu1 %v3905_v1  ;;  %4074 = vmatprep.mubr.f32.mxu1 %v7300_v50 }
 0xa87   :  { %5166 = vmatprep.subr.bf16.mxu1 %v3914_v42 }
 0xa89   :  { %4075 = vmatmul.mubr.f32.gmra.mrb[52].mxu1 %v7296_v45 }
 0xa8a   :  { %5168 = vmatpush3.bf16.msra.mxu1 %v3906_v30  ;;  %4079 = vmatprep.mubr.f32.mxu1 %v7302_v2 }
 0xa8b   :  { %5170 = vmatprep.subr.bf16.mxu1 %v3915_v38 }
 0xa8d   :  { %4080 = vmatmul.mubr.f32.gmra.mrb[54].mxu1 %v7298_v22 }
 0xa8e   :  { %5172 = vmatpush3.bf16.msra.mxu1 %v3907_v58  ;;  %4149 = vmatprep.mubr.f32.mxu1 %v7321_v10 }
 0xa8f   :  { %5174 = vmatprep.subr.bf16.mxu1 %v3916_v37 }
 0xa92   :  { %5176 = vmatpush3.bf16.msra.mxu1 %v3908_v56 }
 0xa93   :  { %5178 = vmatprep.subr.bf16.mxu1 %v3917_v57 }
 0xa96   :  { %5180 = vmatpush3.bf16.msra.mxu1 %v3909_v18 }
 0xa97   :  { %5182 = vmatprep.subr.bf16.mxu1 %v3918_v61 }
 0xa9a   :  { %5184 = vmatpush3.bf16.msra.mxu1 %v3910_v15 }
 0xa9b   :  { %5186 = vmatprep.subr.bf16.mxu1 %v3919_v62 }
 0xa9e   :  { %5188 = vmatpush3.bf16.msra.mxu1 %v3911_v28 }
 0xaa1   :  { %4150 = vmatmul.mubr.f32.vlgmr.msra.gmra.mrb[56].mxu1 %v7319_v20 }
 0xaa2   :  { %4154 = vmatprep.mubr.f32.mxu1 %v7325_v60 }
 0xaa5   :  { %4155 = vmatmul.mubr.f32.gmra.mrb[58].mxu1 %v7323_v52 }
 0xaa6   :  { %4159 = vmatprep.mubr.f32.mxu1 %v7329_v5 }
 0xaa9   :  { %4160 = vmatmul.mubr.f32.gmra.mrb[60].mxu1 %v7327_v55 }
 0xaaa   :  { %4164 = vmatprep.mubr.f32.mxu1 %v7333_v24 }
 0xaad   :  { %4165 = vmatmul.mubr.f32.gmra.mrb[62].mxu1 %v7331_v44 }
 0xb54   :  { %v4501_v51 = vpop.f32.mrb[48].mxu1 }
 0xb55   :  { %v4502_v34 = vpop.f32.mrb[49].mxu1 }
 0xb56   :  { %v4503_v32 = vadd.f32 %v4502_v34, %v4501_v51 }
 0xb58   :  { %v4504_v8 = vpop.f32.mrb[50].mxu1 }
 0xb59   :  { %v4505_v17 = vpop.f32.mrb[51].mxu1 }
 0xb5a   :  { %v4506_v40 = vadd.f32 %v4505_v17, %v4504_v8 }
 0xb5c   :  { %v4507_v0 = vpop.f32.mrb[52].mxu1 }
 0xb5d   :  { %v4508_v43 = vpop.f32.mrb[53].mxu1 }
 0xb5e   :  { %v4509_v14 = vadd.f32 %v4508_v43, %v4507_v0 }
 0xb60   :  { %v4510_v54 = vpop.f32.mrb[54].mxu1 }
 0xb61   :  { %v4511_v4 = vpop.f32.mrb[55].mxu1 }
 0xb62   :  { %v4512_v27 = vadd.f32 %v4511_v4, %v4510_v54 }
 0xb74   :  { %v4545_v31 = vpop.f32.mrb[56].mxu1 }
 0xb75   :  { %v4546_v48 = vpop.f32.mrb[57].mxu1 }
 0xb76   :  { %v4547_v6 = vadd.f32 %v4546_v48, %v4545_v31 }
 0xb78   :  { %v4152_v29 = vadd.f32 %v4547_v6, %v4503_v32  ;;  %v4548_v45 = vpop.f32.mrb[58].mxu1 }
 0xb79   :  { %v4549_v22 = vpop.f32.mrb[59].mxu1 }
 0xb7a   :  { %v4177_v19 = vadd.f32 %v4338_v47, %v4152_v29  ;;  %v4550_v50 = vadd.f32 %v4549_v22, %v4548_v45 }
 0xb7c   :  { %4181 = vst [vmem:[#allocation11] sm:$0xff] %v4177_v19  ;;  %v4157_v2 = vadd.f32 %v4550_v50, %v4506_v40  ;;  %v4551_v49 = vpop.f32.mrb[60].mxu1 }
 0xb7d   :  { %v4552_v21 = vpop.f32.mrb[61].mxu1 }
 0xb7e   :  { %v4178_v20 = vadd.f32 %v4338_v47, %v4157_v2  ;;  %v4553_v10 = vadd.f32 %v4552_v21, %v4551_v49 }
 0xb80   :  { %4182 = vst [vmem:[#allocation11 + $0x8] sm:$0xff] %v4178_v20  ;;  %v4162_v52 = vadd.f32 %v4553_v10, %v4509_v14  ;;  %v4554_v60 = vpop.f32.mrb[62].mxu1 }
 0xb81   :  { %v4555_v55 = vpop.f32.mrb[63].mxu1 }
 0xb82   :  { %v4179_v5 = vadd.f32 %v4338_v47, %v4162_v52  ;;  %v4556_v44 = vadd.f32 %v4555_v55, %v4554_v60 }
 0xb84   :  { %4183 = vst [vmem:[#allocation11 + $0x10] sm:$0xff] %v4179_v5  ;;  %v4167_v24 = vadd.f32 %v4556_v44, %v4512_v27 }
 0xb86   :  { %v4180_v46 = vadd.f32 %v4338_v47, %v4167_v24 }
 0xb88   :  { %4184 = vst [vmem:[#allocation11 + $0x18] sm:$0xff] %v4180_v46 }
 0xb89   :  { %5789 = shalt.err (!%p5786_p12)
}
 0xb8a   :  { %s5790_s25 = scalar_lea.hbm %s7375_s7, 512 }
 0xb8b   :  { %p5791_p13 = scmp.ne.s32.totalorder %s7375_s7, %s5790_s25  ;;  %p5794_p0 = scmp.lt.u32.totalorder %s5790_s25, %s7375_s7 }
 0xb8d   :  { %p5796_p1 = pnand %p5794_p0, %p5791_p13 }
 0xb8f   :  { %5799 = shalt.err (!%p5796_p1)
}
 0xb90   :  { %4196 = dma.vmem_to_hbm [thread:$0]  %s4191_s30, 512, %s7375_s7, [#allocation7], %s5812_s16, %s5812_s16, %s5813_s17  }
 0xb91   :  { %5808 = dma.done.wait [#allocation7], 512  }
 0xb92   :  { %5809 = vsyncadd [#allocation7], 4294966784 }
 0xb93   :  { %4200 = vsyncpa [#allocation6], 1 }
 0xb94   :  { %4201 = vsyncpa [#allocation9], 1 }
 0xb95   :  { %4202 = vsyncpa [#allocation7], 1 }
 0xb96   :  { %4203 = vsyncmov [#allocation4] }
 0xb99   :  { %s4204_s14 = vpop.sfrf %4203 }
 0xb9a   :  { %p4339_p2 = scmp.ne.s32.totalorder %s4204_s14, 0 }
 0xb9c   :  { %4208 = shalt.err (%p4339_p2)  }
 0xb9d   :  { %4210 = vsyncmov [#allocation4 + $0x1] }
 0xba0   :  { %s4211_s15 = vpop.sfrf %4210 }
 0xba1   :  { %p4340_p3 = scmp.ne.s32.totalorder %s4211_s15, 0 }
 0xba3   :  { %4215 = shalt.err (%p4340_p3)  }

</bundles_post_ra>
